<compile_context>
chip_gen: v7x
topology: tpu7x:2x2x1
jax: 0.10.0
libtpu: 0.0.40
codegen_flags: <defaults>
</compile_context>

<pallas_src>
import jax
import jax.numpy as jnp
from jax.experimental import pallas as pl
from jax.experimental.pallas import tpu as pltpu

SOFTPLUS_THRESHOLD = 20.0
BN_EPS = 1e-5


def _softplus(x):
    # matches torch.nn.Softplus(beta=1, threshold=20)
    xs = jnp.minimum(x, SOFTPLUS_THRESHOLD)
    return jnp.where(x > SOFTPLUS_THRESHOLD, x, jnp.log(1.0 + jnp.exp(xs)))


def _sigmoid(x):
    # overflow-guarded sigmoid: exp() only ever sees non-positive arguments
    z = jnp.exp(-jnp.abs(x))
    return jnp.where(x >= 0, 1.0 / (1.0 + z), z / (1.0 + z))


def _batchnorm(x, gamma, beta):
    # training-mode BatchNorm1d: batch statistics, biased variance
    mu = jnp.mean(x, axis=0, keepdims=True)
    var = jnp.mean((x - mu) ** 2, axis=0, keepdims=True)
    return (x - mu) * jax.lax.rsqrt(var + BN_EPS) * gamma + beta


def _full_spec(shape):
    # whole array as a single block (grid=(1,))
    return pl.BlockSpec(shape, lambda i: (0,) * len(shape))


# ---------------------------------------------------------------------------
# fused kernel: embedding + n_conv ConvLayers + pooling + head
# ---------------------------------------------------------------------------
def _cgcnn_kernel(atom0_ref, edge_ref, nbr_col_ref, own_col_ref, own_row_ref, pool_ref,
                  w_emb_ref, b_emb_ref,
                  wc_ref, wn_ref, we_ref, fcb_ref,
                  g1_ref, b1_ref, g2_ref, b2_ref,
                  w_fc_ref, b_fc_ref, w_out_ref, b_out_ref,
                  o_ref):
    n_conv = wc_ref.shape[0]
    A = wc_ref.shape[1]
    N = atom0_ref.shape[0]
    NM = edge_ref.shape[0]

    # ---- graph selection matrices built once in the prologue (iota + compare) ----
    lane_atoms = jax.lax.broadcasted_iota(jnp.int32, (NM, N), 1)            # atom id per lane
    gather_oh = (nbr_col_ref[...] == lane_atoms).astype(jnp.float32)        # (NM, N) nbr gather
    expand = (own_col_ref[...] == lane_atoms).astype(jnp.float32)           # (NM, N) central expand
    sub_atoms = jax.lax.broadcasted_iota(jnp.int32, (N, NM), 0)             # atom id per sublane
    sum_mat = (own_row_ref[...] == sub_atoms).astype(jnp.float32)           # (N, NM) neighbor sum

    edge = edge_ref[...]                                                     # (NM, B)

    # ---- embedding --------------------------------------------------------
    atom = (jnp.dot(atom0_ref[...], w_emb_ref[...],
                    preferred_element_type=jnp.float32) + b_emb_ref[...])    # (N, A)

    # ---- n_conv ConvLayers, unrolled; atom features stay VMEM resident ----
    for l in range(n_conv):
        # fc_full([central | neighbor | edge]) with the gather re-associated:
        #   (gather_oh @ atom) @ Wn == gather_oh @ (atom @ Wn)
        cg = jnp.dot(atom, wc_ref[l], preferred_element_type=jnp.float32)    # (N, 2A)
        ng = jnp.dot(atom, wn_ref[l], preferred_element_type=jnp.float32)    # (N, 2A)
        gated = (jnp.dot(expand, cg, preferred_element_type=jnp.float32)
                 + jnp.dot(gather_oh, ng, preferred_element_type=jnp.float32)
                 + jnp.dot(edge, we_ref[l], preferred_element_type=jnp.float32)
                 + fcb_ref[l])                                               # (NM, 2A)

        # BatchNorm1d over the (N*M, 2A) rows
        gated = _batchnorm(gated, g1_ref[l], b1_ref[l])

        # gate * core, then sum over the M neighbors of each atom
        prod = _sigmoid(gated[:, :A]) * _softplus(gated[:, A:])              # (NM, A)
        nbr_sumed = jnp.dot(sum_mat, prod,
                            preferred_element_type=jnp.float32)             # (N, A)
        nbr_sumed = _batchnorm(nbr_sumed, g2_ref[l], b2_ref[l])

        atom = _softplus(atom + nbr_sumed)                                   # residual

    # ---- head: mean pool -> softplus -> conv_to_fc -> softplus -> fc_out --
    crys = jnp.dot(pool_ref[...], atom, preferred_element_type=jnp.float32)  # (N0, A)
    h = _softplus(crys)
    h = jnp.dot(h, w_fc_ref[...], preferred_element_type=jnp.float32) + b_fc_ref[...]
    h = _softplus(h)
    o_ref[...] = (jnp.dot(h, w_out_ref[...], preferred_element_type=jnp.float32)
                  + b_out_ref[...])


# ---------------------------------------------------------------------------
# JAX glue: small int32 index vectors, stacked per-layer weights, one pallas_call.
# ---------------------------------------------------------------------------
def crystal_graph_conv_net(atom_fea, nbr_fea, nbr_fea_idx, pool_mat, params):
    N, M = nbr_fea_idx.shape
    NM = N * M
    B = nbr_fea.shape[-1]
    N0 = pool_mat.shape[0]

    # tiny O(N*M) index vectors; the O(N^2*M) one-hot selectors are built in-kernel
    nbr_col = nbr_fea_idx.reshape(NM, 1).astype(jnp.int32)                   # (NM, 1)
    owner = jnp.arange(NM, dtype=jnp.int32) // M                             # row -> central atom
    own_col = owner.reshape(NM, 1)                                           # (NM, 1)
    own_row = owner.reshape(1, NM)                                           # (1, NM)

    edge = nbr_fea.reshape(NM, B)

    # stack per-layer ConvLayer parameters so one kernel holds all of them
    stk = lambda k: jnp.stack([p[k] for p in params["convs"]], axis=0)
    args = (atom_fea, edge, nbr_col, own_col, own_row, pool_mat,
            params["w_emb"], params["b_emb"],
            stk("wc"), stk("wn"), stk("we"), stk("bias"),
            stk("g1"), stk("b1"), stk("g2"), stk("b2"),
            params["w_fc"], params["b_fc"], params["w_out"], params["b_out"])

    return pl.pallas_call(
        _cgcnn_kernel,
        grid=(1,),
        in_specs=[_full_spec(a.shape) for a in args],
        out_specs=_full_spec((N0, 1)),
        out_shape=jax.ShapeDtypeStruct((N0, 1), jnp.float32),
        compiler_params=pltpu.CompilerParams(dimension_semantics=("arbitrary",)),
    )(*args)


if __name__ == "__main__":
    # hyper-parameters (small but consistent with the module)
    orig_atom_fea_len = 8
    nbr_fea_len = 16
    atom_fea_len = 32
    n_conv = 3
    h_fea_len = 64
    N, M, N0 = 16, 8, 2   # atoms, max neighbors, crystals

    key = jax.random.PRNGKey(0)
    keys = iter(jax.random.split(key, 32))

    def uni(k, shape, fan_in):
        bound = 1.0 / (fan_in ** 0.5)
        return jax.random.uniform(k, shape, jnp.float32, -bound, bound)

    fan_full = 2 * atom_fea_len + nbr_fea_len
    params = {
        "w_emb": uni(next(keys), (orig_atom_fea_len, atom_fea_len), orig_atom_fea_len),
        "b_emb": uni(next(keys), (1, atom_fea_len), orig_atom_fea_len),
        "convs": [],
        "w_fc": None, "b_fc": None, "w_out": None, "b_out": None,
    }
    for _ in range(n_conv):
        params["convs"].append({
            # fc_full weight split into central / neighbor / edge blocks (transposed)
            "wc": uni(next(keys), (atom_fea_len, 2 * atom_fea_len), fan_full),
            "wn": uni(next(keys), (atom_fea_len, 2 * atom_fea_len), fan_full),
            "we": uni(next(keys), (nbr_fea_len, 2 * atom_fea_len), fan_full),
            "bias": uni(next(keys), (1, 2 * atom_fea_len), fan_full),
            "g1": jnp.ones((1, 2 * atom_fea_len), jnp.float32),
            "b1": jnp.zeros((1, 2 * atom_fea_len), jnp.float32),
            "g2": jnp.ones((1, atom_fea_len), jnp.float32),
            "b2": jnp.zeros((1, atom_fea_len), jnp.float32),
        })
    params["w_fc"] = uni(next(keys), (atom_fea_len, h_fea_len), atom_fea_len)
    params["b_fc"] = uni(next(keys), (1, h_fea_len), atom_fea_len)
    params["w_out"] = uni(next(keys), (h_fea_len, 1), h_fea_len)
    params["b_out"] = uni(next(keys), (1, 1), h_fea_len)

    # inputs
    atom_fea = jax.random.normal(next(keys), (N, orig_atom_fea_len), jnp.float32)
    nbr_fea = jax.random.normal(next(keys), (N, M, nbr_fea_len), jnp.float32)
    nbr_fea_idx = jax.random.randint(next(keys), (N, M), 0, N, jnp.int32)
    crystal_atom_idx = [jnp.arange(0, 8), jnp.arange(8, 16)]

    # mirrors the ConvLayer assert on neighbor indices (host-side check)
    assert int(nbr_fea_idx.max()) < N

    # ragged crystal_atom_idx -> dense mean-pooling matrix (host-side JAX glue)
    pool_mat = jnp.zeros((N0, N), jnp.float32)
    total = 0
    for c, idxs in enumerate(crystal_atom_idx):
        pool_mat = pool_mat.at[c, idxs].set(1.0 / idxs.shape[0])
        total += int(idxs.shape[0])
    assert total == N  # mirrors pooling() assert

    fwd = jax.jit(crystal_graph_conv_net)
    out = fwd(atom_fea, nbr_fea, nbr_fea_idx, pool_mat, params)
    out = jax.block_until_ready(out)
    assert out.shape == (N0, 1) and out.dtype == jnp.float32
    print("KERNEL_OK")
</pallas_src>

<mosaic_0001>
module attributes {stable_mosaic.version = 11 : i64} {
  func.func @_cgcnn_kernel(%arg0: i32, %arg1: memref<16x8xf32, #tpu.memory_space<vmem>>, %arg2: memref<128x16xf32, #tpu.memory_space<vmem>>, %arg3: memref<128x1xi32, #tpu.memory_space<vmem>>, %arg4: memref<128x1xi32, #tpu.memory_space<vmem>>, %arg5: memref<1x128xi32, #tpu.memory_space<vmem>>, %arg6: memref<2x16xf32, #tpu.memory_space<vmem>>, %arg7: memref<8x32xf32, #tpu.memory_space<vmem>>, %arg8: memref<1x32xf32, #tpu.memory_space<vmem>>, %arg9: memref<3x32x64xf32, #tpu.memory_space<vmem>>, %arg10: memref<3x32x64xf32, #tpu.memory_space<vmem>>, %arg11: memref<3x16x64xf32, #tpu.memory_space<vmem>>, %arg12: memref<3x1x64xf32, #tpu.memory_space<vmem>>, %arg13: memref<3x1x64xf32, #tpu.memory_space<vmem>>, %arg14: memref<3x1x64xf32, #tpu.memory_space<vmem>>, %arg15: memref<3x1x32xf32, #tpu.memory_space<vmem>>, %arg16: memref<3x1x32xf32, #tpu.memory_space<vmem>>, %arg17: memref<32x64xf32, #tpu.memory_space<vmem>>, %arg18: memref<1x64xf32, #tpu.memory_space<vmem>>, %arg19: memref<64x1xf32, #tpu.memory_space<vmem>>, %arg20: memref<1x1xf32, #tpu.memory_space<vmem>>, %arg21: memref<2x1xf32, #tpu.memory_space<vmem>>) attributes {dimension_semantics = [#tpu.dimension_semantics<arbitrary>], iteration_bounds = array<i64: 1>, scalar_prefetch = 0 : i64, scratch_operands = 0 : i64, tpu.core_type = #tpu.core_type<tc>, window_params = [{pipeline_mode = #tpu.pipeline_mode<synchronous>, transform_indices = @transform_0, window_bounds = array<i64: 16, 8>}, {pipeline_mode = #tpu.pipeline_mode<synchronous>, transform_indices = @transform_1, window_bounds = array<i64: 128, 16>}, {pipeline_mode = #tpu.pipeline_mode<synchronous>, transform_indices = @transform_2, window_bounds = array<i64: 128, 1>}, {pipeline_mode = #tpu.pipeline_mode<synchronous>, transform_indices = @transform_3, window_bounds = array<i64: 128, 1>}, {pipeline_mode = #tpu.pipeline_mode<synchronous>, transform_indices = @transform_4, window_bounds = array<i64: 1, 128>}, {pipeline_mode = #tpu.pipeline_mode<synchronous>, transform_indices = @transform_5, window_bounds = array<i64: 2, 16>}, {pipeline_mode = #tpu.pipeline_mode<synchronous>, transform_indices = @transform_6, window_bounds = array<i64: 8, 32>}, {pipeline_mode = #tpu.pipeline_mode<synchronous>, transform_indices = @transform_7, window_bounds = array<i64: 1, 32>}, {pipeline_mode = #tpu.pipeline_mode<synchronous>, transform_indices = @transform_8, window_bounds = array<i64: 3, 32, 64>}, {pipeline_mode = #tpu.pipeline_mode<synchronous>, transform_indices = @transform_9, window_bounds = array<i64: 3, 32, 64>}, {pipeline_mode = #tpu.pipeline_mode<synchronous>, transform_indices = @transform_10, window_bounds = array<i64: 3, 16, 64>}, {pipeline_mode = #tpu.pipeline_mode<synchronous>, transform_indices = @transform_11, window_bounds = array<i64: 3, 1, 64>}, {pipeline_mode = #tpu.pipeline_mode<synchronous>, transform_indices = @transform_12, window_bounds = array<i64: 3, 1, 64>}, {pipeline_mode = #tpu.pipeline_mode<synchronous>, transform_indices = @transform_13, window_bounds = array<i64: 3, 1, 64>}, {pipeline_mode = #tpu.pipeline_mode<synchronous>, transform_indices = @transform_14, window_bounds = array<i64: 3, 1, 32>}, {pipeline_mode = #tpu.pipeline_mode<synchronous>, transform_indices = @transform_15, window_bounds = array<i64: 3, 1, 32>}, {pipeline_mode = #tpu.pipeline_mode<synchronous>, transform_indices = @transform_16, window_bounds = array<i64: 32, 64>}, {pipeline_mode = #tpu.pipeline_mode<synchronous>, transform_indices = @transform_17, window_bounds = array<i64: 1, 64>}, {pipeline_mode = #tpu.pipeline_mode<synchronous>, transform_indices = @transform_18, window_bounds = array<i64: 64, 1>}, {pipeline_mode = #tpu.pipeline_mode<synchronous>, transform_indices = @transform_19, window_bounds = array<i64: 1, 1>}, {pipeline_mode = #tpu.pipeline_mode<synchronous>, transform_indices = @transform_20, window_bounds = array<i64: 2, 1>}]} {
    %0 = tpu.iota {dimensions = array<i32: 1>} : vector<128x16xi32>
    %c0 = arith.constant 0 : index
    %c0_0 = arith.constant 0 : index
    %1 = vector.load %arg3[%c0, %c0_0] : memref<128x1xi32, #tpu.memory_space<vmem>>, vector<128x1xi32>
    %2 = vector.broadcast %1 : vector<128x1xi32> to vector<128x16xi32>
    %3 = arith.cmpi eq, %2, %0 : vector<128x16xi32>
    %4 = arith.extui %3 : vector<128x16xi1> to vector<128x16xi32>
    %5 = arith.sitofp %4 : vector<128x16xi32> to vector<128x16xf32>
    %c0_1 = arith.constant 0 : index
    %c0_2 = arith.constant 0 : index
    %6 = vector.load %arg4[%c0_1, %c0_2] : memref<128x1xi32, #tpu.memory_space<vmem>>, vector<128x1xi32>
    %7 = vector.broadcast %6 : vector<128x1xi32> to vector<128x16xi32>
    %8 = arith.cmpi eq, %7, %0 : vector<128x16xi32>
    %9 = arith.extui %8 : vector<128x16xi1> to vector<128x16xi32>
    %10 = arith.sitofp %9 : vector<128x16xi32> to vector<128x16xf32>
    %11 = tpu.iota {dimensions = array<i32: 0>} : vector<16x128xi32>
    %c0_3 = arith.constant 0 : index
    %c0_4 = arith.constant 0 : index
    %12 = vector.load %arg5[%c0_3, %c0_4] : memref<1x128xi32, #tpu.memory_space<vmem>>, vector<1x128xi32>
    %13 = vector.broadcast %12 : vector<1x128xi32> to vector<16x128xi32>
    %14 = arith.cmpi eq, %13, %11 : vector<16x128xi32>
    %15 = arith.extui %14 : vector<16x128xi1> to vector<16x128xi32>
    %16 = arith.sitofp %15 : vector<16x128xi32> to vector<16x128xf32>
    %c0_5 = arith.constant 0 : index
    %c0_6 = arith.constant 0 : index
    %17 = vector.load %arg2[%c0_5, %c0_6] : memref<128x16xf32, #tpu.memory_space<vmem>>, vector<128x16xf32>
    %c0_7 = arith.constant 0 : index
    %c0_8 = arith.constant 0 : index
    %18 = vector.load %arg1[%c0_7, %c0_8] : memref<16x8xf32, #tpu.memory_space<vmem>>, vector<16x8xf32>
    %c0_9 = arith.constant 0 : index
    %c0_10 = arith.constant 0 : index
    %19 = vector.load %arg7[%c0_9, %c0_10] : memref<8x32xf32, #tpu.memory_space<vmem>>, vector<8x32xf32>
    %cst = arith.constant dense<0.000000e+00> : vector<16x32xf32>
    %20 = tpu.matmul %18, %19, %cst {dimension_numbers = #tpu.dot_dimension_numbers<[1], [0], [0], [1], [0, 0, 1, 1], [], []>} : vector<16x8xf32>, vector<8x32xf32>, vector<16x32xf32> -> vector<16x32xf32>
    %c0_11 = arith.constant 0 : index
    %c0_12 = arith.constant 0 : index
    %21 = vector.load %arg8[%c0_11, %c0_12] : memref<1x32xf32, #tpu.memory_space<vmem>>, vector<1x32xf32>
    %22 = vector.broadcast %21 : vector<1x32xf32> to vector<16x32xf32>
    %23 = arith.addf %20, %22 : vector<16x32xf32>
    %c0_13 = arith.constant 0 : index
    %c0_14 = arith.constant 0 : index
    %c0_15 = arith.constant 0 : index
    %24 = vector.load %arg9[%c0_13, %c0_14, %c0_15] : memref<3x32x64xf32, #tpu.memory_space<vmem>>, vector<1x32x64xf32>
    %25 = vector.shape_cast %24 : vector<1x32x64xf32> to vector<32x64xf32>
    %cst_16 = arith.constant dense<0.000000e+00> : vector<16x64xf32>
    %26 = tpu.matmul %23, %25, %cst_16 {dimension_numbers = #tpu.dot_dimension_numbers<[1], [0], [0], [1], [0, 0, 1, 1], [], []>} : vector<16x32xf32>, vector<32x64xf32>, vector<16x64xf32> -> vector<16x64xf32>
    %c0_17 = arith.constant 0 : index
    %c0_18 = arith.constant 0 : index
    %c0_19 = arith.constant 0 : index
    %27 = vector.load %arg10[%c0_17, %c0_18, %c0_19] : memref<3x32x64xf32, #tpu.memory_space<vmem>>, vector<1x32x64xf32>
    %28 = vector.shape_cast %27 : vector<1x32x64xf32> to vector<32x64xf32>
    %cst_20 = arith.constant dense<0.000000e+00> : vector<16x64xf32>
    %29 = tpu.matmul %23, %28, %cst_20 {dimension_numbers = #tpu.dot_dimension_numbers<[1], [0], [0], [1], [0, 0, 1, 1], [], []>} : vector<16x32xf32>, vector<32x64xf32>, vector<16x64xf32> -> vector<16x64xf32>
    %cst_21 = arith.constant dense<0.000000e+00> : vector<128x64xf32>
    %30 = tpu.matmul %10, %26, %cst_21 {dimension_numbers = #tpu.dot_dimension_numbers<[1], [0], [0], [1], [0, 0, 1, 1], [], []>} : vector<128x16xf32>, vector<16x64xf32>, vector<128x64xf32> -> vector<128x64xf32>
    %cst_22 = arith.constant dense<0.000000e+00> : vector<128x64xf32>
    %31 = tpu.matmul %5, %29, %cst_22 {dimension_numbers = #tpu.dot_dimension_numbers<[1], [0], [0], [1], [0, 0, 1, 1], [], []>} : vector<128x16xf32>, vector<16x64xf32>, vector<128x64xf32> -> vector<128x64xf32>
    %32 = arith.addf %30, %31 : vector<128x64xf32>
    %c0_23 = arith.constant 0 : index
    %c0_24 = arith.constant 0 : index
    %c0_25 = arith.constant 0 : index
    %33 = vector.load %arg11[%c0_23, %c0_24, %c0_25] : memref<3x16x64xf32, #tpu.memory_space<vmem>>, vector<1x16x64xf32>
    %34 = vector.shape_cast %33 : vector<1x16x64xf32> to vector<16x64xf32>
    %cst_26 = arith.constant dense<0.000000e+00> : vector<128x64xf32>
    %35 = tpu.matmul %17, %34, %cst_26 {dimension_numbers = #tpu.dot_dimension_numbers<[1], [0], [0], [1], [0, 0, 1, 1], [], []>} : vector<128x16xf32>, vector<16x64xf32>, vector<128x64xf32> -> vector<128x64xf32>
    %36 = arith.addf %32, %35 : vector<128x64xf32>
    %c0_27 = arith.constant 0 : index
    %c0_28 = arith.constant 0 : index
    %c0_29 = arith.constant 0 : index
    %37 = vector.load %arg12[%c0_27, %c0_28, %c0_29] : memref<3x1x64xf32, #tpu.memory_space<vmem>>, vector<1x1x64xf32>
    %38 = vector.shape_cast %37 : vector<1x1x64xf32> to vector<1x64xf32>
    %39 = vector.broadcast %38 : vector<1x64xf32> to vector<128x64xf32>
    %40 = arith.addf %36, %39 : vector<128x64xf32>
    %c0_30 = arith.constant 0 : index
    %c0_31 = arith.constant 0 : index
    %c0_32 = arith.constant 0 : index
    %41 = vector.load %arg13[%c0_30, %c0_31, %c0_32] : memref<3x1x64xf32, #tpu.memory_space<vmem>>, vector<1x1x64xf32>
    %42 = vector.shape_cast %41 : vector<1x1x64xf32> to vector<1x64xf32>
    %c0_33 = arith.constant 0 : index
    %c0_34 = arith.constant 0 : index
    %c0_35 = arith.constant 0 : index
    %43 = vector.load %arg14[%c0_33, %c0_34, %c0_35] : memref<3x1x64xf32, #tpu.memory_space<vmem>>, vector<1x1x64xf32>
    %44 = vector.shape_cast %43 : vector<1x1x64xf32> to vector<1x64xf32>
    %cst_36 = arith.constant dense<0.000000e+00> : vector<64xf32>
    %45 = vector.multi_reduction <add>, %40, %cst_36 [0] : vector<128x64xf32> to vector<64xf32>
    %46 = vector.shape_cast %45 : vector<64xf32> to vector<1x64xf32>
    %cst_37 = arith.constant 1.280000e+02 : f32
    %47 = vector.broadcast %cst_37 : f32 to vector<1x64xf32>
    %48 = arith.divf %46, %47 : vector<1x64xf32>
    %49 = vector.broadcast %48 : vector<1x64xf32> to vector<128x64xf32>
    %50 = arith.subf %40, %49 : vector<128x64xf32>
    %51 = arith.mulf %50, %50 : vector<128x64xf32>
    %cst_38 = arith.constant dense<0.000000e+00> : vector<64xf32>
    %52 = vector.multi_reduction <add>, %51, %cst_38 [0] : vector<128x64xf32> to vector<64xf32>
    %53 = vector.shape_cast %52 : vector<64xf32> to vector<1x64xf32>
    %cst_39 = arith.constant 1.280000e+02 : f32
    %54 = vector.broadcast %cst_39 : f32 to vector<1x64xf32>
    %55 = arith.divf %53, %54 : vector<1x64xf32>
    %56 = vector.broadcast %48 : vector<1x64xf32> to vector<128x64xf32>
    %57 = arith.subf %40, %56 : vector<128x64xf32>
    %cst_40 = arith.constant 9.99999974E-6 : f32
    %58 = vector.broadcast %cst_40 : f32 to vector<1x64xf32>
    %59 = arith.addf %55, %58 : vector<1x64xf32>
    %60 = math.rsqrt %59 : vector<1x64xf32>
    %61 = vector.broadcast %60 : vector<1x64xf32> to vector<128x64xf32>
    %62 = arith.mulf %57, %61 : vector<128x64xf32>
    %63 = vector.broadcast %42 : vector<1x64xf32> to vector<128x64xf32>
    %64 = arith.mulf %62, %63 : vector<128x64xf32>
    %65 = vector.broadcast %44 : vector<1x64xf32> to vector<128x64xf32>
    %66 = arith.addf %64, %65 : vector<128x64xf32>
    %67 = vector.extract_strided_slice %66 {offsets = [0, 0], sizes = [128, 32], strides = [1, 1]} : vector<128x64xf32> to vector<128x32xf32>
    %68 = math.absf %67 : vector<128x32xf32>
    %cst_41 = arith.constant 0.000000e+00 : f32
    %69 = vector.broadcast %cst_41 : f32 to vector<128x32xf32>
    %70 = arith.subf %69, %68 : vector<128x32xf32>
    %71 = math.exp %70 : vector<128x32xf32>
    %cst_42 = arith.constant 0.000000e+00 : f32
    %72 = vector.broadcast %cst_42 : f32 to vector<128x32xf32>
    %73 = arith.cmpf oge, %67, %72 : vector<128x32xf32>
    %cst_43 = arith.constant 1.000000e+00 : f32
    %74 = vector.broadcast %cst_43 : f32 to vector<128x32xf32>
    %75 = arith.addf %74, %71 : vector<128x32xf32>
    %cst_44 = arith.constant 1.000000e+00 : f32
    %76 = vector.broadcast %cst_44 : f32 to vector<128x32xf32>
    %77 = arith.divf %76, %75 : vector<128x32xf32>
    %cst_45 = arith.constant 1.000000e+00 : f32
    %78 = vector.broadcast %cst_45 : f32 to vector<128x32xf32>
    %79 = arith.addf %78, %71 : vector<128x32xf32>
    %80 = arith.divf %71, %79 : vector<128x32xf32>
    %81 = arith.select %73, %77, %80 : vector<128x32xi1>, vector<128x32xf32>
    %82 = vector.extract_strided_slice %66 {offsets = [0, 32], sizes = [128, 32], strides = [1, 1]} : vector<128x64xf32> to vector<128x32xf32>
    %cst_46 = arith.constant 2.000000e+01 : f32
    %83 = vector.broadcast %cst_46 : f32 to vector<128x32xf32>
    %84 = arith.minimumf %82, %83 : vector<128x32xf32>
    %cst_47 = arith.constant 2.000000e+01 : f32
    %85 = vector.broadcast %cst_47 : f32 to vector<128x32xf32>
    %86 = arith.cmpf ogt, %82, %85 : vector<128x32xf32>
    %87 = math.exp %84 : vector<128x32xf32>
    %cst_48 = arith.constant 1.000000e+00 : f32
    %88 = vector.broadcast %cst_48 : f32 to vector<128x32xf32>
    %89 = arith.addf %88, %87 : vector<128x32xf32>
    %90 = math.log %89 : vector<128x32xf32>
    %91 = arith.select %86, %82, %90 : vector<128x32xi1>, vector<128x32xf32>
    %92 = arith.mulf %81, %91 : vector<128x32xf32>
    %cst_49 = arith.constant dense<0.000000e+00> : vector<16x32xf32>
    %93 = tpu.matmul %16, %92, %cst_49 {dimension_numbers = #tpu.dot_dimension_numbers<[1], [0], [0], [1], [0, 0, 1, 1], [], []>} : vector<16x128xf32>, vector<128x32xf32>, vector<16x32xf32> -> vector<16x32xf32>
    %c0_50 = arith.constant 0 : index
    %c0_51 = arith.constant 0 : index
    %c0_52 = arith.constant 0 : index
    %94 = vector.load %arg15[%c0_50, %c0_51, %c0_52] : memref<3x1x32xf32, #tpu.memory_space<vmem>>, vector<1x1x32xf32>
    %95 = vector.shape_cast %94 : vector<1x1x32xf32> to vector<1x32xf32>
    %c0_53 = arith.constant 0 : index
    %c0_54 = arith.constant 0 : index
    %c0_55 = arith.constant 0 : index
    %96 = vector.load %arg16[%c0_53, %c0_54, %c0_55] : memref<3x1x32xf32, #tpu.memory_space<vmem>>, vector<1x1x32xf32>
    %97 = vector.shape_cast %96 : vector<1x1x32xf32> to vector<1x32xf32>
    %cst_56 = arith.constant dense<0.000000e+00> : vector<32xf32>
    %98 = vector.multi_reduction <add>, %93, %cst_56 [0] : vector<16x32xf32> to vector<32xf32>
    %99 = vector.shape_cast %98 : vector<32xf32> to vector<1x32xf32>
    %cst_57 = arith.constant 1.600000e+01 : f32
    %100 = vector.broadcast %cst_57 : f32 to vector<1x32xf32>
    %101 = arith.divf %99, %100 : vector<1x32xf32>
    %102 = vector.broadcast %101 : vector<1x32xf32> to vector<16x32xf32>
    %103 = arith.subf %93, %102 : vector<16x32xf32>
    %104 = arith.mulf %103, %103 : vector<16x32xf32>
    %cst_58 = arith.constant dense<0.000000e+00> : vector<32xf32>
    %105 = vector.multi_reduction <add>, %104, %cst_58 [0] : vector<16x32xf32> to vector<32xf32>
    %106 = vector.shape_cast %105 : vector<32xf32> to vector<1x32xf32>
    %cst_59 = arith.constant 1.600000e+01 : f32
    %107 = vector.broadcast %cst_59 : f32 to vector<1x32xf32>
    %108 = arith.divf %106, %107 : vector<1x32xf32>
    %109 = vector.broadcast %101 : vector<1x32xf32> to vector<16x32xf32>
    %110 = arith.subf %93, %109 : vector<16x32xf32>
    %cst_60 = arith.constant 9.99999974E-6 : f32
    %111 = vector.broadcast %cst_60 : f32 to vector<1x32xf32>
    %112 = arith.addf %108, %111 : vector<1x32xf32>
    %113 = math.rsqrt %112 : vector<1x32xf32>
    %114 = vector.broadcast %113 : vector<1x32xf32> to vector<16x32xf32>
    %115 = arith.mulf %110, %114 : vector<16x32xf32>
    %116 = vector.broadcast %95 : vector<1x32xf32> to vector<16x32xf32>
    %117 = arith.mulf %115, %116 : vector<16x32xf32>
    %118 = vector.broadcast %97 : vector<1x32xf32> to vector<16x32xf32>
    %119 = arith.addf %117, %118 : vector<16x32xf32>
    %120 = arith.addf %23, %119 : vector<16x32xf32>
    %cst_61 = arith.constant 2.000000e+01 : f32
    %121 = vector.broadcast %cst_61 : f32 to vector<16x32xf32>
    %122 = arith.minimumf %120, %121 : vector<16x32xf32>
    %cst_62 = arith.constant 2.000000e+01 : f32
    %123 = vector.broadcast %cst_62 : f32 to vector<16x32xf32>
    %124 = arith.cmpf ogt, %120, %123 : vector<16x32xf32>
    %125 = math.exp %122 : vector<16x32xf32>
    %cst_63 = arith.constant 1.000000e+00 : f32
    %126 = vector.broadcast %cst_63 : f32 to vector<16x32xf32>
    %127 = arith.addf %126, %125 : vector<16x32xf32>
    %128 = math.log %127 : vector<16x32xf32>
    %129 = arith.select %124, %120, %128 : vector<16x32xi1>, vector<16x32xf32>
    %c1 = arith.constant 1 : index
    %c0_64 = arith.constant 0 : index
    %c0_65 = arith.constant 0 : index
    %130 = vector.load %arg9[%c1, %c0_64, %c0_65] : memref<3x32x64xf32, #tpu.memory_space<vmem>>, vector<1x32x64xf32>
    %131 = vector.shape_cast %130 : vector<1x32x64xf32> to vector<32x64xf32>
    %cst_66 = arith.constant dense<0.000000e+00> : vector<16x64xf32>
    %132 = tpu.matmul %129, %131, %cst_66 {dimension_numbers = #tpu.dot_dimension_numbers<[1], [0], [0], [1], [0, 0, 1, 1], [], []>} : vector<16x32xf32>, vector<32x64xf32>, vector<16x64xf32> -> vector<16x64xf32>
    %c1_67 = arith.constant 1 : index
    %c0_68 = arith.constant 0 : index
    %c0_69 = arith.constant 0 : index
    %133 = vector.load %arg10[%c1_67, %c0_68, %c0_69] : memref<3x32x64xf32, #tpu.memory_space<vmem>>, vector<1x32x64xf32>
    %134 = vector.shape_cast %133 : vector<1x32x64xf32> to vector<32x64xf32>
    %cst_70 = arith.constant dense<0.000000e+00> : vector<16x64xf32>
    %135 = tpu.matmul %129, %134, %cst_70 {dimension_numbers = #tpu.dot_dimension_numbers<[1], [0], [0], [1], [0, 0, 1, 1], [], []>} : vector<16x32xf32>, vector<32x64xf32>, vector<16x64xf32> -> vector<16x64xf32>
    %cst_71 = arith.constant dense<0.000000e+00> : vector<128x64xf32>
    %136 = tpu.matmul %10, %132, %cst_71 {dimension_numbers = #tpu.dot_dimension_numbers<[1], [0], [0], [1], [0, 0, 1, 1], [], []>} : vector<128x16xf32>, vector<16x64xf32>, vector<128x64xf32> -> vector<128x64xf32>
    %cst_72 = arith.constant dense<0.000000e+00> : vector<128x64xf32>
    %137 = tpu.matmul %5, %135, %cst_72 {dimension_numbers = #tpu.dot_dimension_numbers<[1], [0], [0], [1], [0, 0, 1, 1], [], []>} : vector<128x16xf32>, vector<16x64xf32>, vector<128x64xf32> -> vector<128x64xf32>
    %138 = arith.addf %136, %137 : vector<128x64xf32>
    %c1_73 = arith.constant 1 : index
    %c0_74 = arith.constant 0 : index
    %c0_75 = arith.constant 0 : index
    %139 = vector.load %arg11[%c1_73, %c0_74, %c0_75] : memref<3x16x64xf32, #tpu.memory_space<vmem>>, vector<1x16x64xf32>
    %140 = vector.shape_cast %139 : vector<1x16x64xf32> to vector<16x64xf32>
    %cst_76 = arith.constant dense<0.000000e+00> : vector<128x64xf32>
    %141 = tpu.matmul %17, %140, %cst_76 {dimension_numbers = #tpu.dot_dimension_numbers<[1], [0], [0], [1], [0, 0, 1, 1], [], []>} : vector<128x16xf32>, vector<16x64xf32>, vector<128x64xf32> -> vector<128x64xf32>
    %142 = arith.addf %138, %141 : vector<128x64xf32>
    %c1_77 = arith.constant 1 : index
    %c0_78 = arith.constant 0 : index
    %c0_79 = arith.constant 0 : index
    %143 = vector.load %arg12[%c1_77, %c0_78, %c0_79] : memref<3x1x64xf32, #tpu.memory_space<vmem>>, vector<1x1x64xf32>
    %144 = vector.shape_cast %143 : vector<1x1x64xf32> to vector<1x64xf32>
    %145 = vector.broadcast %144 : vector<1x64xf32> to vector<128x64xf32>
    %146 = arith.addf %142, %145 : vector<128x64xf32>
    %c1_80 = arith.constant 1 : index
    %c0_81 = arith.constant 0 : index
    %c0_82 = arith.constant 0 : index
    %147 = vector.load %arg13[%c1_80, %c0_81, %c0_82] : memref<3x1x64xf32, #tpu.memory_space<vmem>>, vector<1x1x64xf32>
    %148 = vector.shape_cast %147 : vector<1x1x64xf32> to vector<1x64xf32>
    %c1_83 = arith.constant 1 : index
    %c0_84 = arith.constant 0 : index
    %c0_85 = arith.constant 0 : index
    %149 = vector.load %arg14[%c1_83, %c0_84, %c0_85] : memref<3x1x64xf32, #tpu.memory_space<vmem>>, vector<1x1x64xf32>
    %150 = vector.shape_cast %149 : vector<1x1x64xf32> to vector<1x64xf32>
    %cst_86 = arith.constant dense<0.000000e+00> : vector<64xf32>
    %151 = vector.multi_reduction <add>, %146, %cst_86 [0] : vector<128x64xf32> to vector<64xf32>
    %152 = vector.shape_cast %151 : vector<64xf32> to vector<1x64xf32>
    %cst_87 = arith.constant 1.280000e+02 : f32
    %153 = vector.broadcast %cst_87 : f32 to vector<1x64xf32>
    %154 = arith.divf %152, %153 : vector<1x64xf32>
    %155 = vector.broadcast %154 : vector<1x64xf32> to vector<128x64xf32>
    %156 = arith.subf %146, %155 : vector<128x64xf32>
    %157 = arith.mulf %156, %156 : vector<128x64xf32>
    %cst_88 = arith.constant dense<0.000000e+00> : vector<64xf32>
    %158 = vector.multi_reduction <add>, %157, %cst_88 [0] : vector<128x64xf32> to vector<64xf32>
    %159 = vector.shape_cast %158 : vector<64xf32> to vector<1x64xf32>
    %cst_89 = arith.constant 1.280000e+02 : f32
    %160 = vector.broadcast %cst_89 : f32 to vector<1x64xf32>
    %161 = arith.divf %159, %160 : vector<1x64xf32>
    %162 = vector.broadcast %154 : vector<1x64xf32> to vector<128x64xf32>
    %163 = arith.subf %146, %162 : vector<128x64xf32>
    %cst_90 = arith.constant 9.99999974E-6 : f32
    %164 = vector.broadcast %cst_90 : f32 to vector<1x64xf32>
    %165 = arith.addf %161, %164 : vector<1x64xf32>
    %166 = math.rsqrt %165 : vector<1x64xf32>
    %167 = vector.broadcast %166 : vector<1x64xf32> to vector<128x64xf32>
    %168 = arith.mulf %163, %167 : vector<128x64xf32>
    %169 = vector.broadcast %148 : vector<1x64xf32> to vector<128x64xf32>
    %170 = arith.mulf %168, %169 : vector<128x64xf32>
    %171 = vector.broadcast %150 : vector<1x64xf32> to vector<128x64xf32>
    %172 = arith.addf %170, %171 : vector<128x64xf32>
    %173 = vector.extract_strided_slice %172 {offsets = [0, 0], sizes = [128, 32], strides = [1, 1]} : vector<128x64xf32> to vector<128x32xf32>
    %174 = math.absf %173 : vector<128x32xf32>
    %cst_91 = arith.constant 0.000000e+00 : f32
    %175 = vector.broadcast %cst_91 : f32 to vector<128x32xf32>
    %176 = arith.subf %175, %174 : vector<128x32xf32>
    %177 = math.exp %176 : vector<128x32xf32>
    %cst_92 = arith.constant 0.000000e+00 : f32
    %178 = vector.broadcast %cst_92 : f32 to vector<128x32xf32>
    %179 = arith.cmpf oge, %173, %178 : vector<128x32xf32>
    %cst_93 = arith.constant 1.000000e+00 : f32
    %180 = vector.broadcast %cst_93 : f32 to vector<128x32xf32>
    %181 = arith.addf %180, %177 : vector<128x32xf32>
    %cst_94 = arith.constant 1.000000e+00 : f32
    %182 = vector.broadcast %cst_94 : f32 to vector<128x32xf32>
    %183 = arith.divf %182, %181 : vector<128x32xf32>
    %cst_95 = arith.constant 1.000000e+00 : f32
    %184 = vector.broadcast %cst_95 : f32 to vector<128x32xf32>
    %185 = arith.addf %184, %177 : vector<128x32xf32>
    %186 = arith.divf %177, %185 : vector<128x32xf32>
    %187 = arith.select %179, %183, %186 : vector<128x32xi1>, vector<128x32xf32>
    %188 = vector.extract_strided_slice %172 {offsets = [0, 32], sizes = [128, 32], strides = [1, 1]} : vector<128x64xf32> to vector<128x32xf32>
    %cst_96 = arith.constant 2.000000e+01 : f32
    %189 = vector.broadcast %cst_96 : f32 to vector<128x32xf32>
    %190 = arith.minimumf %188, %189 : vector<128x32xf32>
    %cst_97 = arith.constant 2.000000e+01 : f32
    %191 = vector.broadcast %cst_97 : f32 to vector<128x32xf32>
    %192 = arith.cmpf ogt, %188, %191 : vector<128x32xf32>
    %193 = math.exp %190 : vector<128x32xf32>
    %cst_98 = arith.constant 1.000000e+00 : f32
    %194 = vector.broadcast %cst_98 : f32 to vector<128x32xf32>
    %195 = arith.addf %194, %193 : vector<128x32xf32>
    %196 = math.log %195 : vector<128x32xf32>
    %197 = arith.select %192, %188, %196 : vector<128x32xi1>, vector<128x32xf32>
    %198 = arith.mulf %187, %197 : vector<128x32xf32>
    %cst_99 = arith.constant dense<0.000000e+00> : vector<16x32xf32>
    %199 = tpu.matmul %16, %198, %cst_99 {dimension_numbers = #tpu.dot_dimension_numbers<[1], [0], [0], [1], [0, 0, 1, 1], [], []>} : vector<16x128xf32>, vector<128x32xf32>, vector<16x32xf32> -> vector<16x32xf32>
    %c1_100 = arith.constant 1 : index
    %c0_101 = arith.constant 0 : index
    %c0_102 = arith.constant 0 : index
    %200 = vector.load %arg15[%c1_100, %c0_101, %c0_102] : memref<3x1x32xf32, #tpu.memory_space<vmem>>, vector<1x1x32xf32>
    %201 = vector.shape_cast %200 : vector<1x1x32xf32> to vector<1x32xf32>
    %c1_103 = arith.constant 1 : index
    %c0_104 = arith.constant 0 : index
    %c0_105 = arith.constant 0 : index
    %202 = vector.load %arg16[%c1_103, %c0_104, %c0_105] : memref<3x1x32xf32, #tpu.memory_space<vmem>>, vector<1x1x32xf32>
    %203 = vector.shape_cast %202 : vector<1x1x32xf32> to vector<1x32xf32>
    %cst_106 = arith.constant dense<0.000000e+00> : vector<32xf32>
    %204 = vector.multi_reduction <add>, %199, %cst_106 [0] : vector<16x32xf32> to vector<32xf32>
    %205 = vector.shape_cast %204 : vector<32xf32> to vector<1x32xf32>
    %cst_107 = arith.constant 1.600000e+01 : f32
    %206 = vector.broadcast %cst_107 : f32 to vector<1x32xf32>
    %207 = arith.divf %205, %206 : vector<1x32xf32>
    %208 = vector.broadcast %207 : vector<1x32xf32> to vector<16x32xf32>
    %209 = arith.subf %199, %208 : vector<16x32xf32>
    %210 = arith.mulf %209, %209 : vector<16x32xf32>
    %cst_108 = arith.constant dense<0.000000e+00> : vector<32xf32>
    %211 = vector.multi_reduction <add>, %210, %cst_108 [0] : vector<16x32xf32> to vector<32xf32>
    %212 = vector.shape_cast %211 : vector<32xf32> to vector<1x32xf32>
    %cst_109 = arith.constant 1.600000e+01 : f32
    %213 = vector.broadcast %cst_109 : f32 to vector<1x32xf32>
    %214 = arith.divf %212, %213 : vector<1x32xf32>
    %215 = vector.broadcast %207 : vector<1x32xf32> to vector<16x32xf32>
    %216 = arith.subf %199, %215 : vector<16x32xf32>
    %cst_110 = arith.constant 9.99999974E-6 : f32
    %217 = vector.broadcast %cst_110 : f32 to vector<1x32xf32>
    %218 = arith.addf %214, %217 : vector<1x32xf32>
    %219 = math.rsqrt %218 : vector<1x32xf32>
    %220 = vector.broadcast %219 : vector<1x32xf32> to vector<16x32xf32>
    %221 = arith.mulf %216, %220 : vector<16x32xf32>
    %222 = vector.broadcast %201 : vector<1x32xf32> to vector<16x32xf32>
    %223 = arith.mulf %221, %222 : vector<16x32xf32>
    %224 = vector.broadcast %203 : vector<1x32xf32> to vector<16x32xf32>
    %225 = arith.addf %223, %224 : vector<16x32xf32>
    %226 = arith.addf %129, %225 : vector<16x32xf32>
    %cst_111 = arith.constant 2.000000e+01 : f32
    %227 = vector.broadcast %cst_111 : f32 to vector<16x32xf32>
    %228 = arith.minimumf %226, %227 : vector<16x32xf32>
    %cst_112 = arith.constant 2.000000e+01 : f32
    %229 = vector.broadcast %cst_112 : f32 to vector<16x32xf32>
    %230 = arith.cmpf ogt, %226, %229 : vector<16x32xf32>
    %231 = math.exp %228 : vector<16x32xf32>
    %cst_113 = arith.constant 1.000000e+00 : f32
    %232 = vector.broadcast %cst_113 : f32 to vector<16x32xf32>
    %233 = arith.addf %232, %231 : vector<16x32xf32>
    %234 = math.log %233 : vector<16x32xf32>
    %235 = arith.select %230, %226, %234 : vector<16x32xi1>, vector<16x32xf32>
    %c2 = arith.constant 2 : index
    %c0_114 = arith.constant 0 : index
    %c0_115 = arith.constant 0 : index
    %236 = vector.load %arg9[%c2, %c0_114, %c0_115] : memref<3x32x64xf32, #tpu.memory_space<vmem>>, vector<1x32x64xf32>
    %237 = vector.shape_cast %236 : vector<1x32x64xf32> to vector<32x64xf32>
    %cst_116 = arith.constant dense<0.000000e+00> : vector<16x64xf32>
    %238 = tpu.matmul %235, %237, %cst_116 {dimension_numbers = #tpu.dot_dimension_numbers<[1], [0], [0], [1], [0, 0, 1, 1], [], []>} : vector<16x32xf32>, vector<32x64xf32>, vector<16x64xf32> -> vector<16x64xf32>
    %c2_117 = arith.constant 2 : index
    %c0_118 = arith.constant 0 : index
    %c0_119 = arith.constant 0 : index
    %239 = vector.load %arg10[%c2_117, %c0_118, %c0_119] : memref<3x32x64xf32, #tpu.memory_space<vmem>>, vector<1x32x64xf32>
    %240 = vector.shape_cast %239 : vector<1x32x64xf32> to vector<32x64xf32>
    %cst_120 = arith.constant dense<0.000000e+00> : vector<16x64xf32>
    %241 = tpu.matmul %235, %240, %cst_120 {dimension_numbers = #tpu.dot_dimension_numbers<[1], [0], [0], [1], [0, 0, 1, 1], [], []>} : vector<16x32xf32>, vector<32x64xf32>, vector<16x64xf32> -> vector<16x64xf32>
    %cst_121 = arith.constant dense<0.000000e+00> : vector<128x64xf32>
    %242 = tpu.matmul %10, %238, %cst_121 {dimension_numbers = #tpu.dot_dimension_numbers<[1], [0], [0], [1], [0, 0, 1, 1], [], []>} : vector<128x16xf32>, vector<16x64xf32>, vector<128x64xf32> -> vector<128x64xf32>
    %cst_122 = arith.constant dense<0.000000e+00> : vector<128x64xf32>
    %243 = tpu.matmul %5, %241, %cst_122 {dimension_numbers = #tpu.dot_dimension_numbers<[1], [0], [0], [1], [0, 0, 1, 1], [], []>} : vector<128x16xf32>, vector<16x64xf32>, vector<128x64xf32> -> vector<128x64xf32>
    %244 = arith.addf %242, %243 : vector<128x64xf32>
    %c2_123 = arith.constant 2 : index
    %c0_124 = arith.constant 0 : index
    %c0_125 = arith.constant 0 : index
    %245 = vector.load %arg11[%c2_123, %c0_124, %c0_125] : memref<3x16x64xf32, #tpu.memory_space<vmem>>, vector<1x16x64xf32>
    %246 = vector.shape_cast %245 : vector<1x16x64xf32> to vector<16x64xf32>
    %cst_126 = arith.constant dense<0.000000e+00> : vector<128x64xf32>
    %247 = tpu.matmul %17, %246, %cst_126 {dimension_numbers = #tpu.dot_dimension_numbers<[1], [0], [0], [1], [0, 0, 1, 1], [], []>} : vector<128x16xf32>, vector<16x64xf32>, vector<128x64xf32> -> vector<128x64xf32>
    %248 = arith.addf %244, %247 : vector<128x64xf32>
    %c2_127 = arith.constant 2 : index
    %c0_128 = arith.constant 0 : index
    %c0_129 = arith.constant 0 : index
    %249 = vector.load %arg12[%c2_127, %c0_128, %c0_129] : memref<3x1x64xf32, #tpu.memory_space<vmem>>, vector<1x1x64xf32>
    %250 = vector.shape_cast %249 : vector<1x1x64xf32> to vector<1x64xf32>
    %251 = vector.broadcast %250 : vector<1x64xf32> to vector<128x64xf32>
    %252 = arith.addf %248, %251 : vector<128x64xf32>
    %c2_130 = arith.constant 2 : index
    %c0_131 = arith.constant 0 : index
    %c0_132 = arith.constant 0 : index
    %253 = vector.load %arg13[%c2_130, %c0_131, %c0_132] : memref<3x1x64xf32, #tpu.memory_space<vmem>>, vector<1x1x64xf32>
    %254 = vector.shape_cast %253 : vector<1x1x64xf32> to vector<1x64xf32>
    %c2_133 = arith.constant 2 : index
    %c0_134 = arith.constant 0 : index
    %c0_135 = arith.constant 0 : index
    %255 = vector.load %arg14[%c2_133, %c0_134, %c0_135] : memref<3x1x64xf32, #tpu.memory_space<vmem>>, vector<1x1x64xf32>
    %256 = vector.shape_cast %255 : vector<1x1x64xf32> to vector<1x64xf32>
    %cst_136 = arith.constant dense<0.000000e+00> : vector<64xf32>
    %257 = vector.multi_reduction <add>, %252, %cst_136 [0] : vector<128x64xf32> to vector<64xf32>
    %258 = vector.shape_cast %257 : vector<64xf32> to vector<1x64xf32>
    %cst_137 = arith.constant 1.280000e+02 : f32
    %259 = vector.broadcast %cst_137 : f32 to vector<1x64xf32>
    %260 = arith.divf %258, %259 : vector<1x64xf32>
    %261 = vector.broadcast %260 : vector<1x64xf32> to vector<128x64xf32>
    %262 = arith.subf %252, %261 : vector<128x64xf32>
    %263 = arith.mulf %262, %262 : vector<128x64xf32>
    %cst_138 = arith.constant dense<0.000000e+00> : vector<64xf32>
    %264 = vector.multi_reduction <add>, %263, %cst_138 [0] : vector<128x64xf32> to vector<64xf32>
    %265 = vector.shape_cast %264 : vector<64xf32> to vector<1x64xf32>
    %cst_139 = arith.constant 1.280000e+02 : f32
    %266 = vector.broadcast %cst_139 : f32 to vector<1x64xf32>
    %267 = arith.divf %265, %266 : vector<1x64xf32>
    %268 = vector.broadcast %260 : vector<1x64xf32> to vector<128x64xf32>
    %269 = arith.subf %252, %268 : vector<128x64xf32>
    %cst_140 = arith.constant 9.99999974E-6 : f32
    %270 = vector.broadcast %cst_140 : f32 to vector<1x64xf32>
    %271 = arith.addf %267, %270 : vector<1x64xf32>
    %272 = math.rsqrt %271 : vector<1x64xf32>
    %273 = vector.broadcast %272 : vector<1x64xf32> to vector<128x64xf32>
    %274 = arith.mulf %269, %273 : vector<128x64xf32>
    %275 = vector.broadcast %254 : vector<1x64xf32> to vector<128x64xf32>
    %276 = arith.mulf %274, %275 : vector<128x64xf32>
    %277 = vector.broadcast %256 : vector<1x64xf32> to vector<128x64xf32>
    %278 = arith.addf %276, %277 : vector<128x64xf32>
    %279 = vector.extract_strided_slice %278 {offsets = [0, 0], sizes = [128, 32], strides = [1, 1]} : vector<128x64xf32> to vector<128x32xf32>
    %280 = math.absf %279 : vector<128x32xf32>
    %cst_141 = arith.constant 0.000000e+00 : f32
    %281 = vector.broadcast %cst_141 : f32 to vector<128x32xf32>
    %282 = arith.subf %281, %280 : vector<128x32xf32>
    %283 = math.exp %282 : vector<128x32xf32>
    %cst_142 = arith.constant 0.000000e+00 : f32
    %284 = vector.broadcast %cst_142 : f32 to vector<128x32xf32>
    %285 = arith.cmpf oge, %279, %284 : vector<128x32xf32>
    %cst_143 = arith.constant 1.000000e+00 : f32
    %286 = vector.broadcast %cst_143 : f32 to vector<128x32xf32>
    %287 = arith.addf %286, %283 : vector<128x32xf32>
    %cst_144 = arith.constant 1.000000e+00 : f32
    %288 = vector.broadcast %cst_144 : f32 to vector<128x32xf32>
    %289 = arith.divf %288, %287 : vector<128x32xf32>
    %cst_145 = arith.constant 1.000000e+00 : f32
    %290 = vector.broadcast %cst_145 : f32 to vector<128x32xf32>
    %291 = arith.addf %290, %283 : vector<128x32xf32>
    %292 = arith.divf %283, %291 : vector<128x32xf32>
    %293 = arith.select %285, %289, %292 : vector<128x32xi1>, vector<128x32xf32>
    %294 = vector.extract_strided_slice %278 {offsets = [0, 32], sizes = [128, 32], strides = [1, 1]} : vector<128x64xf32> to vector<128x32xf32>
    %cst_146 = arith.constant 2.000000e+01 : f32
    %295 = vector.broadcast %cst_146 : f32 to vector<128x32xf32>
    %296 = arith.minimumf %294, %295 : vector<128x32xf32>
    %cst_147 = arith.constant 2.000000e+01 : f32
    %297 = vector.broadcast %cst_147 : f32 to vector<128x32xf32>
    %298 = arith.cmpf ogt, %294, %297 : vector<128x32xf32>
    %299 = math.exp %296 : vector<128x32xf32>
    %cst_148 = arith.constant 1.000000e+00 : f32
    %300 = vector.broadcast %cst_148 : f32 to vector<128x32xf32>
    %301 = arith.addf %300, %299 : vector<128x32xf32>
    %302 = math.log %301 : vector<128x32xf32>
    %303 = arith.select %298, %294, %302 : vector<128x32xi1>, vector<128x32xf32>
    %304 = arith.mulf %293, %303 : vector<128x32xf32>
    %cst_149 = arith.constant dense<0.000000e+00> : vector<16x32xf32>
    %305 = tpu.matmul %16, %304, %cst_149 {dimension_numbers = #tpu.dot_dimension_numbers<[1], [0], [0], [1], [0, 0, 1, 1], [], []>} : vector<16x128xf32>, vector<128x32xf32>, vector<16x32xf32> -> vector<16x32xf32>
    %c2_150 = arith.constant 2 : index
    %c0_151 = arith.constant 0 : index
    %c0_152 = arith.constant 0 : index
    %306 = vector.load %arg15[%c2_150, %c0_151, %c0_152] : memref<3x1x32xf32, #tpu.memory_space<vmem>>, vector<1x1x32xf32>
    %307 = vector.shape_cast %306 : vector<1x1x32xf32> to vector<1x32xf32>
    %c2_153 = arith.constant 2 : index
    %c0_154 = arith.constant 0 : index
    %c0_155 = arith.constant 0 : index
    %308 = vector.load %arg16[%c2_153, %c0_154, %c0_155] : memref<3x1x32xf32, #tpu.memory_space<vmem>>, vector<1x1x32xf32>
    %309 = vector.shape_cast %308 : vector<1x1x32xf32> to vector<1x32xf32>
    %cst_156 = arith.constant dense<0.000000e+00> : vector<32xf32>
    %310 = vector.multi_reduction <add>, %305, %cst_156 [0] : vector<16x32xf32> to vector<32xf32>
    %311 = vector.shape_cast %310 : vector<32xf32> to vector<1x32xf32>
    %cst_157 = arith.constant 1.600000e+01 : f32
    %312 = vector.broadcast %cst_157 : f32 to vector<1x32xf32>
    %313 = arith.divf %311, %312 : vector<1x32xf32>
    %314 = vector.broadcast %313 : vector<1x32xf32> to vector<16x32xf32>
    %315 = arith.subf %305, %314 : vector<16x32xf32>
    %316 = arith.mulf %315, %315 : vector<16x32xf32>
    %cst_158 = arith.constant dense<0.000000e+00> : vector<32xf32>
    %317 = vector.multi_reduction <add>, %316, %cst_158 [0] : vector<16x32xf32> to vector<32xf32>
    %318 = vector.shape_cast %317 : vector<32xf32> to vector<1x32xf32>
    %cst_159 = arith.constant 1.600000e+01 : f32
    %319 = vector.broadcast %cst_159 : f32 to vector<1x32xf32>
    %320 = arith.divf %318, %319 : vector<1x32xf32>
    %321 = vector.broadcast %313 : vector<1x32xf32> to vector<16x32xf32>
    %322 = arith.subf %305, %321 : vector<16x32xf32>
    %cst_160 = arith.constant 9.99999974E-6 : f32
    %323 = vector.broadcast %cst_160 : f32 to vector<1x32xf32>
    %324 = arith.addf %320, %323 : vector<1x32xf32>
    %325 = math.rsqrt %324 : vector<1x32xf32>
    %326 = vector.broadcast %325 : vector<1x32xf32> to vector<16x32xf32>
    %327 = arith.mulf %322, %326 : vector<16x32xf32>
    %328 = vector.broadcast %307 : vector<1x32xf32> to vector<16x32xf32>
    %329 = arith.mulf %327, %328 : vector<16x32xf32>
    %330 = vector.broadcast %309 : vector<1x32xf32> to vector<16x32xf32>
    %331 = arith.addf %329, %330 : vector<16x32xf32>
    %332 = arith.addf %235, %331 : vector<16x32xf32>
    %cst_161 = arith.constant 2.000000e+01 : f32
    %333 = vector.broadcast %cst_161 : f32 to vector<16x32xf32>
    %334 = arith.minimumf %332, %333 : vector<16x32xf32>
    %cst_162 = arith.constant 2.000000e+01 : f32
    %335 = vector.broadcast %cst_162 : f32 to vector<16x32xf32>
    %336 = arith.cmpf ogt, %332, %335 : vector<16x32xf32>
    %337 = math.exp %334 : vector<16x32xf32>
    %cst_163 = arith.constant 1.000000e+00 : f32
    %338 = vector.broadcast %cst_163 : f32 to vector<16x32xf32>
    %339 = arith.addf %338, %337 : vector<16x32xf32>
    %340 = math.log %339 : vector<16x32xf32>
    %341 = arith.select %336, %332, %340 : vector<16x32xi1>, vector<16x32xf32>
    %c0_164 = arith.constant 0 : index
    %c0_165 = arith.constant 0 : index
    %342 = vector.load %arg6[%c0_164, %c0_165] : memref<2x16xf32, #tpu.memory_space<vmem>>, vector<2x16xf32>
    %cst_166 = arith.constant dense<0.000000e+00> : vector<2x32xf32>
    %343 = tpu.matmul %342, %341, %cst_166 {dimension_numbers = #tpu.dot_dimension_numbers<[1], [0], [0], [1], [0, 0, 1, 1], [], []>} : vector<2x16xf32>, vector<16x32xf32>, vector<2x32xf32> -> vector<2x32xf32>
    %cst_167 = arith.constant 2.000000e+01 : f32
    %344 = vector.broadcast %cst_167 : f32 to vector<2x32xf32>
    %345 = arith.minimumf %343, %344 : vector<2x32xf32>
    %cst_168 = arith.constant 2.000000e+01 : f32
    %346 = vector.broadcast %cst_168 : f32 to vector<2x32xf32>
    %347 = arith.cmpf ogt, %343, %346 : vector<2x32xf32>
    %348 = math.exp %345 : vector<2x32xf32>
    %cst_169 = arith.constant 1.000000e+00 : f32
    %349 = vector.broadcast %cst_169 : f32 to vector<2x32xf32>
    %350 = arith.addf %349, %348 : vector<2x32xf32>
    %351 = math.log %350 : vector<2x32xf32>
    %352 = arith.select %347, %343, %351 : vector<2x32xi1>, vector<2x32xf32>
    %c0_170 = arith.constant 0 : index
    %c0_171 = arith.constant 0 : index
    %353 = vector.load %arg17[%c0_170, %c0_171] : memref<32x64xf32, #tpu.memory_space<vmem>>, vector<32x64xf32>
    %cst_172 = arith.constant dense<0.000000e+00> : vector<2x64xf32>
    %354 = tpu.matmul %352, %353, %cst_172 {dimension_numbers = #tpu.dot_dimension_numbers<[1], [0], [0], [1], [0, 0, 1, 1], [], []>} : vector<2x32xf32>, vector<32x64xf32>, vector<2x64xf32> -> vector<2x64xf32>
    %c0_173 = arith.constant 0 : index
    %c0_174 = arith.constant 0 : index
    %355 = vector.load %arg18[%c0_173, %c0_174] : memref<1x64xf32, #tpu.memory_space<vmem>>, vector<1x64xf32>
    %356 = vector.broadcast %355 : vector<1x64xf32> to vector<2x64xf32>
    %357 = arith.addf %354, %356 : vector<2x64xf32>
    %cst_175 = arith.constant 2.000000e+01 : f32
    %358 = vector.broadcast %cst_175 : f32 to vector<2x64xf32>
    %359 = arith.minimumf %357, %358 : vector<2x64xf32>
    %cst_176 = arith.constant 2.000000e+01 : f32
    %360 = vector.broadcast %cst_176 : f32 to vector<2x64xf32>
    %361 = arith.cmpf ogt, %357, %360 : vector<2x64xf32>
    %362 = math.exp %359 : vector<2x64xf32>
    %cst_177 = arith.constant 1.000000e+00 : f32
    %363 = vector.broadcast %cst_177 : f32 to vector<2x64xf32>
    %364 = arith.addf %363, %362 : vector<2x64xf32>
    %365 = math.log %364 : vector<2x64xf32>
    %366 = arith.select %361, %357, %365 : vector<2x64xi1>, vector<2x64xf32>
    %c0_178 = arith.constant 0 : index
    %c0_179 = arith.constant 0 : index
    %367 = vector.load %arg19[%c0_178, %c0_179] : memref<64x1xf32, #tpu.memory_space<vmem>>, vector<64x1xf32>
    %cst_180 = arith.constant dense<0.000000e+00> : vector<2x1xf32>
    %368 = tpu.matmul %366, %367, %cst_180 {dimension_numbers = #tpu.dot_dimension_numbers<[1], [0], [0], [1], [0, 0, 1, 1], [], []>} : vector<2x64xf32>, vector<64x1xf32>, vector<2x1xf32> -> vector<2x1xf32>
    %c0_181 = arith.constant 0 : index
    %c0_182 = arith.constant 0 : index
    %369 = vector.load %arg20[%c0_181, %c0_182] : memref<1x1xf32, #tpu.memory_space<vmem>>, vector<1x1xf32>
    %370 = vector.broadcast %369 : vector<1x1xf32> to vector<2x1xf32>
    %371 = arith.addf %368, %370 : vector<2x1xf32>
    %c0_183 = arith.constant 0 : index
    %c0_184 = arith.constant 0 : index
    %372 = vector.load %arg21[%c0_183, %c0_184] : memref<2x1xf32, #tpu.memory_space<vmem>>, vector<2x1xf32>
    tpu.vector_store %arg21[%c0_183, %c0_184], %371 {strides = array<i32>} : memref<2x1xf32, #tpu.memory_space<vmem>>, vector<2x1xf32>,
    return
  }
  func.func @transform_0(%arg0: i32) -> (i32, i32) {
    %c0_i32 = arith.constant 0 : i32
    %c0_i32_0 = arith.constant 0 : i32
    %c0_i32_1 = arith.constant 0 : i32
    return %c0_i32, %c0_i32_0 : i32, i32
  }
  func.func @transform_1(%arg0: i32) -> (i32, i32) {
    %c0_i32 = arith.constant 0 : i32
    %c0_i32_0 = arith.constant 0 : i32
    %c0_i32_1 = arith.constant 0 : i32
    return %c0_i32, %c0_i32_0 : i32, i32
  }
  func.func @transform_2(%arg0: i32) -> (i32, i32) {
    %c0_i32 = arith.constant 0 : i32
    %c0_i32_0 = arith.constant 0 : i32
    %c0_i32_1 = arith.constant 0 : i32
    return %c0_i32, %c0_i32_0 : i32, i32
  }
  func.func @transform_3(%arg0: i32) -> (i32, i32) {
    %c0_i32 = arith.constant 0 : i32
    %c0_i32_0 = arith.constant 0 : i32
    %c0_i32_1 = arith.constant 0 : i32
    return %c0_i32, %c0_i32_0 : i32, i32
  }
  func.func @transform_4(%arg0: i32) -> (i32, i32) {
    %c0_i32 = arith.constant 0 : i32
    %c0_i32_0 = arith.constant 0 : i32
    %c0_i32_1 = arith.constant 0 : i32
    return %c0_i32, %c0_i32_0 : i32, i32
  }
  func.func @transform_5(%arg0: i32) -> (i32, i32) {
    %c0_i32 = arith.constant 0 : i32
    %c0_i32_0 = arith.constant 0 : i32
    %c0_i32_1 = arith.constant 0 : i32
    return %c0_i32, %c0_i32_0 : i32, i32
  }
  func.func @transform_6(%arg0: i32) -> (i32, i32) {
    %c0_i32 = arith.constant 0 : i32
    %c0_i32_0 = arith.constant 0 : i32
    %c0_i32_1 = arith.constant 0 : i32
    return %c0_i32, %c0_i32_0 : i32, i32
  }
  func.func @transform_7(%arg0: i32) -> (i32, i32) {
    %c0_i32 = arith.constant 0 : i32
    %c0_i32_0 = arith.constant 0 : i32
    %c0_i32_1 = arith.constant 0 : i32
    return %c0_i32, %c0_i32_0 : i32, i32
  }
  func.func @transform_8(%arg0: i32) -> (i32, i32, i32) {
    %c0_i32 = arith.constant 0 : i32
    %c0_i32_0 = arith.constant 0 : i32
    %c0_i32_1 = arith.constant 0 : i32
    %c0_i32_2 = arith.constant 0 : i32
    return %c0_i32, %c0_i32_0, %c0_i32_1 : i32, i32, i32
  }
  func.func @transform_9(%arg0: i32) -> (i32, i32, i32) {
    %c0_i32 = arith.constant 0 : i32
    %c0_i32_0 = arith.constant 0 : i32
    %c0_i32_1 = arith.constant 0 : i32
    %c0_i32_2 = arith.constant 0 : i32
    return %c0_i32, %c0_i32_0, %c0_i32_1 : i32, i32, i32
  }
  func.func @transform_10(%arg0: i32) -> (i32, i32, i32) {
    %c0_i32 = arith.constant 0 : i32
    %c0_i32_0 = arith.constant 0 : i32
    %c0_i32_1 = arith.constant 0 : i32
    %c0_i32_2 = arith.constant 0 : i32
    return %c0_i32, %c0_i32_0, %c0_i32_1 : i32, i32, i32
  }
  func.func @transform_11(%arg0: i32) -> (i32, i32, i32) {
    %c0_i32 = arith.constant 0 : i32
    %c0_i32_0 = arith.constant 0 : i32
    %c0_i32_1 = arith.constant 0 : i32
    %c0_i32_2 = arith.constant 0 : i32
    return %c0_i32, %c0_i32_0, %c0_i32_1 : i32, i32, i32
  }
  func.func @transform_12(%arg0: i32) -> (i32, i32, i32) {
    %c0_i32 = arith.constant 0 : i32
    %c0_i32_0 = arith.constant 0 : i32
    %c0_i32_1 = arith.constant 0 : i32
    %c0_i32_2 = arith.constant 0 : i32
    return %c0_i32, %c0_i32_0, %c0_i32_1 : i32, i32, i32
  }
  func.func @transform_13(%arg0: i32) -> (i32, i32, i32) {
    %c0_i32 = arith.constant 0 : i32
    %c0_i32_0 = arith.constant 0 : i32
    %c0_i32_1 = arith.constant 0 : i32
    %c0_i32_2 = arith.constant 0 : i32
    return %c0_i32, %c0_i32_0, %c0_i32_1 : i32, i32, i32
  }
  func.func @transform_14(%arg0: i32) -> (i32, i32, i32) {
    %c0_i32 = arith.constant 0 : i32
    %c0_i32_0 = arith.constant 0 : i32
    %c0_i32_1 = arith.constant 0 : i32
    %c0_i32_2 = arith.constant 0 : i32
    return %c0_i32, %c0_i32_0, %c0_i32_1 : i32, i32, i32
  }
  func.func @transform_15(%arg0: i32) -> (i32, i32, i32) {
    %c0_i32 = arith.constant 0 : i32
    %c0_i32_0 = arith.constant 0 : i32
    %c0_i32_1 = arith.constant 0 : i32
    %c0_i32_2 = arith.constant 0 : i32
    return %c0_i32, %c0_i32_0, %c0_i32_1 : i32, i32, i32
  }
  func.func @transform_16(%arg0: i32) -> (i32, i32) {
    %c0_i32 = arith.constant 0 : i32
    %c0_i32_0 = arith.constant 0 : i32
    %c0_i32_1 = arith.constant 0 : i32
    return %c0_i32, %c0_i32_0 : i32, i32
  }
  func.func @transform_17(%arg0: i32) -> (i32, i32) {
    %c0_i32 = arith.constant 0 : i32
    %c0_i32_0 = arith.constant 0 : i32
    %c0_i32_1 = arith.constant 0 : i32
    return %c0_i32, %c0_i32_0 : i32, i32
  }
  func.func @transform_18(%arg0: i32) -> (i32, i32) {
    %c0_i32 = arith.constant 0 : i32
    %c0_i32_0 = arith.constant 0 : i32
    %c0_i32_1 = arith.constant 0 : i32
    return %c0_i32, %c0_i32_0 : i32, i32
  }
  func.func @transform_19(%arg0: i32) -> (i32, i32) {
    %c0_i32 = arith.constant 0 : i32
    %c0_i32_0 = arith.constant 0 : i32
    %c0_i32_1 = arith.constant 0 : i32
    return %c0_i32, %c0_i32_0 : i32, i32
  }
  func.func @transform_20(%arg0: i32) -> (i32, i32) {
    %c0_i32 = arith.constant 0 : i32
    %c0_i32_0 = arith.constant 0 : i32
    %c0_i32_1 = arith.constant 0 : i32
    return %c0_i32, %c0_i32_0 : i32, i32
  }
}

</mosaic_0001>

<bundles_post_ra>
// kernel: crystal_graph_conv_net.1
= control target key start
LH: loop header
LB: loop body
LE: loop exit
PB: predicated region body
PF: predicated region fallthrough
CT: control target
= control target key end

     0   :  { %vm333_vm0 = vcmask 64512   ;;  %v6557_v15 = vmov 0   ;;  %vm419_vm1 = vcmask 261120   ;;  %v8750_v60 = vlaneseq  ;;  %s8723_s6 = inlined_call_operand.vmem [shape: f32[8,32], index: 6, kind: input, shape index: {}]   ;;  %s8724_s0 = inlined_call_operand.vmem [shape: f32[16,8], index: 0, kind: input, shape index: {}]   ;;  %s8725_s8 = inlined_call_operand.vmem [shape: f32[3,32,64], index: 8, kind: input, shape index: {}]   ;;  %s8726_s9 = inlined_call_operand.vmem [shape: f32[3,32,64], index: 9, kind: input, shape index: {}]   ;;  %s8727_s3 = inlined_call_operand.vmem [shape: s32[128,1], index: 3, kind: input, shape index: {}]   ;;  %s8728_s2 = inlined_call_operand.vmem [shape: s32[128,1], index: 2, kind: input, shape index: {}]   ;;  %s8729_s7 = inlined_call_operand.vmem [shape: f32[1,32], index: 7, kind: input, shape index: {}]   ;;  %s8730_s10 = inlined_call_operand.vmem [shape: f32[3,16,64], index: 10, kind: input, shape index: {}]   ;;  %s8731_s1 = inlined_call_operand.vmem [shape: f32[128,16], index: 1, kind: input, shape index: {}]   ;;  %s8732_s11 = inlined_call_operand.vmem [shape: f32[3,1,64], index: 11, kind: input, shape index: {}]   ;;  %s8733_s12 = inlined_call_operand.vmem [shape: f32[3,1,64], index: 12, kind: input, shape index: {}]   ;;  %s8734_s13 = inlined_call_operand.vmem [shape: f32[3,1,64], index: 13, kind: input, shape index: {}]   ;;  %s8735_s4 = inlined_call_operand.vmem [shape: s32[1,128], index: 4, kind: input, shape index: {}]   ;;  %s8736_s14 = inlined_call_operand.vmem [shape: f32[3,1,32], index: 14, kind: input, shape index: {}]   ;;  %s8737_s15 = inlined_call_operand.vmem [shape: f32[3,1,32], index: 15, kind: input, shape index: {}]   ;;  %s8738_s5 = inlined_call_operand.vmem [shape: f32[2,16], index: 5, kind: input, shape index: {}]   ;;  %s8739_s16 = inlined_call_operand.vmem [shape: f32[32,64], index: 16, kind: input, shape index: {}]   ;;  %s8740_s18 = inlined_call_operand.vmem [shape: f32[64,1], index: 18, kind: input, shape index: {}]   ;;  %s8741_s19 = inlined_call_operand.<no memory space> [shape: f32[1,1], index: 19, kind: input, shape index: {}]   ;;  %s8742_s17 = inlined_call_operand.vmem [shape: f32[1,64], index: 17, kind: input, shape index: {}]   ;;  %s8743_s20 = inlined_call_operand.vmem [shape: f32[2,1], index: 20, kind: output, shape index: {}]  }
   0x1   :  { %8789 = sst [smem:[#allocation22_spill]] %s8723_s6  ;;  %6095 = vset.pattern.permute.xlu0 %v6557_v15  ;;  %6096 = vset.pattern.permute.xlu1 %v6557_v15  ;;  %v69_v32 = vld [vmem:[%s8728_s2] sm:$0xff]  ;;  %v70_v33 = vld [vmem:[%s8728_s2 + $0x8] sm:$0xff]  ;;  %v71_v34 = vld [vmem:[%s8728_s2 + $0x10] sm:$0xff]  ;;  %vm580_vm4 = vcmask 130048   ;;  %s6559_s6 = smov 96  }
   0x2   :  { %8790 = sst [smem:[#allocation23_spill]] %s8724_s0  ;;  %s8794_s23 = sld [smem:[#allocation22_spill]]  ;;  %v72_v35 = vld [vmem:[%s8728_s2 + $0x18] sm:$0xff]  ;;  %v73_v36 = vld [vmem:[%s8728_s2 + $0x20] sm:$0xff]  ;;  %v74_v37 = vld [vmem:[%s8728_s2 + $0x28] sm:$0xff]  ;;  %v6825_v62 = vand.u32 127, %v8750_v60 }
   0x3   :  { %8791 = sst [smem:[#allocation24_spill]] %s8725_s8  ;;  %s8795_s25 = sld [smem:[#allocation23_spill]]  ;;  %v75_v38 = vld [vmem:[%s8728_s2 + $0x30] sm:$0xff]  ;;  %v76_v39 = vld [vmem:[%s8728_s2 + $0x38] sm:$0xff]  ;;  %v77_v40 = vld [vmem:[%s8728_s2 + $0x40] sm:$0xff] }
   0x4   :  { %8792 = sst [smem:[#allocation25_spill]] %s8726_s9  ;;  %v78_v41 = vld [vmem:[%s8728_s2 + $0x48] sm:$0xff]  ;;  %v79_v42 = vld [vmem:[%s8728_s2 + $0x50] sm:$0xff]  ;;  %v80_v43 = vld [vmem:[%s8728_s2 + $0x58] sm:$0xff] }
   0x5   :  { %8793 = sst [smem:[#allocation26_spill]] %s8727_s3  ;;  %s8796_s3 = sld [smem:[#allocation24_spill]]  ;;  %v81_v44 = vld [vmem:[%s8728_s2 + $0x60] sm:$0xff]  ;;  %v82_v45 = vld [vmem:[%s8728_s2 + $0x68] sm:$0xff]  ;;  %v83_v46 = vld [vmem:[%s8728_s2 + $0x70] sm:$0xff] }
   0x6   :  { %s8797_s0 = sld [smem:[#allocation25_spill]]  ;;  %s8798_s21 = sld [smem:[#allocation26_spill]]  ;;  %v84_v47 = vld [vmem:[%s8728_s2 + $0x78] sm:$0xff]  ;;  %v4840_v48 = vld [vmem:[%s8729_s7] ss:$0 sm:$0xff] }
   0x8   :  { %v325_v0 = vld [vmem:[%s8794_s23] sm:$0xff] }
   0x9   :  { %v323_v1 = vld [vmem:[%s8795_s25] sm:$0xff]  ;;  %v324_v2 = vld [vmem:[%s8795_s25 + $0x8] sm:$0xff]  ;;  %5327 = vmatprep.subr.mxu0 %v325_v0 }
   0xa   :  { %5329 = vmatprep.mubr.msk.f32.mxu0 %vm333_vm0, %v323_v1  ;;  %5328 = vmatpush3.msra.mxu0 %v325_v0  ;;  %v8748_v0 = vmov 0.0  }
   0xb   :  { %v415_v3 = vld [vmem:[%s8796_s3] sm:$0xff]  ;;  %v416_v4 = vld [vmem:[%s8796_s3 + $0x8] sm:$0xff]  ;;  %5330 = vmatmul.mubr.msk.f32.vlgmr.msra.gmra.mrb[0].mxu0 %vm333_vm0, %v324_v2  ;;  %v417_v9 = vld [vmem:[%s8796_s3 + $0x10] sm:$0xff] }
   0xc   :  { %v501_v5 = vld [vmem:[%s8797_s0] sm:$0xff]  ;;  %v5792_v6 = vpack.c.bf16 %v416_v4, %v415_v3  ;;  %v502_v7 = vld [vmem:[%s8797_s0 + $0x8] sm:$0xff]  ;;  %v418_v10 = vld [vmem:[%s8796_s3 + $0x18] sm:$0xff] }
   0xd   :  { %v5800_v8 = vpack.c.bf16 %v502_v7, %v501_v5  ;;  %v503_v11 = vld [vmem:[%s8797_s0 + $0x10] sm:$0xff]  ;;  %v5796_v12 = vpack.c.bf16 %v418_v10, %v417_v9  ;;  %v504_v13 = vld [vmem:[%s8797_s0 + $0x18] sm:$0xff]  ;;  %v181_v16 = vld [vmem:[%s8798_s21] sm:$0xff] }
   0xe   :  { %5793 = vmatprep.subr.bf16.mxu1 %v5792_v6  ;;  %v5804_v14 = vpack.c.bf16 %v504_v13, %v503_v11  ;;  %v183_v17 = vld [vmem:[%s8798_s21 + $0x10] sm:$0xff]  ;;  %198 = vperm.xlu0 %6095, %v181_v16   ;;  %v182_v18 = vld [vmem:[%s8798_s21 + $0x8] sm:$0xff]  ;;  %v184_v19 = vld [vmem:[%s8798_s21 + $0x18] sm:$0xff] }
   0xf   :  { %5801 = vmatprep.subr.bf16.mxu0 %v5800_v8  ;;  %5795 = vmatpush3.bf16.msra.mxu1 %v5792_v6  ;;  %v185_v20 = vld [vmem:[%s8798_s21 + $0x20] sm:$0xff]  ;;  %v186_v21 = vld [vmem:[%s8798_s21 + $0x28] sm:$0xff]  ;;  %v187_v22 = vld [vmem:[%s8798_s21 + $0x30] sm:$0xff] }
  0x10   :  { %5803 = vmatpush3.bf16.msra.mxu0 %v5800_v8  ;;  %5797 = vmatprep.subr.bf16.mxu1 %v5796_v12  ;;  %v188_v23 = vld [vmem:[%s8798_s21 + $0x38] sm:$0xff]  ;;  %v189_v24 = vld [vmem:[%s8798_s21 + $0x40] sm:$0xff]  ;;  %v190_v25 = vld [vmem:[%s8798_s21 + $0x48] sm:$0xff] }
  0x11   :  { %5805 = vmatprep.subr.bf16.mxu0 %v5804_v14  ;;  %204 = vperm.xlu1 %6096, %v183_v17   ;;  %v191_v26 = vld [vmem:[%s8798_s21 + $0x50] sm:$0xff]  ;;  %v192_v27 = vld [vmem:[%s8798_s21 + $0x58] sm:$0xff]  ;;  %v193_v28 = vld [vmem:[%s8798_s21 + $0x60] sm:$0xff] }
  0x12   :  { %201 = vperm.xlu0 %6095, %v182_v18   ;;  %v194_v29 = vld [vmem:[%s8798_s21 + $0x68] sm:$0xff]  ;;  %v195_v30 = vld [vmem:[%s8798_s21 + $0x70] sm:$0xff]  ;;  %v196_v31 = vld [vmem:[%s8798_s21 + $0x78] sm:$0xff] }
  0x13   :  { %5799 = vmatpush3.bf16.msra.mxu1 %v5796_v12  ;;  %v967_v16 = vld [vmem:[%s8730_s10] sm:$0xff]  ;;  %v968_v17 = vld [vmem:[%s8730_s10 + $0x8] sm:$0xff] }
  0x14   :  { %5807 = vmatpush3.bf16.msra.mxu0 %v5804_v14 }
  0x15   :  { %207 = vperm.xlu1 %6096, %v184_v19  }
  0x16   :  { %210 = vperm.xlu0 %6095, %v185_v20  }
  0x19   :  { %213 = vperm.xlu1 %6096, %v186_v21  }
  0x1a   :  { %216 = vperm.xlu0 %6095, %v187_v22  }
  0x1d   :  { %219 = vperm.xlu1 %6096, %v188_v23  }
  0x1e   :  { %222 = vperm.xlu0 %6095, %v189_v24  }
  0x21   :  { %225 = vperm.xlu1 %6096, %v190_v25   ;;  %v5816_v25 = vpack.c.bf16 %v968_v17, %v967_v16  ;;  %v316_v16 = vld [vmem:[%s8731_s1 + $0x48] sm:$0xff]  ;;  %v317_v17 = vld [vmem:[%s8731_s1 + $0x50] sm:$0xff] }
  0x22   :  { %228 = vperm.xlu0 %6095, %v191_v26  }
  0x25   :  { %231 = vperm.xlu1 %6096, %v192_v27  }
  0x26   :  { %234 = vperm.xlu0 %6095, %v193_v28  }
  0x29   :  { %237 = vperm.xlu1 %6096, %v194_v29  }
  0x2a   :  { %240 = vperm.xlu0 %6095, %v195_v30  }
  0x2d   :  { %243 = vperm.xlu1 %6096, %v196_v31  }
  0x2e   :  { %86 = vperm.xlu0 %6095, %v69_v32  }
  0x31   :  { %89 = vperm.xlu1 %6096, %v70_v33  }
  0x32   :  { %92 = vperm.xlu0 %6095, %v71_v34  }
  0x35   :  { %95 = vperm.xlu1 %6096, %v72_v35  }
  0x36   :  { %98 = vperm.xlu0 %6095, %v73_v36  }
  0x39   :  { %101 = vperm.xlu1 %6096, %v74_v37  }
  0x3a   :  { %104 = vperm.xlu0 %6095, %v75_v38  }
  0x3d   :  { %107 = vperm.xlu1 %6096, %v76_v39  }
  0x3e   :  { %110 = vperm.xlu0 %6095, %v77_v40  }
  0x41   :  { %113 = vperm.xlu1 %6096, %v78_v41  }
  0x42   :  { %116 = vperm.xlu0 %6095, %v79_v42  }
  0x45   :  { %119 = vperm.xlu1 %6096, %v80_v43  }
  0x46   :  { %122 = vperm.xlu0 %6095, %v81_v44  }
  0x49   :  { %125 = vperm.xlu1 %6096, %v82_v45  }
  0x4a   :  { %128 = vperm.xlu0 %6095, %v83_v46  }
  0x4d   :  { %131 = vperm.xlu1 %6096, %v84_v47  }
  0x8d   :  { %v199_v53 = vpop.permute.xlu0 %198 }
  0x8e   :  { %vm245_vm2 = vcmp.eq.s32.totalorder %v199_v53, %v6825_v62 }
  0x8f   :  { %v6830_v1 = vsel %vm245_vm2, 1.0, %v8748_v0 }
  0x90   :  { %8799 = vst [vmem:[#allocation3_spill] sm:$0xff] %v6830_v1  ;;  %v205_v3 = vpop.permute.xlu1 %204 }
  0x91   :  { %v202_v54 = vpop.permute.xlu0 %201  ;;  %vm247_vm6 = vcmp.eq.s32.totalorder %v205_v3, %v6825_v62 }
  0x92   :  { %vm246_vm7 = vcmp.eq.s32.totalorder %v202_v54, %v6825_v62  ;;  %v6863_v28 = vsel %vm247_vm6, 1.0, %v8748_v0 }
  0x93   :  { %8800 = vst [vmem:[#allocation4_spill] sm:$0xff] %v6863_v28  ;;  %v6866_v29 = vsel %vm246_vm7, 1.0, %v8748_v0 }
  0x94   :  { %v208_v4 = vpop.permute.xlu1 %207  ;;  %8801 = vst [vmem:[#allocation5_spill] sm:$0xff] %v6866_v29 }
  0x95   :  { %v6812_v55 = vpop.permute.xlu0 %210  ;;  %vm248_vm9 = vcmp.eq.s32.totalorder %v208_v4, %v6825_v62 }
  0x96   :  { %vm249_vm11 = vcmp.eq.s32.totalorder %v6812_v55, %v6825_v62  ;;  %v6885_v32 = vsel %vm248_vm9, 1.0, %v8748_v0 }
  0x97   :  { %8802 = vst [vmem:[#allocation6_spill] sm:$0xff] %v6885_v32  ;;  %v6891_v35 = vsel %vm249_vm11, 1.0, %v8748_v0 }
  0x98   :  { %v214_v5 = vpop.permute.xlu1 %213  ;;  %8803 = vst [vmem:[#allocation7_spill] sm:$0xff] %v6891_v35 }
  0x99   :  { %v6814_v56 = vpop.permute.xlu0 %216  ;;  %vm250_vm13 = vcmp.eq.s32.totalorder %v214_v5, %v6825_v62 }
  0x9a   :  { %vm251_vm15 = vcmp.eq.s32.totalorder %v6814_v56, %v6825_v62  ;;  %v6910_v38 = vsel %vm250_vm13, 1.0, %v8748_v0 }
  0x9b   :  { %8804 = vst [vmem:[#allocation8_spill] sm:$0xff] %v6910_v38  ;;  %v6916_v40 = vsel %vm251_vm15, 1.0, %v8748_v0 }
  0x9c   :  { %v6839_v6 = vpop.permute.xlu1 %219  ;;  %8805 = vst [vmem:[#allocation9_spill] sm:$0xff] %v6916_v40 }
  0x9d   :  { %v6816_v57 = vpop.permute.xlu0 %222  ;;  %vm252_vm2 = vcmp.eq.s32.totalorder %v6839_v6, %v6825_v62  ;;  %v307_v6 = vld [vmem:[%s8731_s1] sm:$0xff] }
  0x9e   :  { %v6936_v43 = vsel %vm252_vm2, 1.0, %v8748_v0 }
  0x9f   :  { %8806 = vst [vmem:[#allocation10_spill] sm:$0xff] %v6936_v43 }
  0xa0   :  { %v6841_v7 = vpop.permute.xlu1 %225 }
  0xa1   :  { %v6818_v58 = vpop.permute.xlu0 %228  ;;  %vm254_vm7 = vcmp.eq.s32.totalorder %v6841_v7, %v6825_v62 }
  0xa2   :  { %vm255_vm9 = vcmp.eq.s32.totalorder %v6818_v58, %v6825_v62 }
  0xa3   :  { %v6968_v53 = vsel %vm255_vm9, 1.0, %v8748_v0 }
  0xa4   :  { %v6843_v8 = vpop.permute.xlu1 %231  ;;  %8809 = vst [vmem:[#allocation13_spill] sm:$0xff] %v6968_v53 }
  0xa5   :  { %v6820_v59 = vpop.permute.xlu0 %234  ;;  %vm256_vm11 = vcmp.eq.s32.totalorder %v6843_v8, %v6825_v62  ;;  %v308_v8 = vld [vmem:[%s8731_s1 + $0x8] sm:$0xff] }
  0xa6   :  { %vm257_vm13 = vcmp.eq.s32.totalorder %v6820_v59, %v6825_v62  ;;  %v6988_v56 = vsel %vm256_vm11, 1.0, %v8748_v0 }
  0xa7   :  { %8810 = vst [vmem:[#allocation14_spill] sm:$0xff] %v6988_v56  ;;  %v6994_v58 = vsel %vm257_vm13, 1.0, %v8748_v0 }
  0xa8   :  { %v6845_v9 = vpop.permute.xlu1 %237  ;;  %8811 = vst [vmem:[#allocation15_spill] sm:$0xff] %v6994_v58 }
  0xa9   :  { %v6822_v61 = vpop.permute.xlu0 %240  ;;  %vm258_vm15 = vcmp.eq.s32.totalorder %v6845_v9, %v6825_v62  ;;  %v309_v9 = vld [vmem:[%s8731_s1 + $0x10] sm:$0xff] }
  0xaa   :  { %vm259_vm2 = vcmp.eq.s32.totalorder %v6822_v61, %v6825_v62  ;;  %v7014_v3 = vsel %vm258_vm15, 1.0, %v8748_v0 }
  0xab   :  { %8812 = vst [vmem:[#allocation16_spill] sm:$0xff] %v7014_v3  ;;  %v7020_v5 = vsel %vm259_vm2, 1.0, %v8748_v0 }
  0xac   :  { %v6847_v10 = vpop.permute.xlu1 %243  ;;  %8813 = vst [vmem:[#allocation17_spill] sm:$0xff] %v7020_v5 }
  0xad   :  { %v87_v63 = vpop.permute.xlu0 %86 }
  0xae   :  { %vm133_vm3 = vcmp.eq.s32.totalorder %v87_v63, %v6825_v62 }
  0xaf   :  { %v6833_v2 = vsel %vm133_vm3, 1.0, %v8748_v0 }
  0xb0   :  { %v90_v11 = vpop.permute.xlu1 %89 }
  0xb1   :  { %v93_v12 = vpop.permute.xlu0 %92  ;;  %vm134_vm5 = vcmp.eq.s32.totalorder %v90_v11, %v6825_v62  ;;  %v311_v11 = vld [vmem:[%s8731_s1 + $0x20] sm:$0xff] }
  0xb2   :  { %v6859_v26 = vsel %vm134_vm5, 1.0, %v8748_v0  ;;  %vm135_vm8 = vcmp.eq.s32.totalorder %v93_v12, %v6825_v62  ;;  %vm253_vm5 = vcmp.eq.s32.totalorder %v6816_v57, %v6825_v62  ;;  %v312_v12 = vld [vmem:[%s8731_s1 + $0x28] sm:$0xff] }
  0xb3   :  { %v6870_v30 = vsel %vm135_vm8, 1.0, %v8748_v0  ;;  %v6942_v45 = vsel %vm253_vm5, 1.0, %v8748_v0  ;;  %vm260_vm5 = vcmp.eq.s32.totalorder %v6847_v10, %v6825_v62  ;;  %v310_v10 = vld [vmem:[%s8731_s1 + $0x18] sm:$0xff] }
  0xb4   :  { %v96_v13 = vpop.permute.xlu1 %95  ;;  %8807 = vst [vmem:[#allocation11_spill] sm:$0xff] %v6942_v45  ;;  %v7040_v7 = vsel %vm260_vm5, 1.0, %v8748_v0 }
  0xb5   :  { %v99_v14 = vpop.permute.xlu0 %98  ;;  %vm136_vm10 = vcmp.eq.s32.totalorder %v96_v13, %v6825_v62  ;;  %8815 = vst [vmem:[#allocation19_spill] sm:$0xff] %v7040_v7  ;;  %v313_v13 = vld [vmem:[%s8731_s1 + $0x30] sm:$0xff] }
  0xb6   :  { %vm137_vm12 = vcmp.eq.s32.totalorder %v99_v14, %v6825_v62  ;;  %v6888_v33 = vsel %vm136_vm10, 1.0, %v8748_v0  ;;  %v314_v14 = vld [vmem:[%s8731_s1 + $0x38] sm:$0xff] }
  0xb7   :  { %v6895_v36 = vsel %vm137_vm12, 1.0, %v8748_v0 }
  0xb8   :  { %v102_v15 = vpop.permute.xlu1 %101 }
  0xb9   :  { %v105_v22 = vpop.permute.xlu0 %104  ;;  %vm138_vm14 = vcmp.eq.s32.totalorder %v102_v15, %v6825_v62  ;;  %v315_v15 = vld [vmem:[%s8731_s1 + $0x40] sm:$0xff] }
  0xba   :  { %vm139_vm0 = vcmp.eq.s32.totalorder %v105_v22, %v6825_v62  ;;  %v6913_v39 = vsel %vm138_vm14, 1.0, %v8748_v0  ;;  %v322_v22 = vld [vmem:[%s8731_s1 + $0x78] sm:$0xff] }
  0xbb   :  { %v6921_v41 = vsel %vm139_vm0, 1.0, %v8748_v0 }
  0xbc   :  { %v108_v27 = vpop.permute.xlu1 %107 }
  0xbd   :  { %v111_v31 = vpop.permute.xlu0 %110  ;;  %vm140_vm3 = vcmp.eq.s32.totalorder %v108_v27, %v6825_v62 }
  0xbe   :  { %vm141_vm6 = vcmp.eq.s32.totalorder %v111_v31, %v6825_v62  ;;  %v6939_v44 = vsel %vm140_vm3, 1.0, %v8748_v0 }
  0xbf   :  { %v6947_v46 = vsel %vm141_vm6, 1.0, %v8748_v0 }
  0xc0   :  { %v114_v34 = vpop.permute.xlu1 %113 }
  0xc1   :  { %v117_v37 = vpop.permute.xlu0 %116  ;;  %vm142_vm8 = vcmp.eq.s32.totalorder %v114_v34, %v6825_v62 }
  0xc2   :  { %vm143_vm10 = vcmp.eq.s32.totalorder %v117_v37, %v6825_v62 }
  0xc3   :  { %v6973_v54 = vsel %vm143_vm10, 1.0, %v8748_v0 }
  0xc4   :  { %v120_v42 = vpop.permute.xlu1 %119 }
  0xc5   :  { %v123_v47 = vpop.permute.xlu0 %122  ;;  %vm144_vm12 = vcmp.eq.s32.totalorder %v120_v42, %v6825_v62 }
  0xc6   :  { %vm145_vm14 = vcmp.eq.s32.totalorder %v123_v47, %v6825_v62  ;;  %v6991_v57 = vsel %vm144_vm12, 1.0, %v8748_v0 }
  0xc7   :  { %v6999_v59 = vsel %vm145_vm14, 1.0, %v8748_v0 }
  0xc9   :  { %v129_v55 = vpop.permute.xlu0 %128 }
  0xca   :  { %vm147_vm3 = vcmp.eq.s32.totalorder %v129_v55, %v6825_v62 }
  0xcb   :  { %v7025_v61 = vsel %vm147_vm3, 1.0, %v8748_v0 }
  0xcc   :  { %8814 = vst [vmem:[#allocation18_spill] sm:$0xff] %v7025_v61 }
  0xde   :  { %v5331_v49 = vpop.f32.mrb[0].mxu0 }
  0xdf   :  { %v406_v50 = vpop.f32.mrb[1].mxu0  ;;  %v6802_v52 = vadd.f32 %v5331_v49, %v4840_v48  ;;  %v6965_v49 = vsel %vm142_vm8, 1.0, %v8748_v0 }
  0xe0   :  { %v6800_v51 = vadd.f32 %v4840_v48, %v406_v50  ;;  %v6962_v48 = vsel %vm254_vm7, 1.0, %v8748_v0  ;;  %v126_v50 = vpop.permute.xlu1 %125  ;;  %vm1203_vm7 = vcmask 523264  }
  0xe1   :  { %8808 = vst [vmem:[#allocation12_spill] sm:$0xff] %v6962_v48  ;;  %vm146_vm0 = vcmp.eq.s32.totalorder %v126_v50, %v6825_v62 }
  0xe2   :  { %5340 = vmatprep.mubr.msk.f32.mxu1 %vm419_vm1, %v6800_v51  ;;  %5351 = vmatprep.mubr.msk.f32.mxu0 %vm419_vm1, %v6800_v51  ;;  %v7017_v4 = vsel %vm146_vm0, 1.0, %v8748_v0 }
  0xe3   :  { %5341 = vmatmul.mubr.msk.f32.vlgmr.msra.gmra.mrb[0].mxu1 %vm419_vm1, %v6802_v52  ;;  %5352 = vmatmul.mubr.msk.f32.vlgmr.msra.gmra.mrb[2].mxu0 %vm419_vm1, %v6802_v52 }
  0xe4   :  { %5358 = vmatprep.mubr.msk.f32.mxu0 %vm580_vm4, %v6833_v2  ;;  %5386 = vmatprep.mubr.msk.f32.mxu1 %vm580_vm4, %v6830_v1  ;;  %v132_v63 = vpop.permute.xlu1 %131 }
  0xe5   :  { %vm148_vm6 = vcmp.eq.s32.totalorder %v132_v63, %v6825_v62 }
  0xe6   :  { %v7043_v62 = vsel %vm148_vm6, 1.0, %v8748_v0 }
  0xe7   :  { %8816 = vst [vmem:[#allocation20_spill] sm:$0xff] %v7043_v62 }
 0x1b6   :  { %v5342_v18 = vpop.f32.mrb[0].mxu1  ;;  %v5353_v19 = vpop.f32.mrb[2].mxu0 }
 0x1b7   :  { %v492_v20 = vpop.f32.mrb[1].mxu1  ;;  %v571_v21 = vpop.f32.mrb[3].mxu0 }
 0x1b8   :  { %v5812_v23 = vpack.c.bf16 %v5342_v18, %v492_v20  ;;  %v5808_v24 = vpack.c.bf16 %v5353_v19, %v571_v21  ;;  %v318_v18 = vld [vmem:[%s8731_s1 + $0x58] sm:$0xff]  ;;  %v319_v19 = vld [vmem:[%s8731_s1 + $0x60] sm:$0xff]  ;;  %v320_v20 = vld [vmem:[%s8731_s1 + $0x68] sm:$0xff] }
 0x1b9   :  { %v321_v21 = vld [vmem:[%s8731_s1 + $0x70] sm:$0xff] }
 0x1ba   :  { %5809 = vmatprep.subr.bf16.mxu0 %v5808_v24  ;;  %5813 = vmatprep.subr.bf16.mxu1 %v5812_v23 }
 0x1bb   :  { %5811 = vmatpush3.bf16.msra.mxu0 %v5808_v24  ;;  %5815 = vmatpush3.bf16.msra.mxu1 %v5812_v23 }
 0x1bc   :  { %5817 = vmatprep.subr.bf16.mxu1 %v5816_v25 }
 0x1be   :  { %5359 = vmatmul.mubr.msk.f32.vlgmr.msra.gmra.mrb[4].mxu0 %vm580_vm4, %v6859_v26  ;;  %5387 = vmatmul.mubr.msk.f32.vlgmr.msra.gmra.mrb[2].mxu1 %vm580_vm4, %v6866_v29 }
 0x1bf   :  { %5361 = vmatprep.mubr.msk.f32.mxu0 %vm580_vm4, %v6870_v30  ;;  %5389 = vmatprep.mubr.msk.f32.mxu1 %vm580_vm4, %v6863_v28 }
 0x1c0   :  { %5819 = vmatpush3.bf16.msra.mxu1 %v5816_v25 }
 0x1c2   :  { %5362 = vmatmul.mubr.msk.f32.gmra.mrb[6].mxu0 %vm580_vm4, %v6888_v33  ;;  %5390 = vmatmul.mubr.msk.f32.gmra.mrb[4].mxu1 %vm580_vm4, %v6885_v32 }
 0x1c3   :  { %5364 = vmatprep.mubr.msk.f32.mxu0 %vm580_vm4, %v6895_v36  ;;  %5392 = vmatprep.mubr.msk.f32.mxu1 %vm580_vm4, %v6891_v35 }
 0x1c6   :  { %5365 = vmatmul.mubr.msk.f32.gmra.mrb[8].mxu0 %vm580_vm4, %v6913_v39  ;;  %5393 = vmatmul.mubr.msk.f32.gmra.mrb[6].mxu1 %vm580_vm4, %v6910_v38 }
 0x1c7   :  { %5367 = vmatprep.mubr.msk.f32.mxu0 %vm580_vm4, %v6921_v41  ;;  %5395 = vmatprep.mubr.msk.f32.mxu1 %vm580_vm4, %v6916_v40 }
 0x1ca   :  { %5368 = vmatmul.mubr.msk.f32.gmra.mrb[10].mxu0 %vm580_vm4, %v6939_v44  ;;  %5396 = vmatmul.mubr.msk.f32.gmra.mrb[8].mxu1 %vm580_vm4, %v6936_v43 }
 0x1cb   :  { %5370 = vmatprep.mubr.msk.f32.mxu0 %vm580_vm4, %v6947_v46  ;;  %5398 = vmatprep.mubr.msk.f32.mxu1 %vm580_vm4, %v6942_v45 }
 0x1ce   :  { %5371 = vmatmul.mubr.msk.f32.gmra.mrb[12].mxu0 %vm580_vm4, %v6965_v49  ;;  %5399 = vmatmul.mubr.msk.f32.gmra.mrb[10].mxu1 %vm580_vm4, %v6962_v48 }
 0x1cf   :  { %5373 = vmatprep.mubr.msk.f32.mxu0 %vm580_vm4, %v6973_v54  ;;  %5401 = vmatprep.mubr.msk.f32.mxu1 %vm580_vm4, %v6968_v53 }
 0x1d2   :  { %5374 = vmatmul.mubr.msk.f32.gmra.mrb[14].mxu0 %vm580_vm4, %v6991_v57  ;;  %5402 = vmatmul.mubr.msk.f32.gmra.mrb[12].mxu1 %vm580_vm4, %v6988_v56 }
 0x1d3   :  { %5376 = vmatprep.mubr.msk.f32.mxu0 %vm580_vm4, %v6999_v59  ;;  %5404 = vmatprep.mubr.msk.f32.mxu1 %vm580_vm4, %v6994_v58 }
 0x1d6   :  { %5377 = vmatmul.mubr.msk.f32.gmra.mrb[16].mxu0 %vm580_vm4, %v7017_v4  ;;  %5405 = vmatmul.mubr.msk.f32.gmra.mrb[14].mxu1 %vm580_vm4, %v7014_v3 }
 0x1d7   :  { %5379 = vmatprep.mubr.msk.f32.mxu0 %vm580_vm4, %v7025_v61  ;;  %5407 = vmatprep.mubr.msk.f32.mxu1 %vm580_vm4, %v7020_v5 }
 0x1da   :  { %5380 = vmatmul.mubr.msk.f32.gmra.mrb[18].mxu0 %vm580_vm4, %v7043_v62  ;;  %5408 = vmatmul.mubr.msk.f32.gmra.mrb[16].mxu1 %vm580_vm4, %v7040_v7 }
 0x1db   :  { %5414 = vmatprep.mubr.msk.f32.mxu1 %vm580_vm4, %v307_v6 }
 0x1de   :  { %5415 = vmatmul.mubr.msk.f32.vlgmr.msra.gmra.mrb[2].mxu1 %vm580_vm4, %v308_v8 }
 0x1df   :  { %5417 = vmatprep.mubr.msk.f32.mxu1 %vm580_vm4, %v309_v9 }
 0x1e2   :  { %5418 = vmatmul.mubr.msk.f32.gmra.mrb[4].mxu1 %vm580_vm4, %v310_v10 }
 0x1e3   :  { %5420 = vmatprep.mubr.msk.f32.mxu1 %vm580_vm4, %v311_v11 }
 0x1e6   :  { %5421 = vmatmul.mubr.msk.f32.gmra.mrb[6].mxu1 %vm580_vm4, %v312_v12  ;;  %v7121_v12 = vld [vmem:[%s8732_s11] ss:$0 sm:$0xff] }
 0x1e7   :  { %5423 = vmatprep.mubr.msk.f32.mxu1 %vm580_vm4, %v313_v13 }
 0x1ea   :  { %5424 = vmatmul.mubr.msk.f32.gmra.mrb[8].mxu1 %vm580_vm4, %v314_v14 }
 0x1eb   :  { %5426 = vmatprep.mubr.msk.f32.mxu1 %vm580_vm4, %v315_v15 }
 0x1ee   :  { %5427 = vmatmul.mubr.msk.f32.gmra.mrb[10].mxu1 %vm580_vm4, %v316_v16 }
 0x1ef   :  { %5429 = vmatprep.mubr.msk.f32.mxu1 %vm580_vm4, %v317_v17 }
 0x1f2   :  { %5430 = vmatmul.mubr.msk.f32.gmra.mrb[12].mxu1 %vm580_vm4, %v318_v18 }
 0x1f3   :  { %5432 = vmatprep.mubr.msk.f32.mxu1 %vm580_vm4, %v319_v19 }
 0x1f6   :  { %5433 = vmatmul.mubr.msk.f32.gmra.mrb[14].mxu1 %vm580_vm4, %v320_v20 }
 0x1f7   :  { %5435 = vmatprep.mubr.msk.f32.mxu1 %vm580_vm4, %v321_v21 }
 0x1fa   :  { %5436 = vmatmul.mubr.msk.f32.gmra.mrb[16].mxu1 %vm580_vm4, %v322_v22 }
 0x291   :  { %v5360_v23 = vpop.f32.mrb[4].mxu0 }
 0x292   :  { %v695_v24 = vpop.f32.mrb[5].mxu0 }
 0x295   :  { %v5363_v25 = vpop.f32.mrb[6].mxu0 }
 0x296   :  { %v705_v27 = vpop.f32.mrb[7].mxu0 }
 0x299   :  { %v5366_v31 = vpop.f32.mrb[8].mxu0 }
 0x29a   :  { %v715_v34 = vpop.f32.mrb[9].mxu0 }
 0x29d   :  { %v5369_v37 = vpop.f32.mrb[10].mxu0 }
 0x29e   :  { %v725_v42 = vpop.f32.mrb[11].mxu0 }
 0x2a1   :  { %v5372_v47 = vpop.f32.mrb[12].mxu0 }
 0x2a2   :  { %v735_v50 = vpop.f32.mrb[13].mxu0 }
 0x2a5   :  { %v5375_v55 = vpop.f32.mrb[14].mxu0 }
 0x2a6   :  { %v745_v63 = vpop.f32.mrb[15].mxu0 }
 0x2a9   :  { %v7110_v6 = vpop.f32.mrb[16].mxu0 }
 0x2aa   :  { %v7112_v8 = vpop.f32.mrb[17].mxu0 }
 0x2ad   :  { %v7114_v9 = vpop.f32.mrb[18].mxu0 }
 0x2ae   :  { %v7116_v10 = vpop.f32.mrb[19].mxu0 }
 0x2b1   :  { %v5416_v11 = vpop.f32.mrb[2].mxu1 }
 0x2b2   :  { %v5993_v13 = vadd.f32 %v5416_v11, %v5360_v23  ;;  %v1083_v14 = vpop.f32.mrb[3].mxu1 }
 0x2b3   :  { %v5994_v15 = vadd.f32 %v1083_v14, %v695_v24 }
 0x2b4   :  { %v7124_v16 = vadd.f32 %v5993_v13, %v7121_v12 }
 0x2b5   :  { %v7127_v17 = vadd.f32 %v5994_v15, %v7121_v12  ;;  %v5419_v18 = vpop.f32.mrb[4].mxu1 }
 0x2b6   :  { %v1205_v19 = vsel %vm1203_vm7, %v7124_v16, 0.0  ;;  %v5995_v20 = vadd.f32 %v5419_v18, %v5363_v25  ;;  %v1093_v21 = vpop.f32.mrb[5].mxu1 }
 0x2b7   :  { %v1204_v22 = vsel %vm1203_vm7, %v7127_v17, 0.0  ;;  %v5996_v0 = vadd.f32 %v1093_v21, %v705_v27 }
 0x2b8   :  { %v1206_v23 = vadd.f32 %v1205_v19, %v1204_v22  ;;  %v7134_v11 = vadd.f32 %v5995_v20, %v7121_v12 }
 0x2b9   :  { %v7137_v24 = vadd.f32 %v5996_v0, %v7121_v12  ;;  %v5422_v13 = vpop.f32.mrb[6].mxu1 }
 0x2ba   :  { %v5997_v14 = vadd.f32 %v5422_v13, %v5366_v31  ;;  %v1103_v15 = vpop.f32.mrb[7].mxu1  ;;  %v1209_v18 = vsel %vm1203_vm7, %v7134_v11, 0.0 }
 0x2bb   :  { %v1207_v60 = vsel %vm1203_vm7, %v7137_v24, 0.0  ;;  %v5998_v7 = vadd.f32 %v1103_v15, %v715_v34 }
 0x2bc   :  { %v1208_v25 = vadd.f32 %v1207_v60, %v1206_v23  ;;  %v7144_v27 = vadd.f32 %v5997_v14, %v7121_v12 }
 0x2bd   :  { %v7147_v19 = vadd.f32 %v5998_v7, %v7121_v12  ;;  %v5425_v20 = vpop.f32.mrb[8].mxu1 }
 0x2be   :  { %v1210_v0 = vadd.f32 %v1209_v18, %v1208_v25  ;;  %v5999_v21 = vadd.f32 %v5425_v20, %v5369_v37  ;;  %v1113_v22 = vpop.f32.mrb[9].mxu1  ;;  %v1213_v60 = vsel %vm1203_vm7, %v7144_v27, 0.0 }
 0x2bf   :  { %v1211_v31 = vsel %vm1203_vm7, %v7147_v19, 0.0  ;;  %v6000_v13 = vadd.f32 %v1113_v22, %v725_v42 }
 0x2c0   :  { %v1212_v5 = vadd.f32 %v1211_v31, %v1210_v0  ;;  %v1192_v34 = vadd.f32 %v5999_v21, %v7121_v12 }
 0x2c1   :  { %v1191_v23 = vadd.f32 %v6000_v13, %v7121_v12  ;;  %v5428_v14 = vpop.f32.mrb[10].mxu1 }
 0x2c2   :  { %v1214_v15 = vadd.f32 %v1213_v60, %v1212_v5  ;;  %v6001_v7 = vadd.f32 %v5428_v14, %v5372_v47  ;;  %v1123_v3 = vpop.f32.mrb[11].mxu1  ;;  %v1217_v20 = vsel %vm1203_vm7, %v1192_v34, 0.0 }
 0x2c3   :  { %v1215_v25 = vsel %vm1203_vm7, %v1191_v23, 0.0  ;;  %v6002_v37 = vadd.f32 %v1123_v3, %v735_v50 }
 0x2c4   :  { %v1216_v18 = vadd.f32 %v1215_v25, %v1214_v15  ;;  %v1194_v42 = vadd.f32 %v6001_v7, %v7121_v12 }
 0x2c5   :  { %v1193_v0 = vadd.f32 %v6002_v37, %v7121_v12  ;;  %v5431_v22 = vpop.f32.mrb[12].mxu1 }
 0x2c6   :  { %v1218_v31 = vadd.f32 %v1217_v20, %v1216_v18  ;;  %v6003_v58 = vadd.f32 %v5431_v22, %v5375_v55  ;;  %v1133_v21 = vpop.f32.mrb[13].mxu1  ;;  %v1221_v47 = vsel %vm1203_vm7, %v1194_v42, 0.0 }
 0x2c7   :  { %v1219_v13 = vsel %vm1203_vm7, %v1193_v0, 0.0  ;;  %v6004_v56 = vadd.f32 %v1133_v21, %v745_v63 }
 0x2c8   :  { %v1220_v5 = vadd.f32 %v1219_v13, %v1218_v31  ;;  %v1196_v60 = vadd.f32 %v6003_v58, %v7121_v12 }
 0x2c9   :  { %v1195_v3 = vadd.f32 %v6004_v56, %v7121_v12  ;;  %v5434_v50 = vpop.f32.mrb[14].mxu1 }
 0x2ca   :  { %v1222_v14 = vadd.f32 %v1221_v47, %v1220_v5  ;;  %v6005_v15 = vadd.f32 %v5434_v50, %v7110_v6  ;;  %v1143_v7 = vpop.f32.mrb[15].mxu1  ;;  %v1225_v18 = vsel %vm1203_vm7, %v1196_v60, 0.0 }
 0x2cb   :  { %v1223_v25 = vsel %vm1203_vm7, %v1195_v3, 0.0  ;;  %v6006_v55 = vadd.f32 %v1143_v7, %v7112_v8 }
 0x2cc   :  { %v1224_v37 = vadd.f32 %v1223_v25, %v1222_v14  ;;  %v1198_v63 = vadd.f32 %v6005_v15, %v7121_v12 }
 0x2cd   :  { %v1197_v20 = vadd.f32 %v6006_v55, %v7121_v12  ;;  %v5437_v22 = vpop.f32.mrb[16].mxu1 }
 0x2ce   :  { %v1226_v58 = vadd.f32 %v1225_v18, %v1224_v37  ;;  %v6007_v56 = vadd.f32 %v5437_v22, %v7114_v9  ;;  %v1153_v31 = vpop.f32.mrb[17].mxu1  ;;  %v1229_v5 = vsel %vm1203_vm7, %v1198_v63, 0.0 }
 0x2cf   :  { %v1227_v21 = vsel %vm1203_vm7, %v1197_v20, 0.0  ;;  %v6008_v6 = vadd.f32 %v1153_v31, %v7116_v10 }
 0x2d0   :  { %v1228_v13 = vadd.f32 %v1227_v21, %v1226_v58  ;;  %v1200_v8 = vadd.f32 %v6007_v56, %v7121_v12 }
 0x2d1   :  { %v1199_v47 = vadd.f32 %v6008_v6, %v7121_v12 }
 0x2d2   :  { %v1230_v50 = vadd.f32 %v1229_v5, %v1228_v13  ;;  %v1233_v7 = vsel %vm1203_vm7, %v1200_v8, 0.0 }
 0x2d3   :  { %v1231_v14 = vsel %vm1203_vm7, %v1199_v47, 0.0 }
 0x2d4   :  { %v1232_v15 = vadd.f32 %v1231_v14, %v1230_v50 }
 0x2d6   :  { %v1234_v25 = vadd.f32 %v1233_v7, %v1232_v15 }
 0x2d8   :  { %v1235_v9 = vrot.slane %v1234_v25, 4 }
 0x2da   :  { %v1236_v55 = vadd.f32 %v1235_v9, %v1234_v25 }
 0x2dc   :  { %v1237_v37 = vrot.slane %v1236_v55, 2 }
 0x2de   :  { %v1238_v18 = vadd.f32 %v1237_v37, %v1236_v55 }
 0x2e0   :  { %v1239_v22 = vrot.slane %v1238_v18, 1 }
 0x2e2   :  { %v1240_v10 = vadd.f32 %v1239_v22, %v1238_v18 }
 0x2e4   :  { %v1242_v58 = vmul.f32 0.0078125, %v1240_v10 }
 0x2e6   :  { %v7178_v31 = vsub.f32 %v7127_v17, %v1242_v58  ;;  %v7181_v56 = vsub.f32 %v7124_v16, %v1242_v58  ;;  %v7184_v12 = vsub.f32 %v7137_v24, %v1242_v58  ;;  %v7187_v21 = vsub.f32 %v7134_v11, %v1242_v58 }
 0x2e7   :  { %v7190_v6 = vsub.f32 %v7147_v19, %v1242_v58  ;;  %v7193_v13 = vsub.f32 %v7144_v27, %v1242_v58  ;;  %v7195_v5 = vsub.f32 %v1191_v23, %v1242_v58  ;;  %v7197_v50 = vsub.f32 %v1192_v34, %v1242_v58 }
 0x2e8   :  { %v7199_v17 = vsub.f32 %v1193_v0, %v1242_v58  ;;  %v7201_v16 = vsub.f32 %v1194_v42, %v1242_v58  ;;  %v7203_v14 = vsub.f32 %v1195_v3, %v1242_v58  ;;  %v7205_v24 = vsub.f32 %v1196_v60, %v1242_v58 }
 0x2e9   :  { %v7207_v11 = vsub.f32 %v1197_v20, %v1242_v58  ;;  %v7209_v15 = vsub.f32 %v1198_v63, %v1242_v58  ;;  %v1257_v19 = vsub.f32 %v1199_v47, %v1242_v58  ;;  %v7211_v7 = vsub.f32 %v1200_v8, %v1242_v58 }
 0x2ea   :  { %v1259_v27 = vmul.f32 %v7178_v31, %v7178_v31  ;;  %v1260_v34 = vmul.f32 %v7181_v56, %v7181_v56  ;;  %v1261_v23 = vmul.f32 %v7184_v12, %v7184_v12  ;;  %v1262_v42 = vmul.f32 %v7187_v21, %v7187_v21 }
 0x2eb   :  { %v1263_v63 = vmul.f32 %v7190_v6, %v7190_v6  ;;  %v1264_v47 = vmul.f32 %v7193_v13, %v7193_v13  ;;  %v1265_v55 = vmul.f32 %v7195_v5, %v7195_v5  ;;  %v1266_v22 = vmul.f32 %v7197_v50, %v7197_v50 }
 0x2ec   :  { %v1275_v0 = vsel %vm1203_vm7, %v1259_v27, 0.0  ;;  %v1276_v60 = vsel %vm1203_vm7, %v1260_v34, 0.0  ;;  %v1278_v20 = vsel %vm1203_vm7, %v1261_v23, 0.0  ;;  %v1280_v25 = vsel %vm1203_vm7, %v1262_v42, 0.0 }
 0x2ed   :  { %v1277_v3 = vadd.f32 %v1276_v60, %v1275_v0  ;;  %v1282_v37 = vsel %vm1203_vm7, %v1263_v63, 0.0  ;;  %v1284_v10 = vsel %vm1203_vm7, %v1264_v47, 0.0  ;;  %v1267_v27 = vmul.f32 %v7199_v17, %v7199_v17 }
 0x2ee   :  { %v1286_v34 = vsel %vm1203_vm7, %v1265_v55, 0.0  ;;  %v1268_v42 = vmul.f32 %v7201_v16, %v7201_v16  ;;  %v1288_v0 = vsel %vm1203_vm7, %v1266_v22, 0.0 }
 0x2ef   :  { %v1279_v8 = vadd.f32 %v1278_v20, %v1277_v3  ;;  %v1269_v3 = vmul.f32 %v7203_v14, %v7203_v14  ;;  %v1290_v63 = vsel %vm1203_vm7, %v1267_v27, 0.0 }
 0x2f0   :  { %v1292_v47 = vsel %vm1203_vm7, %v1268_v42, 0.0 }
 0x2f1   :  { %v1281_v9 = vadd.f32 %v1280_v25, %v1279_v8  ;;  %v1270_v8 = vmul.f32 %v7205_v24, %v7205_v24  ;;  %v1294_v55 = vsel %vm1203_vm7, %v1269_v3, 0.0 }
 0x2f3   :  { %v1283_v18 = vadd.f32 %v1282_v37, %v1281_v9  ;;  %v1271_v9 = vmul.f32 %v7207_v11, %v7207_v11  ;;  %v1296_v22 = vsel %vm1203_vm7, %v1270_v8, 0.0 }
 0x2f5   :  { %v1285_v58 = vadd.f32 %v1284_v10, %v1283_v18  ;;  %v1272_v18 = vmul.f32 %v7209_v15, %v7209_v15  ;;  %v1298_v27 = vsel %vm1203_vm7, %v1271_v9, 0.0 }
 0x2f7   :  { %v1287_v23 = vadd.f32 %v1286_v34, %v1285_v58  ;;  %v1273_v58 = vmul.f32 %v1257_v19, %v1257_v19  ;;  %v1300_v42 = vsel %vm1203_vm7, %v1272_v18, 0.0  ;;  %v7264_v18 = vld [vmem:[%s8733_s12] ss:$0 sm:$0xff] }
 0x2f9   :  { %v1289_v60 = vadd.f32 %v1288_v0, %v1287_v23  ;;  %v1274_v23 = vmul.f32 %v7211_v7, %v7211_v7 }
 0x2fb   :  { %v1291_v20 = vadd.f32 %v1290_v63, %v1289_v60  ;;  %v1302_v60 = vsel %vm1203_vm7, %v1273_v58, 0.0  ;;  %v1304_v63 = vsel %vm1203_vm7, %v1274_v23, 0.0 }
 0x2fd   :  { %v1293_v25 = vadd.f32 %v1292_v47, %v1291_v20 }
 0x2ff   :  { %v1295_v37 = vadd.f32 %v1294_v55, %v1293_v25 }
 0x301   :  { %v1297_v10 = vadd.f32 %v1296_v22, %v1295_v37 }
 0x303   :  { %v1299_v34 = vadd.f32 %v1298_v27, %v1297_v10 }
 0x305   :  { %v1301_v0 = vadd.f32 %v1300_v42, %v1299_v34 }
 0x307   :  { %v1303_v3 = vadd.f32 %v1302_v60, %v1301_v0  ;;  %v7276_v0 = vld [vmem:[%s8734_s13] ss:$0 sm:$0xff] }
 0x309   :  { %v1305_v20 = vadd.f32 %v1304_v63, %v1303_v3 }
 0x30b   :  { %v1306_v47 = vrot.slane %v1305_v20, 4 }
 0x30d   :  { %v1307_v25 = vadd.f32 %v1306_v47, %v1305_v20 }
 0x30f   :  { %v1308_v8 = vrot.slane %v1307_v25, 2 }
 0x311   :  { %v1309_v55 = vadd.f32 %v1308_v8, %v1307_v25 }
 0x313   :  { %v1310_v37 = vrot.slane %v1309_v55, 1 }
 0x315   :  { %v1311_v22 = vadd.f32 %v1310_v37, %v1309_v55 }
 0x317   :  { %v1312_v9 = vmul.f32 0.0078125, %v1311_v22 }
 0x319   :  { %v1313_v10 = vadd.f32 1e-05, %v1312_v9 }
 0x31b   :  { %6097 = vrsqrt.f32 %v1313_v10 }
 0x325   :  { %v7259_v27 = vpop.eup %6097 }
 0x326   :  { %v1329_v58 = vmul.f32 %v7259_v27, %v1257_v19  ;;  %v1316_v34 = vmul.f32 %v7259_v27, %v7181_v56  ;;  %v1315_v23 = vmul.f32 %v7259_v27, %v7178_v31  ;;  %v1318_v42 = vmul.f32 %v7259_v27, %v7187_v21 }
 0x327   :  { %v1317_v60 = vmul.f32 %v7259_v27, %v7184_v12  ;;  %v1320_v19 = vmul.f32 %v7259_v27, %v7193_v13  ;;  %v1319_v56 = vmul.f32 %v7259_v27, %v7190_v6  ;;  %v1322_v31 = vmul.f32 %v7259_v27, %v7197_v50 }
 0x328   :  { %v1338_v3 = vmul.f32 %v7264_v18, %v1316_v34  ;;  %v1337_v21 = vmul.f32 %v7264_v18, %v1315_v23  ;;  %v1340_v63 = vmul.f32 %v7264_v18, %v1318_v42 }
 0x329   :  { %v1339_v20 = vmul.f32 %v7264_v18, %v1317_v60  ;;  %v1342_v47 = vmul.f32 %v7264_v18, %v1320_v19  ;;  %v1341_v12 = vmul.f32 %v7264_v18, %v1319_v56  ;;  %v1344_v13 = vmul.f32 %v7264_v18, %v1322_v31 }
 0x32a   :  { %v7294_v25 = vadd.f32 %v7276_v0, %v1338_v3  ;;  %v7297_v6 = vadd.f32 %v7276_v0, %v1337_v21  ;;  %v7300_v50 = vadd.f32 %v7276_v0, %v1340_v63 }
 0x32b   :  { %v7303_v8 = vadd.f32 %v7276_v0, %v1339_v20  ;;  %v7306_v55 = vadd.f32 %v7276_v0, %v1342_v47  ;;  %v7309_v37 = vadd.f32 %v7276_v0, %v1341_v12  ;;  %v7314_v10 = vadd.f32 %v7276_v0, %v1344_v13 }
 0x32c   :  { %v1536_v22 = vmin.f32 %v7294_v25, 20.0  ;;  %v1535_v9 = vmin.f32 %v7297_v6, 20.0  ;;  %v1538_v34 = vmin.f32 %v7300_v50, 20.0  ;;  %v1321_v47 = vmul.f32 %v7259_v27, %v7195_v5 }
 0x32d   :  { %v1537_v23 = vmin.f32 %v7303_v8, 20.0  ;;  %v1540_v19 = vmin.f32 %v7306_v55, 20.0  ;;  %v1539_v3 = vmin.f32 %v7309_v37, 20.0  ;;  %v1542_v63 = vmin.f32 %v7314_v10, 20.0 }
 0x32e   :  { %v1569_v42 = vmul.f32 1.442695, %v1536_v22  ;;  %v1567_v60 = vmul.f32 1.442695, %v1535_v9  ;;  %v1573_v56 = vmul.f32 1.442695, %v1538_v34  ;;  %v1324_v12 = vmul.f32 %v7259_v27, %v7201_v16 }
 0x32f   :  { %v1571_v31 = vmul.f32 1.442695, %v1537_v23  ;;  %v1577_v21 = vmul.f32 1.442695, %v1540_v19  ;;  %v1575_v20 = vmul.f32 1.442695, %v1539_v3  ;;  %v1323_v22 = vmul.f32 %v7259_v27, %v7199_v17 }
 0x330   :  { %6099 = vpow2.f32 %v1569_v42  ;;  %v1581_v13 = vmul.f32 1.442695, %v1542_v63  ;;  %v1326_v9 = vmul.f32 %v7259_v27, %v7205_v24  ;;  %v1343_v34 = vmul.f32 %v7264_v18, %v1321_v47 }
 0x331   :  { %6101 = vpow2.f32 %v1567_v60  ;;  %v1346_v23 = vmul.f32 %v7264_v18, %v1324_v12  ;;  %v1325_v42 = vmul.f32 %v7259_v27, %v7203_v14  ;;  %v1345_v5 = vmul.f32 %v7264_v18, %v1323_v22 }
 0x332   :  { %6103 = vpow2.f32 %v1573_v56  ;;  %v1328_v16 = vmul.f32 %v7259_v27, %v7209_v15  ;;  %v7337_v17 = vadd.f32 %v7276_v0, %v1343_v34  ;;  %v1348_v60 = vmul.f32 %v7264_v18, %v1326_v9 }
 0x333   :  { %6105 = vpow2.f32 %v1571_v31  ;;  %v7340_v24 = vadd.f32 %v7276_v0, %v1346_v23  ;;  %v1347_v19 = vmul.f32 %v7264_v18, %v1325_v42  ;;  %v1351_v15 = vmul.f32 %v7264_v18, %v1329_v58 }
 0x334   :  { %6107 = vpow2.f32 %v1577_v21  ;;  %v1541_v14 = vmin.f32 %v7337_v17, 20.0  ;;  %v1350_v31 = vmul.f32 %v7264_v18, %v1328_v16  ;;  %v7349_v3 = vadd.f32 %v7276_v0, %v1345_v5 }
 0x335   :  { %6109 = vpow2.f32 %v1575_v20  ;;  %v1544_v56 = vmin.f32 %v7340_v24, 20.0  ;;  %v7352_v20 = vadd.f32 %v7276_v0, %v1348_v60  ;;  %v7355_v12 = vadd.f32 %v7276_v0, %v1347_v19 }
 0x336   :  { %6111 = vpow2.f32 %v1581_v13  ;;  %v1579_v21 = vmul.f32 1.442695, %v1541_v14  ;;  %v1327_v13 = vmul.f32 %v7259_v27, %v7207_v11  ;;  %v1330_v22 = vmul.f32 %v7259_v27, %v7211_v7 }
 0x337   :  { %v1585_v63 = vmul.f32 1.442695, %v1544_v56  ;;  %v7362_v34 = vadd.f32 %v7276_v0, %v1350_v31  ;;  %v7365_v42 = vadd.f32 %v7276_v0, %v1351_v15  ;;  %v1543_v16 = vmin.f32 %v7349_v3, 20.0 }
 0x338   :  { %6113 = vpow2.f32 %v1579_v21  ;;  %v1546_v19 = vmin.f32 %v7352_v20, 20.0  ;;  %v1349_v7 = vmul.f32 %v7264_v18, %v1327_v13  ;;  %v1545_v56 = vmin.f32 %v7355_v12, 20.0 }
 0x339   :  { %6115 = vpow2.f32 %v1585_v63  ;;  %v1352_v31 = vmul.f32 %v7264_v18, %v1330_v22  ;;  %v1548_v63 = vmin.f32 %v7362_v34, 20.0  ;;  %vm1552_vm8 = vcmp.gt.f32.partialorder %v7294_v25, 20.0 }
 0x33a   :  { %v6100_v47 = vpop.eup %6099  ;;  %v1587_v18 = vmul.f32 1.442695, %v1545_v56  ;;  %vm1551_vm9 = vcmp.gt.f32.partialorder %v7297_v6, 20.0  ;;  %vm1554_vm10 = vcmp.gt.f32.partialorder %v7300_v50, 20.0  ;;  %vm1553_vm11 = vcmp.gt.f32.partialorder %v7303_v8, 20.0 }
 0x33b   :  { %v6102_v9 = vpop.eup %6101  ;;  %v1600_v58 = vadd.f32 1.0, %v6100_v47  ;;  %v7374_v47 = vadd.f32 %v7276_v0, %v1349_v7  ;;  %v7377_v13 = vadd.f32 %v7276_v0, %v1352_v31  ;;  %v1549_v7 = vmin.f32 %v7365_v42, 20.0 }
 0x33c   :  { %v6104_v23 = vpop.eup %6103  ;;  %v1599_v5 = vadd.f32 1.0, %v6102_v9  ;;  %vm1556_vm12 = vcmp.gt.f32.partialorder %v7306_v55, 20.0  ;;  %vm1555_vm13 = vcmp.gt.f32.partialorder %v7309_v37, 20.0  ;;  %vm1558_vm14 = vcmp.gt.f32.partialorder %v7314_v10, 20.0 }
 0x33d   :  { %v6106_v60 = vpop.eup %6105  ;;  %6117 = vlog2.f32 %v1600_v58  ;;  %v1602_v11 = vadd.f32 1.0, %v6104_v23  ;;  %v1583_v23 = vmul.f32 1.442695, %v1543_v16  ;;  %v1547_v22 = vmin.f32 %v7374_v47, 20.0 }
 0x33e   :  { %v6108_v27 = vpop.eup %6107  ;;  %6119 = vlog2.f32 %v1599_v5  ;;  %v1601_v14 = vadd.f32 1.0, %v6106_v60  ;;  %v1589_v60 = vmul.f32 1.442695, %v1546_v19  ;;  %vm1557_vm15 = vcmp.gt.f32.partialorder %v7337_v17, 20.0 }
 0x33f   :  { %v6110_v15 = vpop.eup %6109  ;;  %6121 = vlog2.f32 %v1602_v11  ;;  %v1604_v21 = vadd.f32 1.0, %v6108_v27  ;;  %v1593_v11 = vmul.f32 1.442695, %v1548_v63  ;;  %v1550_v27 = vmin.f32 %v7377_v13, 20.0 }
 0x340   :  { %v6112_v9 = vpop.eup %6111  ;;  %6123 = vlog2.f32 %v1601_v14  ;;  %v1603_v58 = vadd.f32 1.0, %v6110_v15  ;;  %v1591_v0 = vmul.f32 1.442695, %v1547_v22  ;;  %vm1560_vm0 = vcmp.gt.f32.partialorder %v7340_v24, 20.0 }
 0x341   :  { %6125 = vlog2.f32 %v1604_v21  ;;  %v1606_v5 = vadd.f32 1.0, %v6112_v9  ;;  %v1597_v19 = vmul.f32 1.442695, %v1550_v27  ;;  %vm1559_vm2 = vcmp.gt.f32.partialorder %v7349_v3, 20.0 }
 0x342   :  { %6127 = vlog2.f32 %v1603_v58  ;;  %v6114_v14 = vpop.eup %6113  ;;  %v1595_v58 = vmul.f32 1.442695, %v1549_v7  ;;  %vm1562_vm3 = vcmp.gt.f32.partialorder %v7352_v20, 20.0  ;;  %vm1561_vm5 = vcmp.gt.f32.partialorder %v7355_v12, 20.0 }
 0x343   :  { %6129 = vlog2.f32 %v1606_v5  ;;  %v6116_v16 = vpop.eup %6115  ;;  %v1605_v15 = vadd.f32 1.0, %v6114_v14  ;;  %vm1564_vm6 = vcmp.gt.f32.partialorder %v7362_v34, 20.0 }
 0x344   :  { %6131 = vpow2.f32 %v1583_v23  ;;  %v1608_v21 = vadd.f32 1.0, %v6116_v16 }
 0x345   :  { %6133 = vpow2.f32 %v1589_v60 }
 0x346   :  { %6135 = vpow2.f32 %v1587_v18 }
 0x347   :  { %v6118_v31 = vpop.eup %6117  ;;  %6137 = vpow2.f32 %v1593_v11 }
 0x348   :  { %v6120_v56 = vpop.eup %6119  ;;  %v1618_v9 = vmul.f32 0.6931472, %v6118_v31  ;;  %6139 = vlog2.f32 %v1605_v15 }
 0x349   :  { %v6122_v63 = vpop.eup %6121  ;;  %v1616_v23 = vmul.f32 0.6931472, %v6120_v56  ;;  %6141 = vlog2.f32 %v1608_v21 }
 0x34a   :  { %v6124_v5 = vpop.eup %6123  ;;  %v1648_v60 = vsel %vm1552_vm8, %v7294_v25, %v1618_v9  ;;  %v1622_v18 = vmul.f32 0.6931472, %v6122_v63  ;;  %6143 = vpow2.f32 %v1591_v0  ;;  %vm1563_vm8 = vcmp.gt.f32.partialorder %v7374_v47, 20.0 }
 0x34b   :  { %v6126_v22 = vpop.eup %6125  ;;  %1681 = vrot.lane.b32.xlu1 %v1648_v60, %s6559_s6  ;;  %v1647_v11 = vsel %vm1551_vm9, %v7297_v6, %v1616_v23  ;;  %v1620_v27 = vmul.f32 0.6931472, %v6124_v5  ;;  %6145 = vpow2.f32 %v1597_v19  ;;  %vm1566_vm9 = vcmp.gt.f32.partialorder %v7377_v13, 20.0 }
 0x34c   :  { %v6128_v7 = vpop.eup %6127  ;;  %1679 = vrot.lane.b32.xlu0 %v1647_v11, %s6559_s6  ;;  %6147 = vpow2.f32 %v1595_v58  ;;  %v1650_v15 = vsel %vm1554_vm10, %v7300_v50, %v1622_v18  ;;  %v1626_v0 = vmul.f32 0.6931472, %v6126_v22  ;;  %vm1565_vm10 = vcmp.gt.f32.partialorder %v7365_v42, 20.0 }
 0x34d   :  { %v6130_v14 = vpop.eup %6129  ;;  %v1649_v21 = vsel %vm1553_vm11, %v7303_v8, %v1620_v27  ;;  %v1624_v56 = vmul.f32 0.6931472, %v6128_v7 }
 0x34e   :  { %v6132_v16 = vpop.eup %6131  ;;  %v1652_v60 = vsel %vm1556_vm12, %v7306_v55, %v1626_v0  ;;  %v1630_v18 = vmul.f32 0.6931472, %v6130_v14 }
 0x34f   :  { %v6134_v31 = vpop.eup %6133  ;;  %1685 = vrot.lane.b32.xlu1 %v1650_v15, %s6559_s6  ;;  %v1607_v19 = vadd.f32 1.0, %v6132_v16  ;;  %v1651_v27 = vsel %vm1555_vm13, %v7309_v37, %v1624_v56  ;;  %vm1440_vm13 = vcmp.ge.f32.partialorder %v7294_v25, 0.0 }
 0x350   :  { %v6136_v9 = vpop.eup %6135  ;;  %1683 = vrot.lane.b32.xlu0 %v1649_v21, %s6559_s6  ;;  %v1610_v58 = vadd.f32 1.0, %v6134_v31  ;;  %v1654_v14 = vsel %vm1558_vm14, %v7314_v10, %v1630_v18  ;;  %vm1439_vm14 = vcmp.ge.f32.partialorder %v7297_v6, 0.0 }
 0x351   :  { %v6138_v63 = vpop.eup %6137  ;;  %6149 = vlog2.f32 %v1607_v19  ;;  %v1609_v23 = vadd.f32 1.0, %v6136_v9 }
 0x352   :  { %v6140_v5 = vpop.eup %6139  ;;  %6151 = vlog2.f32 %v1610_v58  ;;  %v1612_v22 = vadd.f32 1.0, %v6138_v63 }
 0x353   :  { %v6142_v11 = vpop.eup %6141  ;;  %1689 = vrot.lane.b32.xlu1 %v1652_v60, %s6559_s6  ;;  %v1628_v7 = vmul.f32 0.6931472, %v6140_v5  ;;  %6153 = vlog2.f32 %v1609_v23 }
 0x354   :  { %v6144_v16 = vpop.eup %6143  ;;  %1687 = vrot.lane.b32.xlu0 %v1651_v27, %s6559_s6  ;;  %6155 = vlog2.f32 %v1612_v22  ;;  %v1634_v0 = vmul.f32 0.6931472, %v6142_v11 }
 0x355   :  { %v6146_v15 = vpop.eup %6145  ;;  %v1611_v31 = vadd.f32 1.0, %v6144_v16  ;;  %v1653_v56 = vsel %vm1557_vm15, %v7337_v17, %v1628_v7  ;;  %vm1442_vm15 = vcmp.ge.f32.partialorder %v7300_v50, 0.0 }
 0x356   :  { %v6148_v21 = vpop.eup %6147  ;;  %v1614_v19 = vadd.f32 1.0, %v6146_v15  ;;  %v1656_v58 = vsel %vm1560_vm0, %v7340_v24, %v1634_v0  ;;  %vm1441_vm0 = vcmp.ge.f32.partialorder %v7303_v8, 0.0 }
 0x357   :  { %1693 = vrot.lane.b32.xlu1 %v1654_v14, %s6559_s6  ;;  %6157 = vlog2.f32 %v1611_v31  ;;  %v1613_v9 = vadd.f32 1.0, %v6148_v21 }
 0x358   :  { %1691 = vrot.lane.b32.xlu0 %v1653_v56, %s6559_s6  ;;  %6159 = vlog2.f32 %v1614_v19 }
 0x359   :  { %6161 = vlog2.f32 %v1613_v9 }
 0x35b   :  { %v6150_v63 = vpop.eup %6149  ;;  %1697 = vrot.lane.b32.xlu1 %v1656_v58, %s6559_s6 }
 0x35c   :  { %v6152_v23 = vpop.eup %6151  ;;  %v1632_v5 = vmul.f32 0.6931472, %v6150_v63 }
 0x35d   :  { %v6154_v60 = vpop.eup %6153  ;;  %v1638_v18 = vmul.f32 0.6931472, %v6152_v23 }
 0x35e   :  { %v6156_v22 = vpop.eup %6155  ;;  %v1655_v11 = vsel %vm1559_vm2, %v7349_v3, %v1632_v5  ;;  %v1636_v27 = vmul.f32 0.6931472, %v6154_v60  ;;  %v7432_v5 = vld [vmem:[%s8735_s4] ss:$0 sm:$0xff]  ;;  %v8817_v60 = vlaneseq  ;;  %vm1444_vm2 = vcmp.ge.f32.partialorder %v7306_v55, 0.0 }
 0x35f   :  { %1695 = vrot.lane.b32.xlu0 %v1655_v11, %s6559_s6  ;;  %v1658_v7 = vsel %vm1562_vm3, %v7352_v20, %v1638_v18  ;;  %v1642_v16 = vmul.f32 0.6931472, %v6156_v22  ;;  %v8761_v11 = vmov 1.0   ;;  %vm1443_vm3 = vcmp.ge.f32.partialorder %v7309_v37, 0.0 }
 0x360   :  { %1701 = vrot.lane.b32.xlu1 %v1658_v7, %s6559_s6  ;;  %v1657_v21 = vsel %vm1561_vm5, %v7355_v12, %v1636_v27  ;;  %v7436_v18 = vshrl.u32 %v8817_v60, 7  ;;  %v1376_v27 = vand.u32 2147483647, %v7294_v25  ;;  %v1375_v7 = vand.u32 2147483647, %v7297_v6 }
 0x361   :  { %v6158_v15 = vpop.eup %6157  ;;  %v1660_v19 = vsel %vm1564_vm6, %v7362_v34, %v1642_v16  ;;  %v1378_v16 = vand.u32 2147483647, %v7300_v50  ;;  %vm1446_vm5 = vcmp.ge.f32.partialorder %v7314_v10, 0.0  ;;  %vm1445_vm6 = vcmp.ge.f32.partialorder %v7337_v17, 0.0 }
 0x362   :  { %v6160_v31 = vpop.eup %6159  ;;  %v1640_v14 = vmul.f32 0.6931472, %v6158_v15  ;;  %8818 = vst [vmem:[#allocation21_spill] sm:$0xff] %v7436_v18  ;;  %v7439_v22 = vadd.s32 8, %v7436_v18  ;;  %vm301_vm11 = vcmp.eq.s32.totalorder %v7432_v5, %v7436_v18  ;;  %v1392_v15 = vsub.f32 0.0, %v1376_v27 }
 0x363   :  { %v6162_v0 = vpop.eup %6161  ;;  %1699 = vrot.lane.b32.xlu0 %v1657_v21, %s6559_s6  ;;  %v1646_v56 = vmul.f32 0.6931472, %v6160_v31  ;;  %5470 = vmatprep.mubr.msk.f32.mxu0 %vm301_vm11, %v8761_v11  ;;  %v1391_v31 = vsub.f32 0.0, %v1375_v7  ;;  %v1377_v21 = vand.u32 2147483647, %v7303_v8 }
 0x364   :  { %1705 = vrot.lane.b32.xlu1 %v1660_v19, %s6559_s6  ;;  %v1659_v9 = vsel %vm1563_vm8, %v7374_v47, %v1640_v14  ;;  %v1644_v58 = vmul.f32 0.6931472, %v6162_v0  ;;  %5611 = vmatprep.mubr.msk.f32.mxu1 %vm301_vm11, %v8761_v11  ;;  %vm302_vm12 = vcmp.eq.s32.totalorder %v7432_v5, %v7439_v22  ;;  %v1394_v14 = vsub.f32 0.0, %v1378_v16 }
 0x365   :  { %v1662_v63 = vsel %vm1566_vm9, %v7377_v13, %v1646_v56  ;;  %v1380_v0 = vand.u32 2147483647, %v7306_v55  ;;  %v1409_v19 = vmul.f32 1.442695, %v1392_v15  ;;  %v1407_v56 = vmul.f32 1.442695, %v1391_v31 }
 0x366   :  { %v1661_v23 = vsel %vm1565_vm10, %v7365_v42, %v1644_v58  ;;  %v1379_v58 = vand.u32 2147483647, %v7309_v37  ;;  %v1382_v18 = vand.u32 2147483647, %v7314_v10  ;;  %v1381_v27 = vand.u32 2147483647, %v7337_v17 }
 0x367   :  { %1703 = vrot.lane.b32.xlu0 %v1659_v9, %s6559_s6  ;;  %v1393_v9 = vsub.f32 0.0, %v1377_v21  ;;  %6163 = vpow2.f32 %v1409_v19  ;;  %v1384_v31 = vand.u32 2147483647, %v7340_v24  ;;  %vm1448_vm8 = vcmp.ge.f32.partialorder %v7340_v24, 0.0 }
 0x368   :  { %1709 = vrot.lane.b32.xlu1 %v1662_v63, %s6559_s6  ;;  %v1413_v63 = vmul.f32 1.442695, %v1394_v14  ;;  %6165 = vpow2.f32 %v1407_v56  ;;  %v1395_v11 = vsub.f32 0.0, %v1379_v58  ;;  %v1398_v53 = vsub.f32 0.0, %v1382_v18 }
 0x369   :  { %v1411_v60 = vmul.f32 1.442695, %v1393_v9  ;;  %v1397_v15 = vsub.f32 0.0, %v1381_v27  ;;  %v1383_v14 = vand.u32 2147483647, %v7349_v3  ;;  %v1400_v9 = vsub.f32 0.0, %v1384_v31 }
 0x36a   :  { %6167 = vpow2.f32 %v1413_v63  ;;  %v1415_v16 = vmul.f32 1.442695, %v1395_v11  ;;  %v1421_v21 = vmul.f32 1.442695, %v1398_v53  ;;  %v1386_v58 = vand.u32 2147483647, %v7352_v20 }
 0x36b   :  { %1707 = vrot.lane.b32.xlu0 %v1661_v23, %s6559_s6  ;;  %v1396_v23 = vsub.f32 0.0, %v1380_v0  ;;  %6169 = vpow2.f32 %v1411_v60  ;;  %v1419_v19 = vmul.f32 1.442695, %v1397_v15  ;;  %v1399_v11 = vsub.f32 0.0, %v1383_v14 }
 0x36c   :  { %v1385_v18 = vand.u32 2147483647, %v7355_v12  ;;  %v1425_v53 = vmul.f32 1.442695, %v1400_v9  ;;  %v1402_v27 = vsub.f32 0.0, %v1386_v58  ;;  %vm1447_vm9 = vcmp.ge.f32.partialorder %v7349_v3, 0.0 }
 0x36d   :  { %v1417_v7 = vmul.f32 1.442695, %v1396_v23  ;;  %v1387_v15 = vand.u32 2147483647, %v7374_v47  ;;  %v1423_v45 = vmul.f32 1.442695, %v1399_v11 }
 0x36e   :  { %v1390_v14 = vand.u32 2147483647, %v7377_v13  ;;  %v1429_v9 = vmul.f32 1.442695, %v1402_v27  ;;  %vm1450_vm10 = vcmp.ge.f32.partialorder %v7352_v20, 0.0 }
 0x36f   :  { %6171 = vpow2.f32 %v1417_v7  ;;  %v1388_v7 = vand.u32 2147483647, %v7362_v34  ;;  %v1403_v38 = vsub.f32 0.0, %v1387_v15 }
 0x370   :  { %6173 = vpow2.f32 %v1415_v16  ;;  %v1406_v32 = vsub.f32 0.0, %v1390_v14 }
 0x371   :  { %v6164_v0 = vpop.eup %6163  ;;  %6175 = vpow2.f32 %v1421_v21  ;;  %v1401_v21 = vsub.f32 0.0, %v1385_v18  ;;  %v1404_v58 = vsub.f32 0.0, %v1388_v7 }
 0x372   :  { %v6166_v56 = vpop.eup %6165  ;;  %v1456_v63 = vadd.f32 1.0, %v6164_v0  ;;  %6177 = vpow2.f32 %v1419_v19  ;;  %v1437_v27 = vmul.f32 1.442695, %v1406_v32 }
 0x373   :  { %v1455_v23 = vadd.f32 1.0, %v6166_v56  ;;  %v1427_v35 = vmul.f32 1.442695, %v1401_v21 }
 0x374   :  { %v7464_v48 = vpop.eup %6167  ;;  %6179 = vrcp.f32 %v1456_v63  ;;  %v1389_v63 = vand.u32 2147483647, %v7365_v42 }
 0x375   :  { %v7467_v60 = vpop.eup %6169  ;;  %v1458_v16 = vadd.f32 1.0, %v7464_v48  ;;  %6181 = vrcp.f32 %v1455_v23  ;;  %v1433_v23 = vmul.f32 1.442695, %v1404_v58 }
 0x376   :  { %v1457_v19 = vadd.f32 1.0, %v7467_v60  ;;  %6183 = vpow2.f32 %v1425_v53  ;;  %v1431_v53 = vmul.f32 1.442695, %v1403_v38  ;;  %v1405_v7 = vsub.f32 0.0, %v1389_v63 }
 0x377   :  { %6185 = vrcp.f32 %v1458_v16 }
 0x378   :  { %6187 = vpow2.f32 %v1423_v45 }
 0x379   :  { %v7472_v31 = vpop.eup %6171  ;;  %6189 = vrcp.f32 %v1457_v19  ;;  %v1435_v19 = vmul.f32 1.442695, %v1405_v7 }
 0x37a   :  { %v7476_v43 = vpop.eup %6173  ;;  %v1460_v40 = vadd.f32 1.0, %v7472_v31  ;;  %6191 = vpow2.f32 %v1429_v9 }
 0x37b   :  { %v1459_v11 = vadd.f32 1.0, %v7476_v43  ;;  %v7481_v18 = vpop.eup %6175 }
 0x37c   :  { %v7483_v28 = vpop.eup %6177  ;;  %6193 = vrcp.f32 %v1460_v40  ;;  %v1462_v45 = vadd.f32 1.0, %v7481_v18 }
 0x37d   :  { %6195 = vpow2.f32 %v1427_v35  ;;  %v1461_v15 = vadd.f32 1.0, %v7483_v28 }
 0x37e   :  { %6197 = vrcp.f32 %v1459_v11  ;;  %v6180_v16 = vpop.eup %6179 }
 0x37f   :  { %6199 = vpow2.f32 %v1433_v23  ;;  %v6182_v21 = vpop.eup %6181  ;;  %v1504_v35 = vmul.f32 %v6180_v16, %v6164_v0 }
 0x380   :  { %6201 = vpow2.f32 %v1431_v53  ;;  %v7487_v14 = vpop.eup %6183  ;;  %v1503_v32 = vmul.f32 %v6182_v21, %v6166_v56 }
 0x381   :  { %6203 = vpow2.f32 %v1437_v27  ;;  %v6186_v9 = vpop.eup %6185  ;;  %v1464_v58 = vadd.f32 1.0, %v7487_v14  ;;  %v1520_v7 = vsel %vm1440_vm13, %v6180_v16, %v1504_v35  ;;  %vm1449_vm13 = vcmp.ge.f32.partialorder %v7355_v12, 0.0 }
 0x382   :  { %6205 = vrcp.f32 %v1462_v45  ;;  %v7489_v40 = vpop.eup %6187  ;;  %v1519_v0 = vsel %vm1439_vm14, %v6182_v21, %v1503_v32  ;;  %v1506_v56 = vmul.f32 %v6186_v9, %v7464_v48  ;;  %vm1452_vm14 = vcmp.ge.f32.partialorder %v7362_v34, 0.0 }
 0x383   :  { %6207 = vrcp.f32 %v1461_v15  ;;  %v6190_v38 = vpop.eup %6189  ;;  %v1463_v23 = vadd.f32 1.0, %v7489_v40 }
 0x384   :  { %v7492_v63 = vpop.eup %6191  ;;  %6209 = vpow2.f32 %v1435_v19  ;;  %v1505_v1 = vmul.f32 %v6190_v38, %v7467_v60  ;;  %v1522_v35 = vsel %vm1442_vm15, %v6186_v9, %v1506_v56  ;;  %vm1451_vm15 = vcmp.ge.f32.partialorder %v7374_v47, 0.0 }
 0x385   :  { %6211 = vrcp.f32 %v1464_v58  ;;  %v1466_v19 = vadd.f32 1.0, %v7492_v63 }
 0x386   :  { %v6194_v11 = vpop.eup %6193  ;;  %6213 = vrcp.f32 %v1463_v23 }
 0x387   :  { %v7497_v53 = vpop.eup %6195  ;;  %v1508_v32 = vmul.f32 %v6194_v11, %v7472_v31  ;;  %6215 = vrcp.f32 %v1466_v19 }
 0x388   :  { %v6198_v45 = vpop.eup %6197  ;;  %v1465_v48 = vadd.f32 1.0, %v7497_v53 }
 0x389   :  { %v7502_v25 = vpop.eup %6199  ;;  %v1507_v58 = vmul.f32 %v6198_v45, %v7476_v43  ;;  %v1524_v56 = vsel %vm1444_vm2, %v6194_v11, %v1508_v32  ;;  %vm1453_vm2 = vcmp.ge.f32.partialorder %v7365_v42, 0.0  ;;  %v4903_v42 = vld [vmem:[%s8796_s3 + $0x28] sm:$0xff] }
 0x38a   :  { %v7504_v62 = vpop.eup %6201  ;;  %v1468_v50 = vadd.f32 1.0, %v7502_v25  ;;  %6217 = vrcp.f32 %v1465_v48 }
 0x38b   :  { %v7509_v16 = vpop.eup %6203  ;;  %v1467_v31 = vadd.f32 1.0, %v7504_v62 }
 0x38c   :  { %6219 = vrcp.f32 %v1468_v50  ;;  %v1470_v55 = vadd.f32 1.0, %v7509_v16 }
 0x38d   :  { %6221 = vrcp.f32 %v1467_v31 }
 0x38e   :  { %6223 = vrcp.f32 %v1470_v55 }
 0x3bd   :  { %v1682_v27 = vpop.permute.xlu1 %1681 }
 0x3be   :  { %v1728_v15 = vmul.f32 %v1682_v27, %v1520_v7  ;;  %v1680_v29 = vpop.permute.xlu0 %1679  ;;  %v6206_v27 = vpop.eup %6205  ;;  %v1521_v7 = vsel %vm1441_vm0, %v6190_v38, %v1505_v1  ;;  %v1523_v38 = vsel %vm1443_vm3, %v6198_v45, %v1507_v58  ;;  %vm1454_vm0 = vcmp.ge.f32.partialorder %v7377_v13, 0.0  ;;  %v4902_v13 = vld [vmem:[%s8796_s3 + $0x20] sm:$0xff] }
 0x3bf   :  { %v1727_v6 = vmul.f32 %v1680_v29, %v1519_v0  ;;  %v6208_v8 = vpop.eup %6207 }
 0x3c0   :  { %v7517_v9 = vpop.eup %6209 }
 0x3c1   :  { %v5820_v21 = vpack.c.bf16 %v1728_v15, %v1727_v6  ;;  %v1686_v60 = vpop.permute.xlu1 %1685  ;;  %v1510_v15 = vmul.f32 %v6206_v27, %v7481_v18  ;;  %v6212_v37 = vpop.eup %6211  ;;  %v1469_v11 = vadd.f32 1.0, %v7517_v9 }
 0x3c2   :  { %v1730_v29 = vmul.f32 %v1686_v60, %v1522_v35  ;;  %v1684_v0 = vpop.permute.xlu0 %1683  ;;  %v1509_v35 = vmul.f32 %v6208_v8, %v7483_v28  ;;  %v6214_v18 = vpop.eup %6213 }
 0x3c3   :  { %v1729_v23 = vmul.f32 %v1684_v0, %v1521_v7  ;;  %5821 = vmatprep.subr.bf16.mxu0 %v5820_v21  ;;  %v1526_v45 = vsel %vm1446_vm5, %v6206_v27, %v1510_v15  ;;  %v1512_v7 = vmul.f32 %v6212_v37, %v7487_v14  ;;  %v6216_v0 = vpop.eup %6215  ;;  %6225 = vrcp.f32 %v1469_v11 }
 0x3c4   :  { %5823 = vmatpush3.bf16.msra.mxu0 %v5820_v21  ;;  %v1525_v28 = vsel %vm1445_vm6, %v6208_v8, %v1509_v35  ;;  %v6218_v27 = vpop.eup %6217  ;;  %v1514_v8 = vmul.f32 %v6216_v0, %v7492_v63 }
 0x3c5   :  { %v5824_v43 = vpack.c.bf16 %v1730_v29, %v1729_v23  ;;  %v1690_v1 = vpop.permute.xlu1 %1689  ;;  %v1511_v23 = vmul.f32 %v6214_v18, %v7489_v40  ;;  %v1528_v17 = vsel %vm1448_vm8, %v6212_v37, %v1512_v7  ;;  %v6220_v31 = vpop.eup %6219 }
 0x3c6   :  { %v1732_v19 = vmul.f32 %v1690_v1, %v1524_v56  ;;  %v1688_v6 = vpop.permute.xlu0 %1687  ;;  %v1513_v1 = vmul.f32 %v6218_v27, %v7497_v53  ;;  %v1516_v24 = vmul.f32 %v6220_v31, %v7502_v25 }
 0x3c7   :  { %v1731_v21 = vmul.f32 %v1688_v6, %v1523_v38  ;;  %5825 = vmatprep.subr.bf16.mxu0 %v5824_v43  ;;  %v1527_v14 = vsel %vm1447_vm9, %v6214_v18, %v1511_v23  ;;  %v6222_v38 = vpop.eup %6221 }
 0x3c8   :  { %5827 = vmatpush3.bf16.msra.mxu0 %v5824_v43  ;;  %v6224_v6 = vpop.eup %6223  ;;  %v1529_v55 = vsel %vm1449_vm13, %v6218_v27, %v1513_v1  ;;  %v1532_v20 = vsel %vm1452_vm14, %v6220_v31, %v1516_v24  ;;  %v4908_v27 = vld [vmem:[%s8797_s0 + $0x20] sm:$0xff] }
 0x3c9   :  { %v5828_v48 = vpack.c.bf16 %v1732_v19, %v1731_v21  ;;  %v1694_v60 = vpop.permute.xlu1 %1693  ;;  %v1530_v19 = vsel %vm1450_vm10, %v6216_v0, %v1514_v8  ;;  %v1515_v21 = vmul.f32 %v6222_v38, %v7504_v62  ;;  %v4904_v0 = vld [vmem:[%s8796_s3 + $0x30] sm:$0xff] }
 0x3ca   :  { %v1734_v32 = vmul.f32 %v1694_v60, %v1526_v45  ;;  %v1692_v58 = vpop.permute.xlu0 %1691 }
 0x3cb   :  { %v1733_v29 = vmul.f32 %v1692_v58, %v1525_v28  ;;  %5829 = vmatprep.subr.bf16.mxu0 %v5828_v48  ;;  %v1531_v60 = vsel %vm1451_vm15, %v6222_v38, %v1515_v21 }
 0x3cc   :  { %5831 = vmatpush3.bf16.msra.mxu0 %v5828_v48  ;;  %v1518_v48 = vmul.f32 %v6224_v6, %v7509_v16 }
 0x3cd   :  { %v5832_v10 = vpack.c.bf16 %v1734_v32, %v1733_v29  ;;  %v1698_v50 = vpop.permute.xlu1 %1697  ;;  %v6226_v37 = vpop.eup %6225 }
 0x3ce   :  { %v1736_v43 = vmul.f32 %v1698_v50, %v1528_v17  ;;  %v1517_v18 = vmul.f32 %v6226_v37, %v7517_v9  ;;  %v1534_v34 = vsel %vm1454_vm0, %v6224_v6, %v1518_v48  ;;  %v8819_v9 = vmov 1.0   ;;  %v4905_v50 = vld [vmem:[%s8796_s3 + $0x38] sm:$0xff]  ;;  %v4909_v17 = vld [vmem:[%s8797_s0 + $0x28] sm:$0xff] }
 0x3cf   :  { %5833 = vmatprep.subr.bf16.mxu0 %v5832_v10  ;;  %v5856_v23 = vpack.c.bf16 %v4905_v50, %v4904_v0  ;;  %v7563_v8 = vpack.c.bf16 %v4909_v17, %v4908_v27 }
 0x3d0   :  { %5835 = vmatpush3.bf16.msra.mxu0 %v5832_v10  ;;  %v1533_v16 = vsel %vm1453_vm2, %v6226_v37, %v1517_v18  ;;  %v5852_v10 = vpack.c.bf16 %v4903_v42, %v4902_v13 }
 0x3d1   :  { %v1696_v56 = vpop.permute.xlu0 %1695 }
 0x3d2   :  { %v1735_v15 = vmul.f32 %v1696_v56, %v1527_v14  ;;  %v1702_v40 = vpop.permute.xlu1 %1701 }
 0x3d3   :  { %v1738_v63 = vmul.f32 %v1702_v40, %v1530_v19 }
 0x3d4   :  { %v5836_v35 = vpack.c.bf16 %v1736_v43, %v1735_v15 }
 0x3d5   :  { %v1700_v3 = vpop.permute.xlu0 %1699 }
 0x3d6   :  { %v1737_v11 = vmul.f32 %v1700_v3, %v1529_v55  ;;  %5837 = vmatprep.subr.bf16.mxu0 %v5836_v35  ;;  %v1706_v53 = vpop.permute.xlu1 %1705 }
 0x3d7   :  { %5839 = vmatpush3.bf16.msra.mxu0 %v5836_v35  ;;  %v1740_v45 = vmul.f32 %v1706_v53, %v1532_v20 }
 0x3d8   :  { %v5840_v25 = vpack.c.bf16 %v1738_v63, %v1737_v11 }
 0x3d9   :  { %v1704_v12 = vpop.permute.xlu0 %1703 }
 0x3da   :  { %v1739_v32 = vmul.f32 %v1704_v12, %v1531_v60  ;;  %5841 = vmatprep.subr.bf16.mxu0 %v5840_v25  ;;  %v1710_v62 = vpop.permute.xlu1 %1709 }
 0x3db   :  { %5843 = vmatpush3.bf16.msra.mxu0 %v5840_v25  ;;  %v1742_v58 = vmul.f32 %v1710_v62, %v1534_v34  ;;  %v4900_v34 = vld [vmem:[%s8736_s14] ss:$0 sm:$0xff] }
 0x3dc   :  { %v5844_v28 = vpack.c.bf16 %v1740_v45, %v1739_v32 }
 0x3dd   :  { %v1708_v29 = vpop.permute.xlu0 %1707 }
 0x3de   :  { %v1741_v7 = vmul.f32 %v1708_v29, %v1533_v16  ;;  %5845 = vmatprep.subr.bf16.mxu0 %v5844_v28  ;;  %v4901_v16 = vld [vmem:[%s8737_s15] ss:$0 sm:$0xff] }
 0x3df   :  { %5847 = vmatpush3.bf16.msra.mxu0 %v5844_v28 }
 0x3e0   :  { %v5848_v47 = vpack.c.bf16 %v1742_v58, %v1741_v7 }
 0x3e2   :  { %5849 = vmatprep.subr.bf16.mxu0 %v5848_v47 }
 0x3e3   :  { %5851 = vmatpush3.bf16.msra.mxu0 %v5848_v47 }
 0x3e4   :  { %5853 = vmatprep.subr.bf16.mxu0 %v5852_v10 }
 0x3e6   :  { %5471 = vmatmul.mubr.msk.f32.vlgmr.msra.gmra.mrb[20].mxu0 %vm302_vm12, %v8819_v9 }
 0x3e7   :  { %5855 = vmatpush3.bf16.msra.mxu0 %v5852_v10 }
 0x3e8   :  { %5857 = vmatprep.subr.bf16.mxu0 %v5856_v23 }
 0x3eb   :  { %5859 = vmatpush3.bf16.msra.mxu0 %v5856_v23 }
 0x3ec   :  { %5861 = vmatprep.subr.bf16.mxu0 %v7563_v8 }
 0x4b9   :  { %v5472_v31 = vpop.f32.mrb[20].mxu0 }
 0x4ba   :  { %v1821_v43 = vsel %vm419_vm1, %v5472_v31, 0.0  ;;  %v1809_v14 = vpop.f32.mrb[21].mxu0 }
 0x4bb   :  { %v1820_v56 = vsel %vm419_vm1, %v1809_v14, 0.0 }
 0x4bc   :  { %v1822_v1 = vadd.f32 %v1821_v43, %v1820_v56 }
 0x4be   :  { %v1823_v38 = vrot.slane %v1822_v1, 4 }
 0x4c0   :  { %v1824_v15 = vadd.f32 %v1823_v38, %v1822_v1  ;;  %v4910_v1 = vld [vmem:[%s8797_s0 + $0x30] sm:$0xff] }
 0x4c2   :  { %v1825_v40 = vrot.slane %v1824_v15, 2 }
 0x4c4   :  { %v1826_v19 = vadd.f32 %v1825_v40, %v1824_v15 }
 0x4c6   :  { %v1827_v24 = vrot.slane %v1826_v19, 1 }
 0x4c8   :  { %v1828_v6 = vadd.f32 %v1827_v24, %v1826_v19 }
 0x4ca   :  { %v1830_v35 = vmul.f32 0.0625, %v1828_v6 }
 0x4cc   :  { %v1831_v63 = vsub.f32 %v1809_v14, %v1830_v35  ;;  %v1832_v55 = vsub.f32 %v5472_v31, %v1830_v35 }
 0x4ce   :  { %v1833_v3 = vmul.f32 %v1831_v63, %v1831_v63  ;;  %v1834_v21 = vmul.f32 %v1832_v55, %v1832_v55 }
 0x4d0   :  { %v1835_v37 = vsel %vm419_vm1, %v1833_v3, 0.0  ;;  %v1836_v11 = vsel %vm419_vm1, %v1834_v21, 0.0 }
 0x4d1   :  { %v1837_v53 = vadd.f32 %v1836_v11, %v1835_v37  ;;  %v4947_v37 = vld [vmem:[%s8730_s10 + $0x18] sm:$0xff] }
 0x4d3   :  { %v1838_v20 = vrot.slane %v1837_v53, 4 }
 0x4d5   :  { %v1839_v48 = vadd.f32 %v1838_v20, %v1837_v53  ;;  %v8820_v53 = vld [vmem:[#allocation20_spill] sm:$0xff]  ;;  %v8821_v20 = vld [vmem:[#allocation3_spill] sm:$0xff] }
 0x4d7   :  { %v1840_v25 = vrot.slane %v1839_v48, 2 }
 0x4d9   :  { %v1841_v45 = vadd.f32 %v1840_v25, %v1839_v48  ;;  %v8822_v48 = vld [vmem:[#allocation5_spill] sm:$0xff]  ;;  %v8823_v25 = vld [vmem:[#allocation4_spill] sm:$0xff] }
 0x4db   :  { %v1842_v60 = vrot.slane %v1841_v45, 1 }
 0x4dd   :  { %v1843_v12 = vadd.f32 %v1842_v60, %v1841_v45  ;;  %v8824_v45 = vld [vmem:[#allocation6_spill] sm:$0xff]  ;;  %v8825_v60 = vld [vmem:[#allocation7_spill] sm:$0xff] }
 0x4df   :  { %v1844_v18 = vmul.f32 0.0625, %v1843_v12  ;;  %v8826_v12 = vld [vmem:[#allocation8_spill] sm:$0xff] }
 0x4e1   :  { %v1845_v32 = vadd.f32 1e-05, %v1844_v18  ;;  %v8827_v18 = vld [vmem:[#allocation9_spill] sm:$0xff] }
 0x4e3   :  { %6227 = vrsqrt.f32 %v1845_v32  ;;  %v8828_v32 = vld [vmem:[#allocation10_spill] sm:$0xff] }
 0x4ed   :  { %v6228_v62 = vpop.eup %6227 }
 0x4ee   :  { %v1847_v28 = vmul.f32 %v6228_v62, %v1831_v63  ;;  %v1848_v58 = vmul.f32 %v6228_v62, %v1832_v55  ;;  %v8829_v62 = vld [vmem:[#allocation11_spill] sm:$0xff] }
 0x4f0   :  { %v1855_v29 = vmul.f32 %v4900_v34, %v1847_v28  ;;  %v1856_v7 = vmul.f32 %v4900_v34, %v1848_v58  ;;  %v8830_v34 = vld [vmem:[#allocation12_spill] sm:$0xff]  ;;  %v8831_v28 = vld [vmem:[#allocation13_spill] sm:$0xff]  ;;  %v8832_v58 = vld [vmem:[#allocation14_spill] sm:$0xff] }
 0x4f2   :  { %v1863_v47 = vadd.f32 %v4901_v16, %v1855_v29  ;;  %v1864_v13 = vadd.f32 %v4901_v16, %v1856_v7  ;;  %v8833_v16 = vld [vmem:[#allocation15_spill] sm:$0xff]  ;;  %v8834_v29 = vld [vmem:[#allocation16_spill] sm:$0xff]  ;;  %v8835_v7 = vld [vmem:[#allocation17_spill] sm:$0xff] }
 0x4f4   :  { %v1865_v42 = vadd.f32 %v1863_v47, %v6800_v51  ;;  %v1866_v0 = vadd.f32 %v1864_v13, %v6802_v52  ;;  %v4911_v51 = vld [vmem:[%s8797_s0 + $0x38] sm:$0xff]  ;;  %v8836_v47 = vld [vmem:[#allocation19_spill] sm:$0xff] }
 0x4f5   :  { %v5864_v19 = vpack.c.bf16 %v4911_v51, %v4910_v1  ;;  %v6525_v13 = vld [vmem:[%s8731_s1] sm:$0xff]  ;;  %v6538_v51 = vld [vmem:[%s8731_s1 + $0x68] sm:$0xff] }
 0x4f6   :  { %v1867_v10 = vmin.f32 %v1865_v42, 20.0  ;;  %v1868_v50 = vmin.f32 %v1866_v0, 20.0  ;;  %vm1869_vm3 = vcmp.gt.f32.partialorder %v1865_v42, 20.0  ;;  %vm1870_vm5 = vcmp.gt.f32.partialorder %v1866_v0, 20.0  ;;  %v6537_v1 = vld [vmem:[%s8731_s1 + $0x60] sm:$0xff] }
 0x4f8   :  { %v1871_v23 = vmul.f32 1.442695, %v1867_v10  ;;  %v1873_v27 = vmul.f32 1.442695, %v1868_v50  ;;  %v6528_v10 = vld [vmem:[%s8731_s1 + $0x18] sm:$0xff]  ;;  %v6529_v50 = vld [vmem:[%s8731_s1 + $0x20] sm:$0xff] }
 0x4fa   :  { %6229 = vpow2.f32 %v1871_v23  ;;  %v6530_v23 = vld [vmem:[%s8731_s1 + $0x28] sm:$0xff] }
 0x4fb   :  { %6231 = vpow2.f32 %v1873_v27  ;;  %v6531_v27 = vld [vmem:[%s8731_s1 + $0x30] sm:$0xff] }
 0x504   :  { %v6230_v17 = vpop.eup %6229 }
 0x505   :  { %v6232_v31 = vpop.eup %6231  ;;  %v1875_v43 = vadd.f32 1.0, %v6230_v17  ;;  %v6532_v17 = vld [vmem:[%s8731_s1 + $0x38] sm:$0xff] }
 0x506   :  { %v1876_v14 = vadd.f32 1.0, %v6232_v31  ;;  %v6533_v31 = vld [vmem:[%s8731_s1 + $0x40] sm:$0xff] }
 0x507   :  { %6233 = vlog2.f32 %v1875_v43  ;;  %v6534_v43 = vld [vmem:[%s8731_s1 + $0x48] sm:$0xff] }
 0x508   :  { %6235 = vlog2.f32 %v1876_v14  ;;  %v6535_v14 = vld [vmem:[%s8731_s1 + $0x50] sm:$0xff] }
 0x511   :  { %v6234_v56 = vpop.eup %6233 }
 0x512   :  { %v6236_v52 = vpop.eup %6235  ;;  %v1878_v38 = vmul.f32 0.6931472, %v6234_v56  ;;  %v6536_v56 = vld [vmem:[%s8731_s1 + $0x58] sm:$0xff] }
 0x513   :  { %v1880_v15 = vmul.f32 0.6931472, %v6236_v52  ;;  %v6539_v52 = vld [vmem:[%s8731_s1 + $0x70] sm:$0xff] }
 0x514   :  { %v7584_v40 = vsel %vm1869_vm3, %v1865_v42, %v1878_v38  ;;  %v6526_v42 = vld [vmem:[%s8731_s1 + $0x8] sm:$0xff]  ;;  %v6540_v38 = vld [vmem:[%s8731_s1 + $0x78] sm:$0xff] }
 0x515   :  { %5481 = vmatprep.mubr.msk.f32.mxu0 %vm419_vm1, %v7584_v40  ;;  %v7588_v24 = vsel %vm1870_vm5, %v1866_v0, %v1880_v15  ;;  %v6527_v0 = vld [vmem:[%s8731_s1 + $0x10] sm:$0xff] }
 0x516   :  { %5482 = vmatmul.mubr.msk.f32.vlgmr.msra.gmra.mrb[22].mxu0 %vm419_vm1, %v7588_v24 }
 0x517   :  { %5863 = vmatpush3.bf16.msra.mxu0 %v7563_v8  ;;  %5492 = vmatprep.mubr.msk.f32.mxu0 %vm419_vm1, %v7584_v40  ;;  %v4946_v8 = vld [vmem:[%s8730_s10 + $0x10] sm:$0xff] }
 0x518   :  { %5865 = vmatprep.subr.bf16.mxu0 %v5864_v19  ;;  %v5876_v11 = vpack.c.bf16 %v4947_v37, %v4946_v8 }
 0x51b   :  { %5867 = vmatpush3.bf16.msra.mxu0 %v5864_v19  ;;  %v4965_v19 = vld [vmem:[%s8732_s11 + $0x1] ss:$0 sm:$0xff] }
 0x51e   :  { %5493 = vmatmul.mubr.msk.f32.vlgmr.msra.gmra.mrb[24].mxu0 %vm419_vm1, %v7588_v24 }
 0x51f   :  { %5499 = vmatprep.mubr.msk.f32.mxu0 %vm580_vm4, %v6833_v2 }
 0x5e9   :  { %v5483_v6 = vpop.f32.mrb[22].mxu0 }
 0x5ea   :  { %v1960_v35 = vpop.f32.mrb[23].mxu0 }
 0x5eb   :  { %v5872_v63 = vpack.c.bf16 %v5483_v6, %v1960_v35 }
 0x5f1   :  { %v5494_v55 = vpop.f32.mrb[24].mxu0 }
 0x5f2   :  { %v2040_v3 = vpop.f32.mrb[25].mxu0 }
 0x5f3   :  { %v5868_v21 = vpack.c.bf16 %v5494_v55, %v2040_v3 }
 0x5f5   :  { %5869 = vmatprep.subr.bf16.mxu0 %v5868_v21 }
 0x5f6   :  { %5871 = vmatpush3.bf16.msra.mxu0 %v5868_v21 }
 0x5f7   :  { %5873 = vmatprep.subr.bf16.mxu0 %v5872_v63 }
 0x5f9   :  { %5500 = vmatmul.mubr.msk.f32.vlgmr.msra.gmra.mrb[26].mxu0 %vm580_vm4, %v6859_v26 }
 0x5fa   :  { %5502 = vmatprep.mubr.msk.f32.mxu0 %vm580_vm4, %v6870_v30  ;;  %5875 = vmatpush3.bf16.msra.mxu0 %v5872_v63 }
 0x5fb   :  { %5877 = vmatprep.subr.bf16.mxu0 %v5876_v11 }
 0x5fd   :  { %5503 = vmatmul.mubr.msk.f32.gmra.mrb[28].mxu0 %vm580_vm4, %v6888_v33 }
 0x5fe   :  { %5505 = vmatprep.mubr.msk.f32.mxu0 %vm580_vm4, %v6895_v36 }
 0x601   :  { %5506 = vmatmul.mubr.msk.f32.gmra.mrb[30].mxu0 %vm580_vm4, %v6913_v39 }
 0x602   :  { %5508 = vmatprep.mubr.msk.f32.mxu0 %vm580_vm4, %v6921_v41 }
 0x605   :  { %5509 = vmatmul.mubr.msk.f32.gmra.mrb[32].mxu0 %vm580_vm4, %v6939_v44 }
 0x606   :  { %5511 = vmatprep.mubr.msk.f32.mxu0 %vm580_vm4, %v6947_v46 }
 0x609   :  { %5512 = vmatmul.mubr.msk.f32.gmra.mrb[34].mxu0 %vm580_vm4, %v6965_v49 }
 0x60a   :  { %5514 = vmatprep.mubr.msk.f32.mxu0 %vm580_vm4, %v6973_v54 }
 0x60d   :  { %5515 = vmatmul.mubr.msk.f32.gmra.mrb[36].mxu0 %vm580_vm4, %v6991_v57 }
 0x60e   :  { %5517 = vmatprep.mubr.msk.f32.mxu0 %vm580_vm4, %v6999_v59 }
 0x611   :  { %5518 = vmatmul.mubr.msk.f32.gmra.mrb[38].mxu0 %vm580_vm4, %v7017_v4 }
 0x612   :  { %5520 = vmatprep.mubr.msk.f32.mxu0 %vm580_vm4, %v7025_v61 }
 0x615   :  { %5521 = vmatmul.mubr.msk.f32.gmra.mrb[40].mxu0 %vm580_vm4, %v8820_v53 }
 0x616   :  { %5527 = vmatprep.mubr.msk.f32.mxu0 %vm580_vm4, %v8821_v20 }
 0x619   :  { %5528 = vmatmul.mubr.msk.f32.vlgmr.msra.gmra.mrb[26].mxu0 %vm580_vm4, %v8822_v48 }
 0x61a   :  { %5530 = vmatprep.mubr.msk.f32.mxu0 %vm580_vm4, %v8823_v25  ;;  %5879 = vmatpush3.bf16.msra.mxu0 %v5876_v11 }
 0x61d   :  { %5531 = vmatmul.mubr.msk.f32.gmra.mrb[28].mxu0 %vm580_vm4, %v8824_v45 }
 0x61e   :  { %5533 = vmatprep.mubr.msk.f32.mxu0 %vm580_vm4, %v8825_v60 }
 0x621   :  { %5534 = vmatmul.mubr.msk.f32.gmra.mrb[30].mxu0 %vm580_vm4, %v8826_v12 }
 0x622   :  { %5536 = vmatprep.mubr.msk.f32.mxu0 %vm580_vm4, %v8827_v18 }
 0x625   :  { %5537 = vmatmul.mubr.msk.f32.gmra.mrb[32].mxu0 %vm580_vm4, %v8828_v32 }
 0x626   :  { %5539 = vmatprep.mubr.msk.f32.mxu0 %vm580_vm4, %v8829_v62 }
 0x629   :  { %5540 = vmatmul.mubr.msk.f32.gmra.mrb[34].mxu0 %vm580_vm4, %v8830_v34 }
 0x62a   :  { %5542 = vmatprep.mubr.msk.f32.mxu0 %vm580_vm4, %v8831_v28 }
 0x62d   :  { %5543 = vmatmul.mubr.msk.f32.gmra.mrb[36].mxu0 %vm580_vm4, %v8832_v58 }
 0x62e   :  { %5545 = vmatprep.mubr.msk.f32.mxu0 %vm580_vm4, %v8833_v16 }
 0x631   :  { %5546 = vmatmul.mubr.msk.f32.gmra.mrb[38].mxu0 %vm580_vm4, %v8834_v29 }
 0x632   :  { %5548 = vmatprep.mubr.msk.f32.mxu0 %vm580_vm4, %v8835_v7 }
 0x635   :  { %5549 = vmatmul.mubr.msk.f32.gmra.mrb[40].mxu0 %vm580_vm4, %v8836_v47 }
 0x636   :  { %5555 = vmatprep.mubr.msk.f32.mxu0 %vm580_vm4, %v6525_v13 }
 0x639   :  { %5556 = vmatmul.mubr.msk.f32.vlgmr.msra.gmra.mrb[26].mxu0 %vm580_vm4, %v6526_v42 }
 0x63a   :  { %5558 = vmatprep.mubr.msk.f32.mxu0 %vm580_vm4, %v6527_v0 }
 0x63d   :  { %5559 = vmatmul.mubr.msk.f32.gmra.mrb[28].mxu0 %vm580_vm4, %v6528_v10 }
 0x63e   :  { %5561 = vmatprep.mubr.msk.f32.mxu0 %vm580_vm4, %v6529_v50 }
 0x641   :  { %5562 = vmatmul.mubr.msk.f32.gmra.mrb[30].mxu0 %vm580_vm4, %v6530_v23 }
 0x642   :  { %5564 = vmatprep.mubr.msk.f32.mxu0 %vm580_vm4, %v6531_v27 }
 0x645   :  { %5565 = vmatmul.mubr.msk.f32.gmra.mrb[32].mxu0 %vm580_vm4, %v6532_v17 }
 0x646   :  { %5567 = vmatprep.mubr.msk.f32.mxu0 %vm580_vm4, %v6533_v31 }
 0x649   :  { %5568 = vmatmul.mubr.msk.f32.gmra.mrb[34].mxu0 %vm580_vm4, %v6534_v43 }
 0x64a   :  { %5570 = vmatprep.mubr.msk.f32.mxu0 %vm580_vm4, %v6535_v14 }
 0x64d   :  { %5571 = vmatmul.mubr.msk.f32.gmra.mrb[36].mxu0 %vm580_vm4, %v6536_v56 }
 0x64e   :  { %5573 = vmatprep.mubr.msk.f32.mxu0 %vm580_vm4, %v6537_v1 }
 0x651   :  { %5574 = vmatmul.mubr.msk.f32.gmra.mrb[38].mxu0 %vm580_vm4, %v6538_v51 }
 0x652   :  { %5576 = vmatprep.mubr.msk.f32.mxu0 %vm580_vm4, %v6539_v52 }
 0x655   :  { %5577 = vmatmul.mubr.msk.f32.gmra.mrb[40].mxu0 %vm580_vm4, %v6540_v38 }
 0x656   :  { %5752 = vmatprep.mubr.msk.f32.mxu0 %vm301_vm11, %v8819_v9 }
 0x70c   :  { %v5557_v6 = vpop.f32.mrb[26].mxu0 }
 0x70d   :  { %v7738_v35 = vadd.f32 %v5557_v6, %v4965_v19  ;;  %v2408_v63 = vpop.f32.mrb[27].mxu0 }
 0x70e   :  { %v7740_v55 = vadd.f32 %v4965_v19, %v2408_v63 }
 0x70f   :  { %v2532_v3 = vsel %vm1203_vm7, %v7738_v35, 0.0 }
 0x710   :  { %v2531_v21 = vsel %vm1203_vm7, %v7740_v55, 0.0  ;;  %v5560_v8 = vpop.f32.mrb[28].mxu0 }
 0x711   :  { %v2533_v37 = vadd.f32 %v2532_v3, %v2531_v21  ;;  %v2418_v11 = vpop.f32.mrb[29].mxu0  ;;  %v7746_v13 = vadd.f32 %v5560_v8, %v4965_v19 }
 0x712   :  { %v2513_v42 = vadd.f32 %v4965_v19, %v2418_v11 }
 0x713   :  { %v2536_v27 = vsel %vm1203_vm7, %v7746_v13, 0.0 }
 0x714   :  { %v2534_v0 = vsel %vm1203_vm7, %v2513_v42, 0.0  ;;  %v5563_v10 = vpop.f32.mrb[30].mxu0 }
 0x715   :  { %v2535_v50 = vadd.f32 %v2534_v0, %v2533_v37  ;;  %v2428_v23 = vpop.f32.mrb[31].mxu0  ;;  %v2516_v17 = vadd.f32 %v5563_v10, %v4965_v19 }
 0x716   :  { %v2515_v31 = vadd.f32 %v4965_v19, %v2428_v23 }
 0x717   :  { %v2537_v43 = vadd.f32 %v2536_v27, %v2535_v50  ;;  %v2540_v52 = vsel %vm1203_vm7, %v2516_v17, 0.0 }
 0x718   :  { %v2538_v14 = vsel %vm1203_vm7, %v2515_v31, 0.0  ;;  %v5566_v56 = vpop.f32.mrb[32].mxu0 }
 0x719   :  { %v2539_v1 = vadd.f32 %v2538_v14, %v2537_v43  ;;  %v2438_v51 = vpop.f32.mrb[33].mxu0  ;;  %v2518_v38 = vadd.f32 %v5566_v56, %v4965_v19 }
 0x71a   :  { %v2517_v15 = vadd.f32 %v4965_v19, %v2438_v51 }
 0x71b   :  { %v2541_v6 = vadd.f32 %v2540_v52, %v2539_v1  ;;  %v2544_v37 = vsel %vm1203_vm7, %v2518_v38, 0.0 }
 0x71c   :  { %v2542_v63 = vsel %vm1203_vm7, %v2517_v15, 0.0  ;;  %v5569_v3 = vpop.f32.mrb[34].mxu0 }
 0x71d   :  { %v2543_v21 = vadd.f32 %v2542_v63, %v2541_v6  ;;  %v2448_v8 = vpop.f32.mrb[35].mxu0  ;;  %v2520_v11 = vadd.f32 %v5569_v3, %v4965_v19 }
 0x71e   :  { %v2519_v0 = vadd.f32 %v4965_v19, %v2448_v8 }
 0x71f   :  { %v2545_v10 = vadd.f32 %v2544_v37, %v2543_v21  ;;  %v2548_v14 = vsel %vm1203_vm7, %v2520_v11, 0.0 }
 0x720   :  { %v2546_v50 = vsel %vm1203_vm7, %v2519_v0, 0.0  ;;  %v5572_v23 = vpop.f32.mrb[36].mxu0 }
 0x721   :  { %v2547_v27 = vadd.f32 %v2546_v50, %v2545_v10  ;;  %v2458_v43 = vpop.f32.mrb[37].mxu0  ;;  %v2522_v56 = vadd.f32 %v5572_v23, %v4965_v19 }
 0x722   :  { %v2521_v51 = vadd.f32 %v4965_v19, %v2458_v43 }
 0x723   :  { %v2549_v1 = vadd.f32 %v2548_v14, %v2547_v27  ;;  %v2552_v7 = vsel %vm1203_vm7, %v2522_v56, 0.0 }
 0x724   :  { %v2550_v52 = vsel %vm1203_vm7, %v2521_v51, 0.0  ;;  %v5575_v47 = vpop.f32.mrb[38].mxu0 }
 0x725   :  { %v2551_v6 = vadd.f32 %v2550_v52, %v2549_v1  ;;  %v2468_v63 = vpop.f32.mrb[39].mxu0  ;;  %v2524_v3 = vadd.f32 %v5575_v47, %v4965_v19 }
 0x726   :  { %v2523_v8 = vadd.f32 %v4965_v19, %v2468_v63 }
 0x727   :  { %v2553_v21 = vadd.f32 %v2552_v7, %v2551_v6  ;;  %v2556_v16 = vsel %vm1203_vm7, %v2524_v3, 0.0 }
 0x728   :  { %v2554_v37 = vsel %vm1203_vm7, %v2523_v8, 0.0  ;;  %v5578_v29 = vpop.f32.mrb[40].mxu0 }
 0x729   :  { %v2555_v10 = vadd.f32 %v2554_v37, %v2553_v21  ;;  %v2478_v50 = vpop.f32.mrb[41].mxu0  ;;  %v2526_v23 = vadd.f32 %v5578_v29, %v4965_v19 }
 0x72a   :  { %v2525_v43 = vadd.f32 %v4965_v19, %v2478_v50 }
 0x72b   :  { %v2557_v27 = vadd.f32 %v2556_v16, %v2555_v10  ;;  %v2560_v1 = vsel %vm1203_vm7, %v2526_v23, 0.0 }
 0x72c   :  { %v2558_v14 = vsel %vm1203_vm7, %v2525_v43, 0.0 }
 0x72d   :  { %v2559_v58 = vadd.f32 %v2558_v14, %v2557_v27 }
 0x72f   :  { %v2561_v52 = vadd.f32 %v2560_v1, %v2559_v58 }
 0x731   :  { %v2562_v28 = vrot.slane %v2561_v52, 4 }
 0x733   :  { %v2563_v47 = vadd.f32 %v2562_v28, %v2561_v52 }
 0x735   :  { %v2564_v63 = vrot.slane %v2563_v47, 2 }
 0x737   :  { %v2565_v7 = vadd.f32 %v2564_v63, %v2563_v47 }
 0x739   :  { %v2566_v6 = vrot.slane %v2565_v7, 1 }
 0x73b   :  { %v2567_v34 = vadd.f32 %v2566_v6, %v2565_v7 }
 0x73d   :  { %v2568_v62 = vmul.f32 0.0078125, %v2567_v34 }
 0x73f   :  { %v7764_v21 = vsub.f32 %v7740_v55, %v2568_v62  ;;  %v7767_v29 = vsub.f32 %v7738_v35, %v2568_v62  ;;  %v7769_v16 = vsub.f32 %v2513_v42, %v2568_v62  ;;  %v7772_v19 = vsub.f32 %v7746_v13, %v2568_v62 }
 0x740   :  { %v7774_v37 = vsub.f32 %v2515_v31, %v2568_v62  ;;  %v7776_v58 = vsub.f32 %v2516_v17, %v2568_v62  ;;  %v7778_v28 = vsub.f32 %v2517_v15, %v2568_v62  ;;  %v7780_v10 = vsub.f32 %v2518_v38, %v2568_v62 }
 0x741   :  { %v7782_v34 = vsub.f32 %v2519_v0, %v2568_v62  ;;  %v7784_v55 = vsub.f32 %v2520_v11, %v2568_v62  ;;  %v7786_v50 = vsub.f32 %v2521_v51, %v2568_v62  ;;  %v7788_v35 = vsub.f32 %v2522_v56, %v2568_v62 }
 0x742   :  { %v7790_v42 = vsub.f32 %v2523_v8, %v2568_v62  ;;  %v2582_v13 = vsub.f32 %v2524_v3, %v2568_v62  ;;  %v2583_v27 = vsub.f32 %v2525_v43, %v2568_v62  ;;  %v2584_v31 = vsub.f32 %v2526_v23, %v2568_v62 }
 0x743   :  { %v2585_v17 = vmul.f32 %v7764_v21, %v7764_v21  ;;  %v2586_v38 = vmul.f32 %v7767_v29, %v7767_v29  ;;  %v2587_v15 = vmul.f32 %v7769_v16, %v7769_v16  ;;  %v2588_v11 = vmul.f32 %v7772_v19, %v7772_v19 }
 0x744   :  { %v2589_v62 = vmul.f32 %v7774_v37, %v7774_v37  ;;  %v2590_v23 = vmul.f32 %v7776_v58, %v7776_v58  ;;  %v2591_v1 = vmul.f32 %v7778_v28, %v7778_v28  ;;  %v2592_v63 = vmul.f32 %v7780_v10, %v7780_v10 }
 0x745   :  { %v2601_v0 = vsel %vm1203_vm7, %v2585_v17, 0.0  ;;  %v2602_v56 = vsel %vm1203_vm7, %v2586_v38, 0.0  ;;  %v2604_v3 = vsel %vm1203_vm7, %v2587_v15, 0.0  ;;  %v2606_v43 = vsel %vm1203_vm7, %v2588_v11, 0.0 }
 0x746   :  { %v2603_v51 = vadd.f32 %v2602_v56, %v2601_v0  ;;  %v2608_v52 = vsel %vm1203_vm7, %v2589_v62, 0.0  ;;  %v2610_v7 = vsel %vm1203_vm7, %v2590_v23, 0.0  ;;  %v2593_v17 = vmul.f32 %v7782_v34, %v7782_v34 }
 0x747   :  { %v2612_v38 = vsel %vm1203_vm7, %v2591_v1, 0.0  ;;  %v2594_v11 = vmul.f32 %v7784_v55, %v7784_v55  ;;  %v2614_v0 = vsel %vm1203_vm7, %v2592_v63, 0.0 }
 0x748   :  { %v2605_v8 = vadd.f32 %v2604_v3, %v2603_v51  ;;  %v2595_v51 = vmul.f32 %v7786_v50, %v7786_v50  ;;  %v2616_v62 = vsel %vm1203_vm7, %v2593_v17, 0.0 }
 0x749   :  { %v2618_v23 = vsel %vm1203_vm7, %v2594_v11, 0.0 }
 0x74a   :  { %v2607_v14 = vadd.f32 %v2606_v43, %v2605_v8  ;;  %v2596_v8 = vmul.f32 %v7788_v35, %v7788_v35  ;;  %v2620_v1 = vsel %vm1203_vm7, %v2595_v51, 0.0 }
 0x74c   :  { %v2609_v47 = vadd.f32 %v2608_v52, %v2607_v14  ;;  %v2597_v14 = vmul.f32 %v7790_v42, %v7790_v42  ;;  %v2622_v63 = vsel %vm1203_vm7, %v2596_v8, 0.0 }
 0x74e   :  { %v2611_v6 = vadd.f32 %v2610_v7, %v2609_v47  ;;  %v2598_v47 = vmul.f32 %v2582_v13, %v2582_v13  ;;  %v2624_v17 = vsel %vm1203_vm7, %v2597_v14, 0.0 }
 0x750   :  { %v2613_v15 = vadd.f32 %v2612_v38, %v2611_v6  ;;  %v2599_v6 = vmul.f32 %v2583_v27, %v2583_v27 }
 0x752   :  { %v2615_v56 = vadd.f32 %v2614_v0, %v2613_v15  ;;  %v2600_v15 = vmul.f32 %v2584_v31, %v2584_v31  ;;  %v2626_v0 = vsel %vm1203_vm7, %v2598_v47, 0.0  ;;  %v2628_v11 = vsel %vm1203_vm7, %v2599_v6, 0.0  ;;  %v7839_v47 = vld [vmem:[%s8733_s12 + $0x1] ss:$0 sm:$0xff] }
 0x754   :  { %v2617_v3 = vadd.f32 %v2616_v62, %v2615_v56 }
 0x756   :  { %v2619_v43 = vadd.f32 %v2618_v23, %v2617_v3  ;;  %v2630_v3 = vsel %vm1203_vm7, %v2600_v15, 0.0 }
 0x758   :  { %v2621_v52 = vadd.f32 %v2620_v1, %v2619_v43 }
 0x75a   :  { %v2623_v7 = vadd.f32 %v2622_v63, %v2621_v52 }
 0x75c   :  { %v2625_v38 = vadd.f32 %v2624_v17, %v2623_v7 }
 0x75e   :  { %v2627_v56 = vadd.f32 %v2626_v0, %v2625_v38 }
 0x760   :  { %v2629_v62 = vadd.f32 %v2628_v11, %v2627_v56 }
 0x762   :  { %v2631_v23 = vadd.f32 %v2630_v3, %v2629_v62 }
 0x764   :  { %v2632_v51 = vrot.slane %v2631_v23, 4 }
 0x766   :  { %v2633_v43 = vadd.f32 %v2632_v51, %v2631_v23 }
 0x768   :  { %v2634_v1 = vrot.slane %v2633_v43, 2 }
 0x76a   :  { %v2635_v32 = vadd.f32 %v2634_v1, %v2633_v43 }
 0x76c   :  { %v2636_v8 = vrot.slane %v2635_v32, 1 }
 0x76e   :  { %v2637_v52 = vadd.f32 %v2636_v8, %v2635_v32 }
 0x770   :  { %v2638_v63 = vmul.f32 0.0078125, %v2637_v52 }
 0x772   :  { %v2639_v18 = vadd.f32 1e-05, %v2638_v63 }
 0x774   :  { %6237 = vrsqrt.f32 %v2639_v18  ;;  %v7851_v18 = vld [vmem:[%s8734_s13 + $0x1] ss:$0 sm:$0xff] }
 0x77e   :  { %v7834_v14 = vpop.eup %6237 }
 0x77f   :  { %v2654_v7 = vmul.f32 %v7834_v14, %v2582_v13  ;;  %v2655_v6 = vmul.f32 %v7834_v14, %v2583_v27  ;;  %v7844_v17 = vmul.f32 %v7834_v14, %v2584_v31  ;;  %v2642_v32 = vmul.f32 %v7834_v14, %v7767_v29 }
 0x780   :  { %v2641_v38 = vmul.f32 %v7834_v14, %v7764_v21  ;;  %v2644_v15 = vmul.f32 %v7834_v14, %v7772_v19  ;;  %v2643_v13 = vmul.f32 %v7834_v14, %v7769_v16  ;;  %v2646_v27 = vmul.f32 %v7834_v14, %v7776_v58 }
 0x781   :  { %v2664_v31 = vmul.f32 %v7839_v47, %v2642_v32  ;;  %v2645_v29 = vmul.f32 %v7834_v14, %v7774_v37  ;;  %v2648_v0 = vmul.f32 %v7834_v14, %v7780_v10 }
 0x782   :  { %v2663_v56 = vmul.f32 %v7839_v47, %v2641_v38  ;;  %v2666_v21 = vmul.f32 %v7839_v47, %v2644_v15  ;;  %v2665_v19 = vmul.f32 %v7839_v47, %v2643_v13  ;;  %v2668_v11 = vmul.f32 %v7839_v47, %v2646_v27 }
 0x783   :  { %v7871_v16 = vadd.f32 %v7851_v18, %v2664_v31  ;;  %v2667_v58 = vmul.f32 %v7839_v47, %v2645_v29  ;;  %v2670_v62 = vmul.f32 %v7839_v47, %v2648_v0 }
 0x784   :  { %v7876_v37 = vadd.f32 %v7851_v18, %v2663_v56  ;;  %v7879_v10 = vadd.f32 %v7851_v18, %v2666_v21  ;;  %v7882_v3 = vadd.f32 %v7851_v18, %v2665_v19  ;;  %v7885_v23 = vadd.f32 %v7851_v18, %v2668_v11 }
 0x785   :  { %v2862_v51 = vmin.f32 %v7871_v16, 20.0  ;;  %v7889_v43 = vadd.f32 %v7851_v18, %v2667_v58  ;;  %v7894_v52 = vadd.f32 %v7851_v18, %v2670_v62  ;;  %v2647_v21 = vmul.f32 %v7834_v14, %v7778_v28 }
 0x786   :  { %v2861_v1 = vmin.f32 %v7876_v37, 20.0  ;;  %v2864_v8 = vmin.f32 %v7879_v10, 20.0  ;;  %v2863_v32 = vmin.f32 %v7882_v3, 20.0  ;;  %v2866_v38 = vmin.f32 %v7885_v23, 20.0 }
 0x787   :  { %v2895_v63 = vmul.f32 1.442695, %v2862_v51  ;;  %v2865_v27 = vmin.f32 %v7889_v43, 20.0  ;;  %v2868_v56 = vmin.f32 %v7894_v52, 20.0  ;;  %v2650_v19 = vmul.f32 %v7834_v14, %v7784_v55 }
 0x788   :  { %v2893_v15 = vmul.f32 1.442695, %v2861_v1  ;;  %v2899_v13 = vmul.f32 1.442695, %v2864_v8  ;;  %v2897_v31 = vmul.f32 1.442695, %v2863_v32  ;;  %v2649_v11 = vmul.f32 %v7834_v14, %v7782_v34 }
 0x789   :  { %6239 = vpow2.f32 %v2895_v63  ;;  %v2903_v29 = vmul.f32 1.442695, %v2866_v38  ;;  %v2901_v0 = vmul.f32 1.442695, %v2865_v27  ;;  %v2907_v58 = vmul.f32 1.442695, %v2868_v56 }
 0x78a   :  { %6241 = vpow2.f32 %v2893_v15  ;;  %v2652_v62 = vmul.f32 %v7834_v14, %v7788_v35  ;;  %v2651_v51 = vmul.f32 %v7834_v14, %v7786_v50  ;;  %v2669_v1 = vmul.f32 %v7839_v47, %v2647_v21 }
 0x78b   :  { %6243 = vpow2.f32 %v2899_v13  ;;  %v2672_v8 = vmul.f32 %v7839_v47, %v2650_v19  ;;  %v2671_v28 = vmul.f32 %v7839_v47, %v2649_v11  ;;  %v2677_v35 = vmul.f32 %v7839_v47, %v2655_v6 }
 0x78c   :  { %6245 = vpow2.f32 %v2897_v31  ;;  %v2674_v55 = vmul.f32 %v7839_v47, %v2652_v62  ;;  %v7915_v34 = vadd.f32 %v7851_v18, %v2669_v1  ;;  %v2673_v50 = vmul.f32 %v7839_v47, %v2651_v51 }
 0x78d   :  { %6247 = vpow2.f32 %v2903_v29  ;;  %v7918_v63 = vadd.f32 %v7851_v18, %v2672_v8  ;;  %v7924_v38 = vadd.f32 %v7851_v18, %v2671_v28  ;;  %v2676_v15 = vmul.f32 %v7839_v47, %v2654_v7 }
 0x78e   :  { %6249 = vpow2.f32 %v2901_v0  ;;  %v2867_v32 = vmin.f32 %v7915_v34, 20.0  ;;  %v7928_v13 = vadd.f32 %v7851_v18, %v2674_v55  ;;  %v2653_v27 = vmul.f32 %v7834_v14, %v7790_v42 }
 0x78f   :  { %6251 = vpow2.f32 %v2907_v58  ;;  %v2870_v0 = vmin.f32 %v7918_v63, 20.0  ;;  %v7934_v56 = vadd.f32 %v7851_v18, %v2677_v35  ;;  %v7937_v19 = vadd.f32 %v7851_v18, %v2673_v50 }
 0x790   :  { %v2905_v29 = vmul.f32 1.442695, %v2867_v32  ;;  %v2869_v58 = vmin.f32 %v7924_v38, 20.0  ;;  %v7941_v62 = vadd.f32 %v7851_v18, %v2676_v15  ;;  %v2872_v51 = vmin.f32 %v7928_v13, 20.0 }
 0x791   :  { %v2675_v1 = vmul.f32 %v7839_v47, %v2653_v27  ;;  %v2911_v55 = vmul.f32 1.442695, %v2870_v0  ;;  %v2678_v35 = vmul.f32 %v7839_v47, %v7844_v17  ;;  %v2871_v15 = vmin.f32 %v7937_v19, 20.0 }
 0x792   :  { %6253 = vpow2.f32 %v2905_v29  ;;  %v2874_v27 = vmin.f32 %v7941_v62, 20.0  ;;  %v2915_v47 = vmul.f32 1.442695, %v2872_v51  ;;  %vm2878_vm11 = vcmp.gt.f32.partialorder %v7871_v16, 20.0 }
 0x793   :  { %v6240_v31 = vpop.eup %6239  ;;  %vm2877_vm6 = vcmp.gt.f32.partialorder %v7876_v37, 20.0  ;;  %vm2880_vm8 = vcmp.gt.f32.partialorder %v7879_v10, 20.0  ;;  %vm2879_vm9 = vcmp.gt.f32.partialorder %v7882_v3, 20.0  ;;  %vm2882_vm10 = vcmp.gt.f32.partialorder %v7885_v23, 20.0 }
 0x794   :  { %v6242_v6 = vpop.eup %6241  ;;  %v2926_v21 = vadd.f32 1.0, %v6240_v31  ;;  %v7949_v31 = vadd.f32 %v7851_v18, %v2675_v1  ;;  %v2875_v1 = vmin.f32 %v7934_v56, 20.0  ;;  %vm2881_vm13 = vcmp.gt.f32.partialorder %v7889_v43, 20.0 }
 0x795   :  { %v6244_v11 = vpop.eup %6243  ;;  %v2925_v7 = vadd.f32 1.0, %v6242_v6  ;;  %vm2884_vm14 = vcmp.gt.f32.partialorder %v7894_v52, 20.0  ;;  %vm2883_vm15 = vcmp.gt.f32.partialorder %v7915_v34, 20.0  ;;  %vm2886_vm0 = vcmp.gt.f32.partialorder %v7918_v63, 20.0 }
 0x796   :  { %v6246_v42 = vpop.eup %6245  ;;  %6255 = vlog2.f32 %v2926_v21  ;;  %v2928_v14 = vadd.f32 1.0, %v6244_v11  ;;  %v7953_v21 = vadd.f32 %v7851_v18, %v2678_v35  ;;  %v2909_v11 = vmul.f32 1.442695, %v2869_v58 }
 0x797   :  { %v6248_v8 = vpop.eup %6247  ;;  %6257 = vlog2.f32 %v2925_v7  ;;  %v2927_v28 = vadd.f32 1.0, %v6246_v42  ;;  %v2873_v17 = vmin.f32 %v7949_v31, 20.0  ;;  %v2913_v7 = vmul.f32 1.442695, %v2871_v15 }
 0x798   :  { %v6250_v50 = vpop.eup %6249  ;;  %6259 = vlog2.f32 %v2928_v14  ;;  %v2930_v32 = vadd.f32 1.0, %v6248_v8  ;;  %v2876_v42 = vmin.f32 %v7953_v21, 20.0  ;;  %v2919_v14 = vmul.f32 1.442695, %v2874_v27 }
 0x799   :  { %v6252_v29 = vpop.eup %6251  ;;  %6261 = vlog2.f32 %v2927_v28  ;;  %v2929_v6 = vadd.f32 1.0, %v6250_v50  ;;  %v2917_v18 = vmul.f32 1.442695, %v2873_v17  ;;  %vm2885_vm2 = vcmp.gt.f32.partialorder %v7924_v38, 20.0 }
 0x79a   :  { %6263 = vlog2.f32 %v2930_v32  ;;  %v2932_v0 = vadd.f32 1.0, %v6252_v29  ;;  %v2923_v58 = vmul.f32 1.442695, %v2876_v42  ;;  %v2921_v32 = vmul.f32 1.442695, %v2875_v1 }
 0x79b   :  { %6265 = vlog2.f32 %v2929_v6  ;;  %vm2888_vm3 = vcmp.gt.f32.partialorder %v7928_v13, 20.0  ;;  %vm2887_vm5 = vcmp.gt.f32.partialorder %v7937_v19, 20.0 }
 0x79c   :  { %6267 = vlog2.f32 %v2932_v0  ;;  %v6254_v8 = vpop.eup %6253 }
 0x79d   :  { %6269 = vpow2.f32 %v2911_v55  ;;  %v2931_v35 = vadd.f32 1.0, %v6254_v8 }
 0x79e   :  { %6271 = vpow2.f32 %v2909_v11 }
 0x79f   :  { %6273 = vpow2.f32 %v2915_v47 }
 0x7a0   :  { %v6256_v28 = vpop.eup %6255  ;;  %6275 = vpow2.f32 %v2913_v7 }
 0x7a1   :  { %v6258_v50 = vpop.eup %6257  ;;  %v2944_v51 = vmul.f32 0.6931472, %v6256_v28  ;;  %6277 = vpow2.f32 %v2919_v14 }
 0x7a2   :  { %v6260_v29 = vpop.eup %6259  ;;  %v2942_v15 = vmul.f32 0.6931472, %v6258_v50  ;;  %6279 = vlog2.f32 %v2931_v35 }
 0x7a3   :  { %v6262_v55 = vpop.eup %6261  ;;  %v2974_v6 = vsel %vm2878_vm11, %v7871_v16, %v2944_v51  ;;  %v2948_v27 = vmul.f32 0.6931472, %v6260_v29  ;;  %6281 = vpow2.f32 %v2917_v18  ;;  %vm2890_vm11 = vcmp.gt.f32.partialorder %v7941_v62, 20.0 }
 0x7a4   :  { %v6264_v0 = vpop.eup %6263  ;;  %3007 = vrot.lane.b32.xlu1 %v2974_v6, %s6559_s6  ;;  %v2973_v11 = vsel %vm2877_vm6, %v7876_v37, %v2942_v15  ;;  %v2946_v47 = vmul.f32 0.6931472, %v6262_v55  ;;  %6283 = vpow2.f32 %v2923_v58  ;;  %vm2889_vm6 = vcmp.gt.f32.partialorder %v7949_v31, 20.0 }
 0x7a5   :  { %v6266_v17 = vpop.eup %6265  ;;  %3005 = vrot.lane.b32.xlu0 %v2973_v11, %s6559_s6  ;;  %6285 = vpow2.f32 %v2921_v32  ;;  %v2976_v14 = vsel %vm2880_vm8, %v7879_v10, %v2948_v27  ;;  %v2952_v1 = vmul.f32 0.6931472, %v6264_v0  ;;  %vm2892_vm8 = vcmp.gt.f32.partialorder %v7953_v21, 20.0 }
 0x7a6   :  { %v6268_v7 = vpop.eup %6267  ;;  %v2975_v18 = vsel %vm2879_vm9, %v7882_v3, %v2946_v47  ;;  %v2950_v28 = vmul.f32 0.6931472, %v6266_v17  ;;  %vm2891_vm9 = vcmp.gt.f32.partialorder %v7934_v56, 20.0 }
 0x7a7   :  { %v6270_v42 = vpop.eup %6269  ;;  %v2978_v15 = vsel %vm2882_vm10, %v7885_v23, %v2952_v1  ;;  %v2956_v55 = vmul.f32 0.6931472, %v6268_v7  ;;  %vm2766_vm10 = vcmp.ge.f32.partialorder %v7871_v16, 0.0 }
 0x7a8   :  { %v6272_v8 = vpop.eup %6271  ;;  %3011 = vrot.lane.b32.xlu1 %v2976_v14, %s6559_s6  ;;  %v2934_v35 = vadd.f32 1.0, %v6270_v42  ;;  %v2977_v0 = vsel %vm2881_vm13, %v7889_v43, %v2950_v28  ;;  %vm2765_vm13 = vcmp.ge.f32.partialorder %v7876_v37, 0.0 }
 0x7a9   :  { %v6274_v58 = vpop.eup %6273  ;;  %3009 = vrot.lane.b32.xlu0 %v2975_v18, %s6559_s6  ;;  %v2933_v50 = vadd.f32 1.0, %v6272_v8  ;;  %v2980_v1 = vsel %vm2884_vm14, %v7894_v52, %v2956_v55  ;;  %vm2768_vm14 = vcmp.ge.f32.partialorder %v7879_v10, 0.0 }
 0x7aa   :  { %v6276_v51 = vpop.eup %6275  ;;  %6287 = vlog2.f32 %v2934_v35  ;;  %v2936_v32 = vadd.f32 1.0, %v6274_v58 }
 0x7ab   :  { %v6278_v29 = vpop.eup %6277  ;;  %6289 = vlog2.f32 %v2933_v50  ;;  %v2935_v6 = vadd.f32 1.0, %v6276_v51 }
 0x7ac   :  { %v6280_v27 = vpop.eup %6279  ;;  %3015 = vrot.lane.b32.xlu1 %v2978_v15, %s6559_s6  ;;  %6291 = vlog2.f32 %v2936_v32  ;;  %v2938_v11 = vadd.f32 1.0, %v6278_v29 }
 0x7ad   :  { %v6282_v47 = vpop.eup %6281  ;;  %3013 = vrot.lane.b32.xlu0 %v2977_v0, %s6559_s6  ;;  %v2954_v17 = vmul.f32 0.6931472, %v6280_v27  ;;  %6293 = vlog2.f32 %v2935_v6 }
 0x7ae   :  { %v6284_v42 = vpop.eup %6283  ;;  %6295 = vlog2.f32 %v2938_v11  ;;  %v2937_v14 = vadd.f32 1.0, %v6282_v47 }
 0x7af   :  { %v6286_v7 = vpop.eup %6285  ;;  %v2940_v8 = vadd.f32 1.0, %v6284_v42  ;;  %v2979_v18 = vsel %vm2883_vm15, %v7915_v34, %v2954_v17  ;;  %vm2767_vm15 = vcmp.ge.f32.partialorder %v7882_v3, 0.0 }
 0x7b0   :  { %3019 = vrot.lane.b32.xlu1 %v2980_v1, %s6559_s6  ;;  %6297 = vlog2.f32 %v2937_v14  ;;  %v2939_v28 = vadd.f32 1.0, %v6286_v7 }
 0x7b1   :  { %3017 = vrot.lane.b32.xlu0 %v2979_v18, %s6559_s6  ;;  %6299 = vlog2.f32 %v2940_v8 }
 0x7b2   :  { %6301 = vlog2.f32 %v2939_v28 }
 0x7b4   :  { %v6288_v35 = vpop.eup %6287 }
 0x7b5   :  { %v6290_v58 = vpop.eup %6289  ;;  %v2960_v50 = vmul.f32 0.6931472, %v6288_v35 }
 0x7b6   :  { %v6292_v51 = vpop.eup %6291  ;;  %v2958_v32 = vmul.f32 0.6931472, %v6290_v58 }
 0x7b7   :  { %v6294_v29 = vpop.eup %6293  ;;  %v2982_v15 = vsel %vm2886_vm0, %v7918_v63, %v2960_v50  ;;  %v2964_v55 = vmul.f32 0.6931472, %v6292_v51  ;;  %v2702_v51 = vand.u32 2147483647, %v7871_v16  ;;  %vm2770_vm0 = vcmp.ge.f32.partialorder %v7885_v23, 0.0 }
 0x7b8   :  { %v6296_v6 = vpop.eup %6295  ;;  %3023 = vrot.lane.b32.xlu1 %v2982_v15, %s6559_s6  ;;  %v2981_v27 = vsel %vm2885_vm2, %v7924_v38, %v2958_v32  ;;  %v2962_v0 = vmul.f32 0.6931472, %v6294_v29  ;;  %v2701_v32 = vand.u32 2147483647, %v7876_v37  ;;  %v2704_v29 = vand.u32 2147483647, %v7879_v10 }
 0x7b9   :  { %3021 = vrot.lane.b32.xlu0 %v2981_v27, %s6559_s6  ;;  %v2984_v47 = vsel %vm2888_vm3, %v7928_v13, %v2964_v55  ;;  %v2968_v17 = vmul.f32 0.6931472, %v6296_v6  ;;  %v2718_v15 = vsub.f32 0.0, %v2702_v51  ;;  %v2703_v6 = vand.u32 2147483647, %v7882_v3 }
 0x7ba   :  { %v6298_v11 = vpop.eup %6297  ;;  %v2983_v14 = vsel %vm2887_vm5, %v7937_v19, %v2962_v0  ;;  %v2717_v55 = vsub.f32 0.0, %v2701_v32  ;;  %v2720_v27 = vsub.f32 0.0, %v2704_v29  ;;  %v2706_v0 = vand.u32 2147483647, %v7885_v23 }
 0x7bb   :  { %v6300_v42 = vpop.eup %6299  ;;  %v2966_v7 = vmul.f32 0.6931472, %v6298_v11  ;;  %v2986_v8 = vsel %vm2890_vm11, %v7941_v62, %v2968_v17  ;;  %v2735_v11 = vmul.f32 1.442695, %v2718_v15  ;;  %v2719_v17 = vsub.f32 0.0, %v2703_v6 }
 0x7bc   :  { %3027 = vrot.lane.b32.xlu1 %v2984_v47, %s6559_s6  ;;  %v6302_v1 = vpop.eup %6301  ;;  %v2972_v18 = vmul.f32 0.6931472, %v6300_v42  ;;  %v2733_v47 = vmul.f32 1.442695, %v2717_v55  ;;  %v2705_v42 = vand.u32 2147483647, %v7889_v43 }
 0x7bd   :  { %3025 = vrot.lane.b32.xlu0 %v2983_v14, %s6559_s6  ;;  %v2985_v28 = vsel %vm2889_vm6, %v7949_v31, %v2966_v7  ;;  %v2970_v35 = vmul.f32 0.6931472, %v6302_v1  ;;  %v2739_v14 = vmul.f32 1.442695, %v2720_v27  ;;  %v2722_v7 = vsub.f32 0.0, %v2706_v0 }
 0x7be   :  { %v2988_v58 = vsel %vm2892_vm8, %v7953_v21, %v2972_v18  ;;  %6303 = vpow2.f32 %v2735_v11  ;;  %v2708_v1 = vand.u32 2147483647, %v7894_v52  ;;  %v2721_v18 = vsub.f32 0.0, %v2705_v42 }
 0x7bf   :  { %v2987_v50 = vsel %vm2891_vm9, %v7934_v56, %v2970_v35  ;;  %6305 = vpow2.f32 %v2733_v47  ;;  %v2743_v35 = vmul.f32 1.442695, %v2722_v7  ;;  %v2710_v29 = vand.u32 2147483647, %v7918_v63 }
 0x7c0   :  { %3031 = vrot.lane.b32.xlu1 %v2986_v8, %s6559_s6  ;;  %v2737_v8 = vmul.f32 1.442695, %v2719_v17  ;;  %6307 = vpow2.f32 %v2739_v14  ;;  %v2709_v55 = vand.u32 2147483647, %v7924_v38  ;;  %v2712_v47 = vand.u32 2147483647, %v7928_v13 }
 0x7c1   :  { %3029 = vrot.lane.b32.xlu0 %v2985_v28, %s6559_s6  ;;  %v2707_v28 = vand.u32 2147483647, %v7915_v34  ;;  %v2726_v11 = vsub.f32 0.0, %v2710_v29  ;;  %v2711_v14 = vand.u32 2147483647, %v7937_v19  ;;  %vm2769_vm2 = vcmp.ge.f32.partialorder %v7889_v43, 0.0 }
 0x7c2   :  { %6309 = vpow2.f32 %v2737_v8  ;;  %v2725_v42 = vsub.f32 0.0, %v2709_v55  ;;  %vm2772_vm3 = vcmp.ge.f32.partialorder %v7894_v52, 0.0  ;;  %vm2771_vm5 = vcmp.ge.f32.partialorder %v7915_v34, 0.0 }
 0x7c3   :  { %v2723_v51 = vsub.f32 0.0, %v2707_v28  ;;  %6311 = vpow2.f32 %v2743_v35  ;;  %v2751_v35 = vmul.f32 1.442695, %v2726_v11  ;;  %v2716_v11 = vand.u32 2147483647, %v7953_v21 }
 0x7c4   :  { %3035 = vrot.lane.b32.xlu1 %v2988_v58, %s6559_s6  ;;  %v2724_v58 = vsub.f32 0.0, %v2708_v1  ;;  %vm2774_vm11 = vcmp.ge.f32.partialorder %v7918_v63, 0.0  ;;  %vm2773_vm6 = vcmp.ge.f32.partialorder %v7924_v38, 0.0  ;;  %vm2776_vm8 = vcmp.ge.f32.partialorder %v7928_v13, 0.0 }
 0x7c5   :  { %3033 = vrot.lane.b32.xlu0 %v2987_v50, %s6559_s6  ;;  %v2741_v50 = vmul.f32 1.442695, %v2721_v18  ;;  %v2745_v15 = vmul.f32 1.442695, %v2723_v51  ;;  %v2714_v18 = vand.u32 2147483647, %v7941_v62 }
 0x7c6   :  { %v2747_v32 = vmul.f32 1.442695, %v2724_v58  ;;  %v2728_v58 = vsub.f32 0.0, %v2712_v47  ;;  %v2749_v51 = vmul.f32 1.442695, %v2725_v42  ;;  %vm2775_vm9 = vcmp.ge.f32.partialorder %v7937_v19, 0.0 }
 0x7c7   :  { %6313 = vpow2.f32 %v2741_v50  ;;  %v2713_v50 = vand.u32 2147483647, %v7949_v31  ;;  %v2730_v12 = vsub.f32 0.0, %v2714_v18 }
 0x7c8   :  { %v6304_v6 = vpop.eup %6303  ;;  %6315 = vpow2.f32 %v2747_v32  ;;  %v2727_v32 = vsub.f32 0.0, %v2711_v14  ;;  %v2755_v60 = vmul.f32 1.442695, %v2728_v58 }
 0x7c9   :  { %v6306_v27 = vpop.eup %6305  ;;  %v2782_v17 = vadd.f32 1.0, %v6304_v6  ;;  %6317 = vpow2.f32 %v2745_v15  ;;  %v2729_v45 = vsub.f32 0.0, %v2713_v50 }
 0x7ca   :  { %v8016_v0 = vpop.eup %6307  ;;  %v2781_v7 = vadd.f32 1.0, %v6306_v27  ;;  %v2753_v47 = vmul.f32 1.442695, %v2727_v32 }
 0x7cb   :  { %v2784_v8 = vadd.f32 1.0, %v8016_v0  ;;  %6319 = vrcp.f32 %v2782_v17  ;;  %v2715_v17 = vand.u32 2147483647, %v7934_v56  ;;  %v2757_v18 = vmul.f32 1.442695, %v2729_v45 }
 0x7cc   :  { %v8020_v1 = vpop.eup %6309  ;;  %6321 = vrcp.f32 %v2781_v7 }
 0x7cd   :  { %v8024_v28 = vpop.eup %6311  ;;  %v2783_v29 = vadd.f32 1.0, %v8020_v1  ;;  %6323 = vrcp.f32 %v2784_v8  ;;  %v2759_v8 = vmul.f32 1.442695, %v2730_v12  ;;  %v2731_v50 = vsub.f32 0.0, %v2715_v17 }
 0x7ce   :  { %v2786_v55 = vadd.f32 1.0, %v8024_v28  ;;  %6325 = vpow2.f32 %v2751_v35  ;;  %v2732_v35 = vsub.f32 0.0, %v2716_v11 }
 0x7cf   :  { %6327 = vpow2.f32 %v2749_v51  ;;  %v2761_v20 = vmul.f32 1.442695, %v2731_v50 }
 0x7d0   :  { %6329 = vrcp.f32 %v2783_v29  ;;  %v2763_v29 = vmul.f32 1.442695, %v2732_v35 }
 0x7d1   :  { %v8028_v15 = vpop.eup %6313  ;;  %6331 = vrcp.f32 %v2786_v55 }
 0x7d2   :  { %v8033_v42 = vpop.eup %6315  ;;  %v2785_v14 = vadd.f32 1.0, %v8028_v15  ;;  %6333 = vpow2.f32 %v2755_v60 }
 0x7d3   :  { %v8036_v7 = vpop.eup %6317  ;;  %v2788_v58 = vadd.f32 1.0, %v8033_v42  ;;  %6335 = vpow2.f32 %v2753_v47 }
 0x7d4   :  { %6337 = vrcp.f32 %v2785_v14  ;;  %v2787_v51 = vadd.f32 1.0, %v8036_v7 }
 0x7d5   :  { %v6320_v32 = vpop.eup %6319  ;;  %6339 = vpow2.f32 %v2759_v8 }
 0x7d6   :  { %v6322_v25 = vpop.eup %6321  ;;  %6341 = vpow2.f32 %v2757_v18  ;;  %v2830_v60 = vmul.f32 %v6320_v32, %v6304_v6 }
 0x7d7   :  { %v6324_v48 = vpop.eup %6323  ;;  %6343 = vrcp.f32 %v2788_v58  ;;  %v2829_v12 = vmul.f32 %v6322_v25, %v6306_v27 }
 0x7d8   :  { %v8040_v55 = vpop.eup %6325  ;;  %6345 = vrcp.f32 %v2787_v51  ;;  %v2846_v18 = vsel %vm2766_vm10, %v6320_v32, %v2830_v60  ;;  %v2832_v6 = vmul.f32 %v6324_v48, %v8016_v0  ;;  %vm2778_vm10 = vcmp.ge.f32.partialorder %v7941_v62, 0.0 }
 0x7d9   :  { %v8042_v45 = vpop.eup %6327  ;;  %6347 = vpow2.f32 %v2763_v29  ;;  %v2790_v17 = vadd.f32 1.0, %v8040_v55  ;;  %v2845_v51 = vsel %vm2765_vm13, %v6322_v25, %v2829_v12  ;;  %vm2777_vm13 = vcmp.ge.f32.partialorder %v7949_v31, 0.0 }
 0x7da   :  { %v6330_v11 = vpop.eup %6329  ;;  %6349 = vpow2.f32 %v2761_v20  ;;  %v2789_v35 = vadd.f32 1.0, %v8042_v45 }
 0x7db   :  { %v6332_v47 = vpop.eup %6331  ;;  %v2831_v16 = vmul.f32 %v6330_v11, %v8020_v1  ;;  %6351 = vrcp.f32 %v2790_v17 }
 0x7dc   :  { %v8046_v14 = vpop.eup %6333  ;;  %v2834_v37 = vmul.f32 %v6332_v47, %v8024_v28  ;;  %6353 = vrcp.f32 %v2789_v35 }
 0x7dd   :  { %v8051_v58 = vpop.eup %6335  ;;  %v2792_v0 = vadd.f32 1.0, %v8046_v14  ;;  %v2847_v10 = vsel %vm2767_vm15, %v6330_v11, %v2831_v16  ;;  %vm2779_vm15 = vcmp.ge.f32.partialorder %v7934_v56, 0.0  ;;  %v4977_v56 = vld [vmem:[%s8796_s3 + $0x48] sm:$0xff] }
 0x7de   :  { %v6338_v29 = vpop.eup %6337  ;;  %v2791_v1 = vadd.f32 1.0, %v8051_v58  ;;  %v2850_v28 = vsel %vm2770_vm0, %v6332_v47, %v2834_v37 }
 0x7df   :  { %v8055_v20 = vpop.eup %6339  ;;  %6355 = vrcp.f32 %v2792_v0 }
 0x7e0   :  { %v8060_v32 = vpop.eup %6341  ;;  %6357 = vrcp.f32 %v2791_v1 }
 0x7e1   :  { %v6344_v12 = vpop.eup %6343 }
 0x7e2   :  { %v6346_v3 = vpop.eup %6345  ;;  %v2836_v11 = vmul.f32 %v6344_v12, %v8033_v42 }
 0x7e3   :  { %v2835_v47 = vmul.f32 %v6346_v3, %v8036_v7 }
 0x7e4   :  { %v2852_v37 = vsel %vm2772_vm3, %v6344_v12, %v2836_v11 }
 0x816   :  { %v3008_v8 = vpop.permute.xlu1 %3007 }
 0x817   :  { %v3054_v27 = vmul.f32 %v3008_v8, %v2846_v18  ;;  %v3006_v50 = vpop.permute.xlu0 %3005  ;;  %v2848_v8 = vsel %vm2768_vm14, %v6324_v48, %v2832_v6  ;;  %v8067_v48 = vpop.eup %6347  ;;  %vm2780_vm14 = vcmp.ge.f32.partialorder %v7953_v21, 0.0  ;;  %v4976_v21 = vld [vmem:[%s8796_s3 + $0x40] sm:$0xff] }
 0x818   :  { %v3053_v53 = vmul.f32 %v3006_v50, %v2845_v51  ;;  %v2833_v51 = vmul.f32 %v6338_v29, %v8028_v15  ;;  %v2793_v15 = vadd.f32 1.0, %v8060_v32  ;;  %v8071_v35 = vpop.eup %6349 }
 0x81a   :  { %v5880_v60 = vpack.c.bf16 %v3054_v27, %v3053_v53  ;;  %v3012_v25 = vpop.permute.xlu1 %3011  ;;  %v2794_v53 = vadd.f32 1.0, %v8055_v20  ;;  %v2849_v23 = vsel %vm2769_vm2, %v6338_v29, %v2833_v51  ;;  %v6352_v29 = vpop.eup %6351 }
 0x81b   :  { %v3056_v18 = vmul.f32 %v3012_v25, %v2848_v8  ;;  %v3010_v50 = vpop.permute.xlu0 %3009  ;;  %v2851_v25 = vsel %vm2771_vm5, %v6346_v3, %v2835_v47  ;;  %v6354_v1 = vpop.eup %6353  ;;  %v2838_v34 = vmul.f32 %v6352_v29, %v8040_v55 }
 0x81c   :  { %v3055_v61 = vmul.f32 %v3010_v50, %v2847_v10  ;;  %5881 = vmatprep.subr.bf16.mxu1 %v5880_v60  ;;  %6359 = vrcp.f32 %v2794_v53  ;;  %v6356_v10 = vpop.eup %6355  ;;  %v2837_v12 = vmul.f32 %v6354_v1, %v8042_v45 }
 0x81d   :  { %5883 = vmatpush3.bf16.msra.mxu1 %v5880_v60  ;;  %6361 = vrcp.f32 %v2793_v15  ;;  %v2795_v60 = vadd.f32 1.0, %v8071_v35  ;;  %v6358_v50 = vpop.eup %6357  ;;  %v2854_v51 = vsel %vm2774_vm11, %v6352_v29, %v2838_v34  ;;  %v5912_v34 = vpack.c.bf16 %v4977_v56, %v4976_v21 }
 0x81e   :  { %v5884_v17 = vpack.c.bf16 %v3056_v18, %v3055_v61  ;;  %v3016_v6 = vpop.permute.xlu1 %3015  ;;  %v2796_v61 = vadd.f32 1.0, %v8067_v48  ;;  %v2839_v55 = vmul.f32 %v6358_v50, %v8051_v58 }
 0x81f   :  { %v3058_v27 = vmul.f32 %v3016_v6, %v2850_v28  ;;  %v3014_v16 = vpop.permute.xlu0 %3013  ;;  %v2840_v28 = vmul.f32 %v6356_v10, %v8046_v14  ;;  %v2853_v6 = vsel %vm2773_vm6, %v6354_v1, %v2837_v12 }
 0x820   :  { %v3057_v43 = vmul.f32 %v3014_v16, %v2849_v23  ;;  %5885 = vmatprep.subr.bf16.mxu1 %v5884_v17  ;;  %6363 = vrcp.f32 %v2796_v61  ;;  %v2855_v14 = vsel %vm2775_vm9, %v6358_v50, %v2839_v55  ;;  %v4982_v50 = vld [vmem:[%s8797_s0 + $0x40] sm:$0xff] }
 0x821   :  { %5887 = vmatpush3.bf16.msra.mxu1 %v5884_v17  ;;  %6365 = vrcp.f32 %v2795_v60  ;;  %v2856_v23 = vsel %vm2776_vm8, %v6356_v10, %v2840_v28  ;;  %v4979_v10 = vld [vmem:[%s8796_s3 + $0x58] sm:$0xff] }
 0x822   :  { %v5888_v42 = vpack.c.bf16 %v3058_v27, %v3057_v43  ;;  %v3020_v0 = vpop.permute.xlu1 %3019 }
 0x823   :  { %v3060_v8 = vmul.f32 %v3020_v0, %v2852_v37  ;;  %v3018_v7 = vpop.permute.xlu0 %3017 }
 0x824   :  { %v3059_v18 = vmul.f32 %v3018_v7, %v2851_v25  ;;  %5889 = vmatprep.subr.bf16.mxu1 %v5888_v42 }
 0x825   :  { %5891 = vmatpush3.bf16.msra.mxu1 %v5888_v42 }
 0x826   :  { %v5892_v52 = vpack.c.bf16 %v3060_v8, %v3059_v18  ;;  %v6360_v53 = vpop.eup %6359 }
 0x827   :  { %v6362_v15 = vpop.eup %6361  ;;  %v2842_v16 = vmul.f32 %v6360_v53, %v8055_v20 }
 0x828   :  { %5893 = vmatprep.subr.bf16.mxu1 %v5892_v52  ;;  %v2841_v61 = vmul.f32 %v6362_v15, %v8060_v32 }
 0x829   :  { %5895 = vmatpush3.bf16.msra.mxu1 %v5892_v52  ;;  %v2858_v58 = vsel %vm2778_vm10, %v6360_v53, %v2842_v16 }
 0x82a   :  { %v3024_v3 = vpop.permute.xlu1 %3023  ;;  %v6364_v38 = vpop.eup %6363  ;;  %v2857_v60 = vsel %vm2777_vm13, %v6362_v15, %v2841_v61 }
 0x82b   :  { %v3062_v17 = vmul.f32 %v3024_v3, %v2854_v51  ;;  %v3022_v11 = vpop.permute.xlu0 %3021  ;;  %v6366_v42 = vpop.eup %6365  ;;  %v2844_v19 = vmul.f32 %v6364_v38, %v8067_v48  ;;  %v4983_v51 = vld [vmem:[%s8797_s0 + $0x48] sm:$0xff] }
 0x82c   :  { %v3061_v27 = vmul.f32 %v3022_v11, %v2853_v6  ;;  %v2843_v8 = vmul.f32 %v6366_v42, %v8071_v35  ;;  %v4978_v35 = vld [vmem:[%s8796_s3 + $0x50] sm:$0xff]  ;;  %v8116_v3 = vpack.c.bf16 %v4983_v51, %v4982_v50 }
 0x82d   :  { %v2860_v7 = vsel %vm2780_vm14, %v6364_v38, %v2844_v19  ;;  %v5916_v12 = vpack.c.bf16 %v4979_v10, %v4978_v35 }
 0x82e   :  { %v5896_v45 = vpack.c.bf16 %v3062_v17, %v3061_v27  ;;  %v3028_v63 = vpop.permute.xlu1 %3027  ;;  %v2859_v18 = vsel %vm2779_vm15, %v6366_v42, %v2843_v8 }
 0x82f   :  { %v3064_v47 = vmul.f32 %v3028_v63, %v2856_v23  ;;  %v3026_v43 = vpop.permute.xlu0 %3025 }
 0x830   :  { %v3063_v37 = vmul.f32 %v3026_v43, %v2855_v14  ;;  %5897 = vmatprep.subr.bf16.mxu1 %v5896_v45 }
 0x831   :  { %5899 = vmatpush3.bf16.msra.mxu1 %v5896_v45 }
 0x832   :  { %v5900_v13 = vpack.c.bf16 %v3064_v47, %v3063_v37  ;;  %v3032_v0 = vpop.permute.xlu1 %3031 }
 0x833   :  { %v3066_v20 = vmul.f32 %v3032_v0, %v2858_v58  ;;  %v3030_v29 = vpop.permute.xlu0 %3029 }
 0x834   :  { %v3065_v25 = vmul.f32 %v3030_v29, %v2857_v60  ;;  %5901 = vmatprep.subr.bf16.mxu1 %v5900_v13 }
 0x835   :  { %5903 = vmatpush3.bf16.msra.mxu1 %v5900_v13 }
 0x836   :  { %v5904_v32 = vpack.c.bf16 %v3066_v20, %v3065_v25  ;;  %v3036_v62 = vpop.permute.xlu1 %3035 }
 0x837   :  { %v3068_v1 = vmul.f32 %v3036_v62, %v2860_v7  ;;  %v3034_v31 = vpop.permute.xlu0 %3033 }
 0x838   :  { %v3067_v52 = vmul.f32 %v3034_v31, %v2859_v18  ;;  %5905 = vmatprep.subr.bf16.mxu1 %v5904_v32 }
 0x839   :  { %5907 = vmatpush3.bf16.msra.mxu1 %v5904_v32  ;;  %v4974_v32 = vld [vmem:[%s8736_s14 + $0x1] ss:$0 sm:$0xff] }
 0x83a   :  { %v5908_v48 = vpack.c.bf16 %v3068_v1, %v3067_v52  ;;  %v4975_v1 = vld [vmem:[%s8737_s15 + $0x1] ss:$0 sm:$0xff] }
 0x83c   :  { %5909 = vmatprep.subr.bf16.mxu1 %v5908_v48 }
 0x83d   :  { %5911 = vmatpush3.bf16.msra.mxu1 %v5908_v48 }
 0x83e   :  { %5913 = vmatprep.subr.bf16.mxu1 %v5912_v34 }
 0x840   :  { %5612 = vmatmul.mubr.msk.f32.vlgmr.msra.gmra.mrb[18].mxu1 %vm302_vm12, %v8819_v9 }
 0x841   :  { %5915 = vmatpush3.bf16.msra.mxu1 %v5912_v34 }
 0x842   :  { %5917 = vmatprep.subr.bf16.mxu1 %v5916_v12 }
 0x845   :  { %5919 = vmatpush3.bf16.msra.mxu1 %v5916_v12 }
 0x846   :  { %5921 = vmatprep.subr.bf16.mxu1 %v8116_v3 }
 0x913   :  { %v5613_v28 = vpop.f32.mrb[18].mxu1 }
 0x914   :  { %v3149_v53 = vsel %vm419_vm1, %v5613_v28, 0.0  ;;  %v3135_v17 = vpop.f32.mrb[19].mxu1 }
 0x915   :  { %v3148_v6 = vsel %vm419_vm1, %v3135_v17, 0.0 }
 0x916   :  { %v3150_v11 = vadd.f32 %v3149_v53, %v3148_v6  ;;  %v4984_v6 = vld [vmem:[%s8797_s0 + $0x50] sm:$0xff] }
 0x918   :  { %v3151_v55 = vrot.slane %v3150_v11, 4 }
 0x91a   :  { %v3152_v15 = vadd.f32 %v3151_v55, %v3150_v11 }
 0x91c   :  { %v3153_v27 = vrot.slane %v3152_v15, 2 }
 0x91e   :  { %v3154_v45 = vadd.f32 %v3153_v27, %v3152_v15 }
 0x920   :  { %v3155_v23 = vrot.slane %v3154_v45, 1 }
 0x922   :  { %v3156_v63 = vadd.f32 %v3155_v23, %v3154_v45 }
 0x924   :  { %v3157_v16 = vmul.f32 0.0625, %v3156_v63 }
 0x926   :  { %v3158_v38 = vsub.f32 %v3135_v17, %v3157_v16  ;;  %v3159_v47 = vsub.f32 %v5613_v28, %v3157_v16 }
 0x928   :  { %v3160_v14 = vmul.f32 %v3158_v38, %v3158_v38  ;;  %v3161_v43 = vmul.f32 %v3159_v47, %v3159_v47 }
 0x92a   :  { %v3162_v61 = vsel %vm419_vm1, %v3160_v14, 0.0  ;;  %v3163_v42 = vsel %vm419_vm1, %v3161_v43, 0.0  ;;  %v5021_v43 = vld [vmem:[%s8730_s10 + $0x28] sm:$0xff] }
 0x92b   :  { %v3164_v37 = vadd.f32 %v3163_v42, %v3162_v61  ;;  %v8852_v42 = vld [vmem:[#allocation15_spill] sm:$0xff] }
 0x92d   :  { %v3165_v13 = vrot.slane %v3164_v37, 4 }
 0x92f   :  { %v3166_v58 = vadd.f32 %v3165_v13, %v3164_v37  ;;  %v8853_v37 = vld [vmem:[#allocation16_spill] sm:$0xff]  ;;  %v8854_v13 = vld [vmem:[#allocation17_spill] sm:$0xff] }
 0x931   :  { %v3167_v0 = vrot.slane %v3166_v58, 2 }
 0x933   :  { %v3168_v19 = vadd.f32 %v3167_v0, %v3166_v58  ;;  %v8855_v58 = vld [vmem:[#allocation19_spill] sm:$0xff] }
 0x934   :  { %v6541_v0 = vld [vmem:[%s8731_s1] sm:$0xff] }
 0x935   :  { %v3169_v20 = vrot.slane %v3168_v19, 1 }
 0x937   :  { %v3170_v60 = vadd.f32 %v3169_v20, %v3168_v19  ;;  %v6542_v19 = vld [vmem:[%s8731_s1 + $0x8] sm:$0xff]  ;;  %v6543_v20 = vld [vmem:[%s8731_s1 + $0x10] sm:$0xff] }
 0x939   :  { %v3171_v29 = vmul.f32 0.0625, %v3170_v60  ;;  %v6544_v60 = vld [vmem:[%s8731_s1 + $0x18] sm:$0xff] }
 0x93b   :  { %v3172_v8 = vadd.f32 1e-05, %v3171_v29  ;;  %v6545_v29 = vld [vmem:[%s8731_s1 + $0x20] sm:$0xff] }
 0x93d   :  { %6367 = vrsqrt.f32 %v3172_v8  ;;  %v6546_v8 = vld [vmem:[%s8731_s1 + $0x28] sm:$0xff] }
 0x947   :  { %v6368_v25 = vpop.eup %6367 }
 0x948   :  { %v3174_v7 = vmul.f32 %v6368_v25, %v3158_v38  ;;  %v3175_v62 = vmul.f32 %v6368_v25, %v3159_v47  ;;  %v6547_v25 = vld [vmem:[%s8731_s1 + $0x30] sm:$0xff] }
 0x94a   :  { %v3182_v18 = vmul.f32 %v4974_v32, %v3174_v7  ;;  %v3183_v31 = vmul.f32 %v4974_v32, %v3175_v62  ;;  %v6548_v32 = vld [vmem:[%s8731_s1 + $0x38] sm:$0xff]  ;;  %v6549_v7 = vld [vmem:[%s8731_s1 + $0x40] sm:$0xff]  ;;  %v6550_v62 = vld [vmem:[%s8731_s1 + $0x48] sm:$0xff] }
 0x94c   :  { %v3190_v52 = vadd.f32 %v4975_v1, %v3182_v18  ;;  %v3191_v48 = vadd.f32 %v4975_v1, %v3183_v31  ;;  %v6551_v1 = vld [vmem:[%s8731_s1 + $0x50] sm:$0xff]  ;;  %v6552_v18 = vld [vmem:[%s8731_s1 + $0x58] sm:$0xff]  ;;  %v6553_v31 = vld [vmem:[%s8731_s1 + $0x60] sm:$0xff] }
 0x94e   :  { %v3192_v21 = vadd.f32 %v3190_v52, %v7584_v40  ;;  %v3193_v56 = vadd.f32 %v3191_v48, %v7588_v24  ;;  %v4985_v40 = vld [vmem:[%s8797_s0 + $0x58] sm:$0xff]  ;;  %v6554_v52 = vld [vmem:[%s8731_s1 + $0x68] sm:$0xff]  ;;  %v6555_v48 = vld [vmem:[%s8731_s1 + $0x70] sm:$0xff] }
 0x94f   :  { %v5924_v27 = vpack.c.bf16 %v4985_v40, %v4984_v6 }
 0x950   :  { %v3194_v35 = vmin.f32 %v3192_v21, 20.0  ;;  %v3195_v34 = vmin.f32 %v3193_v56, 20.0  ;;  %vm3196_vm0 = vcmp.gt.f32.partialorder %v3192_v21, 20.0  ;;  %vm3197_vm2 = vcmp.gt.f32.partialorder %v3193_v56, 20.0 }
 0x952   :  { %v3198_v10 = vmul.f32 1.442695, %v3194_v35  ;;  %v3200_v12 = vmul.f32 1.442695, %v3195_v34 }
 0x954   :  { %6369 = vpow2.f32 %v3198_v10 }
 0x955   :  { %6371 = vpow2.f32 %v3200_v12 }
 0x95e   :  { %v6370_v50 = vpop.eup %6369 }
 0x95f   :  { %v6372_v51 = vpop.eup %6371  ;;  %v3202_v28 = vadd.f32 1.0, %v6370_v50 }
 0x960   :  { %v3203_v53 = vadd.f32 1.0, %v6372_v51 }
 0x961   :  { %6373 = vlog2.f32 %v3202_v28 }
 0x962   :  { %6375 = vlog2.f32 %v3203_v53 }
 0x96b   :  { %v6374_v17 = vpop.eup %6373 }
 0x96c   :  { %v6376_v24 = vpop.eup %6375  ;;  %v3205_v11 = vmul.f32 0.6931472, %v6374_v17 }
 0x96d   :  { %v3207_v55 = vmul.f32 0.6931472, %v6376_v24 }
 0x96e   :  { %v8137_v15 = vsel %vm3196_vm0, %v3192_v21, %v3205_v11  ;;  %v6556_v21 = vld [vmem:[%s8731_s1 + $0x78] sm:$0xff] }
 0x96f   :  { %5622 = vmatprep.mubr.msk.f32.mxu1 %vm419_vm1, %v8137_v15  ;;  %v8141_v45 = vsel %vm3197_vm2, %v3193_v56, %v3207_v55  ;;  %v5039_v56 = vld [vmem:[%s8732_s11 + $0x2] ss:$0 sm:$0xff] }
 0x970   :  { %5623 = vmatmul.mubr.msk.f32.vlgmr.msra.gmra.mrb[20].mxu1 %vm419_vm1, %v8141_v45 }
 0x971   :  { %5923 = vmatpush3.bf16.msra.mxu1 %v8116_v3  ;;  %5633 = vmatprep.mubr.msk.f32.mxu1 %vm419_vm1, %v8137_v15  ;;  %v5020_v3 = vld [vmem:[%s8730_s10 + $0x20] sm:$0xff] }
 0x972   :  { %5925 = vmatprep.subr.bf16.mxu1 %v5924_v27  ;;  %v5936_v61 = vpack.c.bf16 %v5021_v43, %v5020_v3 }
 0x975   :  { %5927 = vmatpush3.bf16.msra.mxu1 %v5924_v27 }
 0x978   :  { %5634 = vmatmul.mubr.msk.f32.vlgmr.msra.gmra.mrb[22].mxu1 %vm419_vm1, %v8141_v45 }
 0x979   :  { %5640 = vmatprep.mubr.msk.f32.mxu1 %vm580_vm4, %v6833_v2  ;;  %v8838_v2 = vld [vmem:[#allocation18_spill] sm:$0xff] }
 0xa43   :  { %v5624_v23 = vpop.f32.mrb[20].mxu1 }
 0xa44   :  { %v3287_v63 = vpop.f32.mrb[21].mxu1 }
 0xa45   :  { %v5932_v16 = vpack.c.bf16 %v5624_v23, %v3287_v63 }
 0xa4b   :  { %v5635_v38 = vpop.f32.mrb[22].mxu1 }
 0xa4c   :  { %v3367_v47 = vpop.f32.mrb[23].mxu1 }
 0xa4d   :  { %v5928_v14 = vpack.c.bf16 %v5635_v38, %v3367_v47 }
 0xa4f   :  { %5929 = vmatprep.subr.bf16.mxu1 %v5928_v14 }
 0xa50   :  { %5931 = vmatpush3.bf16.msra.mxu1 %v5928_v14 }
 0xa51   :  { %5933 = vmatprep.subr.bf16.mxu1 %v5932_v16 }
 0xa53   :  { %5641 = vmatmul.mubr.msk.f32.vlgmr.msra.gmra.mrb[24].mxu1 %vm580_vm4, %v6859_v26  ;;  %v8839_v26 = vld [vmem:[#allocation20_spill] sm:$0xff] }
 0xa54   :  { %5643 = vmatprep.mubr.msk.f32.mxu1 %vm580_vm4, %v6870_v30  ;;  %5935 = vmatpush3.bf16.msra.mxu1 %v5932_v16  ;;  %v8840_v30 = vld [vmem:[#allocation3_spill] sm:$0xff] }
 0xa55   :  { %5937 = vmatprep.subr.bf16.mxu1 %v5936_v61 }
 0xa57   :  { %5644 = vmatmul.mubr.msk.f32.gmra.mrb[26].mxu1 %vm580_vm4, %v6888_v33  ;;  %v8841_v33 = vld [vmem:[#allocation5_spill] sm:$0xff] }
 0xa58   :  { %5646 = vmatprep.mubr.msk.f32.mxu1 %vm580_vm4, %v6895_v36  ;;  %v8842_v36 = vld [vmem:[#allocation4_spill] sm:$0xff] }
 0xa5b   :  { %5647 = vmatmul.mubr.msk.f32.gmra.mrb[28].mxu1 %vm580_vm4, %v6913_v39  ;;  %v8843_v39 = vld [vmem:[#allocation6_spill] sm:$0xff] }
 0xa5c   :  { %5649 = vmatprep.mubr.msk.f32.mxu1 %vm580_vm4, %v6921_v41  ;;  %v8844_v41 = vld [vmem:[#allocation7_spill] sm:$0xff] }
 0xa5f   :  { %5650 = vmatmul.mubr.msk.f32.gmra.mrb[30].mxu1 %vm580_vm4, %v6939_v44  ;;  %v8845_v44 = vld [vmem:[#allocation8_spill] sm:$0xff] }
 0xa60   :  { %5652 = vmatprep.mubr.msk.f32.mxu1 %vm580_vm4, %v6947_v46  ;;  %v8846_v46 = vld [vmem:[#allocation9_spill] sm:$0xff] }
 0xa63   :  { %5653 = vmatmul.mubr.msk.f32.gmra.mrb[32].mxu1 %vm580_vm4, %v6965_v49  ;;  %v8847_v49 = vld [vmem:[#allocation10_spill] sm:$0xff] }
 0xa64   :  { %5655 = vmatprep.mubr.msk.f32.mxu1 %vm580_vm4, %v6973_v54  ;;  %v8848_v54 = vld [vmem:[#allocation11_spill] sm:$0xff] }
 0xa67   :  { %5656 = vmatmul.mubr.msk.f32.gmra.mrb[34].mxu1 %vm580_vm4, %v6991_v57  ;;  %v8849_v57 = vld [vmem:[#allocation12_spill] sm:$0xff] }
 0xa68   :  { %5658 = vmatprep.mubr.msk.f32.mxu1 %vm580_vm4, %v6999_v59  ;;  %v8850_v59 = vld [vmem:[#allocation13_spill] sm:$0xff] }
 0xa6b   :  { %5659 = vmatmul.mubr.msk.f32.gmra.mrb[36].mxu1 %vm580_vm4, %v7017_v4  ;;  %v8851_v4 = vld [vmem:[#allocation14_spill] sm:$0xff] }
 0xa6c   :  { %5661 = vmatprep.mubr.msk.f32.mxu1 %vm580_vm4, %v8838_v2 }
 0xa6f   :  { %5662 = vmatmul.mubr.msk.f32.gmra.mrb[38].mxu1 %vm580_vm4, %v8839_v26 }
 0xa70   :  { %5668 = vmatprep.mubr.msk.f32.mxu1 %vm580_vm4, %v8840_v30 }
 0xa73   :  { %5669 = vmatmul.mubr.msk.f32.vlgmr.msra.gmra.mrb[24].mxu1 %vm580_vm4, %v8841_v33 }
 0xa74   :  { %5671 = vmatprep.mubr.msk.f32.mxu1 %vm580_vm4, %v8842_v36  ;;  %5939 = vmatpush3.bf16.msra.mxu1 %v5936_v61 }
 0xa77   :  { %5672 = vmatmul.mubr.msk.f32.gmra.mrb[26].mxu1 %vm580_vm4, %v8843_v39 }
 0xa78   :  { %5674 = vmatprep.mubr.msk.f32.mxu1 %vm580_vm4, %v8844_v41 }
 0xa7b   :  { %5675 = vmatmul.mubr.msk.f32.gmra.mrb[28].mxu1 %vm580_vm4, %v8845_v44 }
 0xa7c   :  { %5677 = vmatprep.mubr.msk.f32.mxu1 %vm580_vm4, %v8846_v46 }
 0xa7f   :  { %5678 = vmatmul.mubr.msk.f32.gmra.mrb[30].mxu1 %vm580_vm4, %v8847_v49 }
 0xa80   :  { %5680 = vmatprep.mubr.msk.f32.mxu1 %vm580_vm4, %v8848_v54 }
 0xa83   :  { %5681 = vmatmul.mubr.msk.f32.gmra.mrb[32].mxu1 %vm580_vm4, %v8849_v57 }
 0xa84   :  { %5683 = vmatprep.mubr.msk.f32.mxu1 %vm580_vm4, %v8850_v59 }
 0xa87   :  { %5684 = vmatmul.mubr.msk.f32.gmra.mrb[34].mxu1 %vm580_vm4, %v8851_v4 }
 0xa88   :  { %5686 = vmatprep.mubr.msk.f32.mxu1 %vm580_vm4, %v8852_v42 }
 0xa8b   :  { %5687 = vmatmul.mubr.msk.f32.gmra.mrb[36].mxu1 %vm580_vm4, %v8853_v37 }
 0xa8c   :  { %5689 = vmatprep.mubr.msk.f32.mxu1 %vm580_vm4, %v8854_v13 }
 0xa8f   :  { %5690 = vmatmul.mubr.msk.f32.gmra.mrb[38].mxu1 %vm580_vm4, %v8855_v58 }
 0xa90   :  { %5696 = vmatprep.mubr.msk.f32.mxu1 %vm580_vm4, %v6541_v0 }
 0xa93   :  { %5697 = vmatmul.mubr.msk.f32.vlgmr.msra.gmra.mrb[24].mxu1 %vm580_vm4, %v6542_v19 }
 0xa94   :  { %5699 = vmatprep.mubr.msk.f32.mxu1 %vm580_vm4, %v6543_v20 }
 0xa97   :  { %5700 = vmatmul.mubr.msk.f32.gmra.mrb[26].mxu1 %vm580_vm4, %v6544_v60 }
 0xa98   :  { %5702 = vmatprep.mubr.msk.f32.mxu1 %vm580_vm4, %v6545_v29 }
 0xa9b   :  { %5703 = vmatmul.mubr.msk.f32.gmra.mrb[28].mxu1 %vm580_vm4, %v6546_v8 }
 0xa9c   :  { %5705 = vmatprep.mubr.msk.f32.mxu1 %vm580_vm4, %v6547_v25 }
 0xa9f   :  { %5706 = vmatmul.mubr.msk.f32.gmra.mrb[30].mxu1 %vm580_vm4, %v6548_v32 }
 0xaa0   :  { %5708 = vmatprep.mubr.msk.f32.mxu1 %vm580_vm4, %v6549_v7 }
 0xaa3   :  { %5709 = vmatmul.mubr.msk.f32.gmra.mrb[32].mxu1 %vm580_vm4, %v6550_v62 }
 0xaa4   :  { %5711 = vmatprep.mubr.msk.f32.mxu1 %vm580_vm4, %v6551_v1 }
 0xaa7   :  { %5712 = vmatmul.mubr.msk.f32.gmra.mrb[34].mxu1 %vm580_vm4, %v6552_v18 }
 0xaa8   :  { %5714 = vmatprep.mubr.msk.f32.mxu1 %vm580_vm4, %v6553_v31 }
 0xaab   :  { %5715 = vmatmul.mubr.msk.f32.gmra.mrb[36].mxu1 %vm580_vm4, %v6554_v52 }
 0xaac   :  { %5717 = vmatprep.mubr.msk.f32.mxu1 %vm580_vm4, %v6555_v48 }
 0xaaf   :  { %5718 = vmatmul.mubr.msk.f32.gmra.mrb[38].mxu1 %vm580_vm4, %v6556_v21 }
 0xb66   :  { %v5698_v35 = vpop.f32.mrb[24].mxu1 }
 0xb67   :  { %v8287_v34 = vadd.f32 %v5698_v35, %v5039_v56  ;;  %v3735_v10 = vpop.f32.mrb[25].mxu1 }
 0xb68   :  { %v8289_v12 = vadd.f32 %v5039_v56, %v3735_v10 }
 0xb69   :  { %v3859_v50 = vsel %vm1203_vm7, %v8287_v34, 0.0 }
 0xb6a   :  { %v3858_v51 = vsel %vm1203_vm7, %v8289_v12, 0.0  ;;  %v5701_v28 = vpop.f32.mrb[26].mxu1 }
 0xb6b   :  { %v3860_v53 = vadd.f32 %v3859_v50, %v3858_v51  ;;  %v3745_v17 = vpop.f32.mrb[27].mxu1  ;;  %v8295_v6 = vadd.f32 %v5701_v28, %v5039_v56 }
 0xb6c   :  { %v3840_v40 = vadd.f32 %v5039_v56, %v3745_v17 }
 0xb6d   :  { %v3863_v23 = vsel %vm1203_vm7, %v8295_v6, 0.0 }
 0xb6e   :  { %v3861_v24 = vsel %vm1203_vm7, %v3840_v40, 0.0  ;;  %v5704_v11 = vpop.f32.mrb[28].mxu1 }
 0xb6f   :  { %v3862_v55 = vadd.f32 %v3861_v24, %v3860_v53  ;;  %v3755_v27 = vpop.f32.mrb[29].mxu1  ;;  %v3843_v63 = vadd.f32 %v5704_v11, %v5039_v56 }
 0xb70   :  { %v3842_v16 = vadd.f32 %v5039_v56, %v3755_v27 }
 0xb71   :  { %v3864_v38 = vadd.f32 %v3863_v23, %v3862_v55  ;;  %v3867_v61 = vsel %vm1203_vm7, %v3843_v63, 0.0 }
 0xb72   :  { %v3865_v47 = vsel %vm1203_vm7, %v3842_v16, 0.0  ;;  %v5707_v14 = vpop.f32.mrb[30].mxu1 }
 0xb73   :  { %v3866_v3 = vadd.f32 %v3865_v47, %v3864_v38  ;;  %v3765_v43 = vpop.f32.mrb[31].mxu1  ;;  %v3845_v2 = vadd.f32 %v5707_v14, %v5039_v56 }
 0xb74   :  { %v3844_v26 = vadd.f32 %v5039_v56, %v3765_v43 }
 0xb75   :  { %v3868_v30 = vadd.f32 %v3867_v61, %v3866_v3  ;;  %v3871_v44 = vsel %vm1203_vm7, %v3845_v2, 0.0 }
 0xb76   :  { %v3869_v33 = vsel %vm1203_vm7, %v3844_v26, 0.0  ;;  %v5710_v36 = vpop.f32.mrb[32].mxu1 }
 0xb77   :  { %v3870_v39 = vadd.f32 %v3869_v33, %v3868_v30  ;;  %v3775_v41 = vpop.f32.mrb[33].mxu1  ;;  %v3847_v46 = vadd.f32 %v5710_v36, %v5039_v56 }
 0xb78   :  { %v3846_v49 = vadd.f32 %v5039_v56, %v3775_v41 }
 0xb79   :  { %v3872_v54 = vadd.f32 %v3871_v44, %v3870_v39  ;;  %v3875_v37 = vsel %vm1203_vm7, %v3847_v46, 0.0 }
 0xb7a   :  { %v3873_v57 = vsel %vm1203_vm7, %v3846_v49, 0.0  ;;  %v5713_v59 = vpop.f32.mrb[34].mxu1 }
 0xb7b   :  { %v3874_v4 = vadd.f32 %v3873_v57, %v3872_v54  ;;  %v3785_v42 = vpop.f32.mrb[35].mxu1  ;;  %v3849_v13 = vadd.f32 %v5713_v59, %v5039_v56 }
 0xb7c   :  { %v3848_v58 = vadd.f32 %v5039_v56, %v3785_v42 }
 0xb7d   :  { %v3876_v0 = vadd.f32 %v3875_v37, %v3874_v4  ;;  %v3879_v8 = vsel %vm1203_vm7, %v3849_v13, 0.0 }
 0xb7e   :  { %v3877_v19 = vsel %vm1203_vm7, %v3848_v58, 0.0  ;;  %v5716_v20 = vpop.f32.mrb[36].mxu1 }
 0xb7f   :  { %v3878_v60 = vadd.f32 %v3877_v19, %v3876_v0  ;;  %v3795_v29 = vpop.f32.mrb[37].mxu1  ;;  %v3851_v25 = vadd.f32 %v5716_v20, %v5039_v56 }
 0xb80   :  { %v3850_v32 = vadd.f32 %v5039_v56, %v3795_v29 }
 0xb81   :  { %v3880_v7 = vadd.f32 %v3879_v8, %v3878_v60  ;;  %v3883_v52 = vsel %vm1203_vm7, %v3851_v25, 0.0 }
 0xb82   :  { %v3881_v62 = vsel %vm1203_vm7, %v3850_v32, 0.0  ;;  %v5719_v1 = vpop.f32.mrb[38].mxu1 }
 0xb83   :  { %v3882_v18 = vadd.f32 %v3881_v62, %v3880_v7  ;;  %v3805_v31 = vpop.f32.mrb[39].mxu1  ;;  %v3853_v48 = vadd.f32 %v5719_v1, %v5039_v56 }
 0xb84   :  { %v3852_v21 = vadd.f32 %v5039_v56, %v3805_v31 }
 0xb85   :  { %v3884_v35 = vadd.f32 %v3883_v52, %v3882_v18  ;;  %v3887_v51 = vsel %vm1203_vm7, %v3853_v48, 0.0 }
 0xb86   :  { %v3885_v10 = vsel %vm1203_vm7, %v3852_v21, 0.0 }
 0xb87   :  { %v3886_v50 = vadd.f32 %v3885_v10, %v3884_v35 }
 0xb89   :  { %v3888_v28 = vadd.f32 %v3887_v51, %v3886_v50 }
 0xb8b   :  { %v3889_v53 = vrot.slane %v3888_v28, 4 }
 0xb8d   :  { %v3890_v17 = vadd.f32 %v3889_v53, %v3888_v28 }
 0xb8f   :  { %v3891_v24 = vrot.slane %v3890_v17, 2 }
 0xb91   :  { %v3892_v11 = vadd.f32 %v3891_v24, %v3890_v17 }
 0xb93   :  { %v3893_v55 = vrot.slane %v3892_v11, 1 }
 0xb95   :  { %v3894_v27 = vadd.f32 %v3893_v55, %v3892_v11 }
 0xb97   :  { %v3895_v23 = vmul.f32 0.0078125, %v3894_v27 }
 0xb99   :  { %v8313_v38 = vsub.f32 %v8289_v12, %v3895_v23  ;;  %v8316_v47 = vsub.f32 %v8287_v34, %v3895_v23  ;;  %v8318_v56 = vsub.f32 %v3840_v40, %v3895_v23  ;;  %v8321_v14 = vsub.f32 %v8295_v6, %v3895_v23 }
 0xb9a   :  { %v8323_v3 = vsub.f32 %v3842_v16, %v3895_v23  ;;  %v8325_v43 = vsub.f32 %v3843_v63, %v3895_v23  ;;  %v8327_v61 = vsub.f32 %v3844_v26, %v3895_v23  ;;  %v8329_v30 = vsub.f32 %v3845_v2, %v3895_v23 }
 0xb9b   :  { %v8331_v33 = vsub.f32 %v3846_v49, %v3895_v23  ;;  %v8333_v12 = vsub.f32 %v3847_v46, %v3895_v23  ;;  %v8335_v36 = vsub.f32 %v3848_v58, %v3895_v23  ;;  %v8337_v34 = vsub.f32 %v3849_v13, %v3895_v23 }
 0xb9c   :  { %v8339_v40 = vsub.f32 %v3850_v32, %v3895_v23  ;;  %v3909_v6 = vsub.f32 %v3851_v25, %v3895_v23  ;;  %v3910_v39 = vsub.f32 %v3852_v21, %v3895_v23  ;;  %v3911_v16 = vsub.f32 %v3853_v48, %v3895_v23 }
 0xb9d   :  { %v3912_v63 = vmul.f32 %v8313_v38, %v8313_v38  ;;  %v3913_v2 = vmul.f32 %v8316_v47, %v8316_v47  ;;  %v3914_v26 = vmul.f32 %v8318_v56, %v8318_v56  ;;  %v3915_v41 = vmul.f32 %v8321_v14, %v8321_v14 }
 0xb9e   :  { %v3916_v54 = vmul.f32 %v8323_v3, %v8323_v3  ;;  %v3917_v4 = vmul.f32 %v8325_v43, %v8325_v43  ;;  %v3918_v13 = vmul.f32 %v8327_v61, %v8327_v61  ;;  %v3919_v19 = vmul.f32 %v8329_v30, %v8329_v30 }
 0xb9f   :  { %v3928_v44 = vsel %vm1203_vm7, %v3912_v63, 0.0  ;;  %v3929_v46 = vsel %vm1203_vm7, %v3913_v2, 0.0  ;;  %v3931_v57 = vsel %vm1203_vm7, %v3914_v26, 0.0  ;;  %v3933_v42 = vsel %vm1203_vm7, %v3915_v41, 0.0 }
 0xba0   :  { %v3930_v49 = vadd.f32 %v3929_v46, %v3928_v44  ;;  %v3935_v58 = vsel %vm1203_vm7, %v3916_v54, 0.0  ;;  %v3937_v20 = vsel %vm1203_vm7, %v3917_v4, 0.0  ;;  %v3920_v29 = vmul.f32 %v8331_v33, %v8331_v33 }
 0xba1   :  { %v3939_v8 = vsel %vm1203_vm7, %v3918_v13, 0.0  ;;  %v3921_v32 = vmul.f32 %v8333_v12, %v8333_v12  ;;  %v3941_v7 = vsel %vm1203_vm7, %v3919_v19, 0.0  ;;  %v3922_v1 = vmul.f32 %v8335_v36, %v8335_v36  ;;  %v8388_v13 = vld [vmem:[%s8733_s12 + $0x2] ss:$0 sm:$0xff] }
 0xba2   :  { %v3932_v59 = vadd.f32 %v3931_v57, %v3930_v49  ;;  %v3943_v18 = vsel %vm1203_vm7, %v3920_v29, 0.0  ;;  %v3923_v52 = vmul.f32 %v8337_v34, %v8337_v34  ;;  %v3924_v35 = vmul.f32 %v8339_v40, %v8339_v40 }
 0xba3   :  { %v3945_v48 = vsel %vm1203_vm7, %v3921_v32, 0.0  ;;  %v3947_v10 = vsel %vm1203_vm7, %v3922_v1, 0.0  ;;  %v3925_v51 = vmul.f32 %v3909_v6, %v3909_v6  ;;  %v3926_v17 = vmul.f32 %v3910_v39, %v3910_v39 }
 0xba4   :  { %v3934_v37 = vadd.f32 %v3933_v42, %v3932_v59  ;;  %v3949_v28 = vsel %vm1203_vm7, %v3923_v52, 0.0  ;;  %v3951_v24 = vsel %vm1203_vm7, %v3924_v35, 0.0  ;;  %v3927_v55 = vmul.f32 %v3911_v16, %v3911_v16 }
 0xba5   :  { %v3953_v27 = vsel %vm1203_vm7, %v3925_v51, 0.0  ;;  %v3955_v63 = vsel %vm1203_vm7, %v3926_v17, 0.0 }
 0xba6   :  { %v3936_v0 = vadd.f32 %v3935_v58, %v3934_v37  ;;  %v3957_v26 = vsel %vm1203_vm7, %v3927_v55, 0.0 }
 0xba8   :  { %v3938_v60 = vadd.f32 %v3937_v20, %v3936_v0 }
 0xbaa   :  { %v3940_v25 = vadd.f32 %v3939_v8, %v3938_v60  ;;  %v8400_v60 = vld [vmem:[%s8734_s13 + $0x2] ss:$0 sm:$0xff] }
 0xbac   :  { %v3942_v62 = vadd.f32 %v3941_v7, %v3940_v25 }
 0xbae   :  { %v3944_v31 = vadd.f32 %v3943_v18, %v3942_v62 }
 0xbb0   :  { %v3946_v21 = vadd.f32 %v3945_v48, %v3944_v31 }
 0xbb2   :  { %v3948_v50 = vadd.f32 %v3947_v10, %v3946_v21 }
 0xbb4   :  { %v3950_v53 = vadd.f32 %v3949_v28, %v3948_v50 }
 0xbb6   :  { %v3952_v11 = vadd.f32 %v3951_v24, %v3950_v53 }
 0xbb8   :  { %v3954_v23 = vadd.f32 %v3953_v27, %v3952_v11 }
 0xbba   :  { %v3956_v2 = vadd.f32 %v3955_v63, %v3954_v23 }
 0xbbc   :  { %v3958_v41 = vadd.f32 %v3957_v26, %v3956_v2 }
 0xbbe   :  { %v3959_v44 = vrot.slane %v3958_v41, 4 }
 0xbc0   :  { %v3960_v46 = vadd.f32 %v3959_v44, %v3958_v41 }
 0xbc2   :  { %v3961_v49 = vrot.slane %v3960_v46, 2 }
 0xbc4   :  { %v3962_v54 = vadd.f32 %v3961_v49, %v3960_v46 }
 0xbc6   :  { %v3963_v57 = vrot.slane %v3962_v54, 1 }
 0xbc8   :  { %v3964_v59 = vadd.f32 %v3963_v57, %v3962_v54 }
 0xbca   :  { %v3965_v4 = vmul.f32 0.0078125, %v3964_v59 }
 0xbcc   :  { %v3966_v42 = vadd.f32 1e-05, %v3965_v4 }
 0xbce   :  { %6377 = vrsqrt.f32 %v3966_v42 }
 0xbd8   :  { %v8383_v37 = vpop.eup %6377 }
 0xbd9   :  { %v3981_v58 = vmul.f32 %v8383_v37, %v3909_v6  ;;  %v3982_v0 = vmul.f32 %v8383_v37, %v3910_v39  ;;  %v8393_v19 = vmul.f32 %v8383_v37, %v3911_v16  ;;  %v3969_v20 = vmul.f32 %v8383_v37, %v8316_v47 }
 0xbda   :  { %v3968_v29 = vmul.f32 %v8383_v37, %v8313_v38  ;;  %v3971_v8 = vmul.f32 %v8383_v37, %v8321_v14  ;;  %v3970_v6 = vmul.f32 %v8383_v37, %v8318_v56  ;;  %v3973_v39 = vmul.f32 %v8383_v37, %v8325_v43 }
 0xbdb   :  { %v3991_v16 = vmul.f32 %v8388_v13, %v3969_v20  ;;  %v3972_v47 = vmul.f32 %v8383_v37, %v8323_v3  ;;  %v3975_v25 = vmul.f32 %v8383_v37, %v8329_v30  ;;  %v3974_v23 = vmul.f32 %v8383_v37, %v8327_v61 }
 0xbdc   :  { %v3990_v32 = vmul.f32 %v8388_v13, %v3968_v29  ;;  %v3993_v38 = vmul.f32 %v8388_v13, %v3971_v8  ;;  %v3992_v14 = vmul.f32 %v8388_v13, %v3970_v6  ;;  %v3995_v7 = vmul.f32 %v8388_v13, %v3973_v39 }
 0xbdd   :  { %v8420_v56 = vadd.f32 %v8400_v60, %v3991_v16  ;;  %v3994_v43 = vmul.f32 %v8388_v13, %v3972_v47  ;;  %v3997_v62 = vmul.f32 %v8388_v13, %v3975_v25  ;;  %v3977_v63 = vmul.f32 %v8383_v37, %v8333_v12 }
 0xbde   :  { %v8425_v3 = vadd.f32 %v8400_v60, %v3990_v32  ;;  %v8428_v30 = vadd.f32 %v8400_v60, %v3993_v38  ;;  %v8431_v1 = vadd.f32 %v8400_v60, %v3992_v14  ;;  %v8434_v18 = vadd.f32 %v8400_v60, %v3995_v7 }
 0xbdf   :  { %v4189_v31 = vmin.f32 %v8420_v56, 20.0  ;;  %v8438_v52 = vadd.f32 %v8400_v60, %v3994_v43  ;;  %v8443_v35 = vadd.f32 %v8400_v60, %v3997_v62  ;;  %v3976_v2 = vmul.f32 %v8383_v37, %v8331_v33 }
 0xbe0   :  { %v4188_v48 = vmin.f32 %v8425_v3, 20.0  ;;  %v4191_v21 = vmin.f32 %v8428_v30, 20.0  ;;  %v4190_v50 = vmin.f32 %v8431_v1, 20.0  ;;  %v4193_v51 = vmin.f32 %v8434_v18, 20.0 }
 0xbe1   :  { %v4222_v10 = vmul.f32 1.442695, %v4189_v31  ;;  %v4192_v17 = vmin.f32 %v8438_v52, 20.0  ;;  %v4195_v27 = vmin.f32 %v8443_v35, 20.0  ;;  %v3979_v41 = vmul.f32 %v8383_v37, %v8337_v34 }
 0xbe2   :  { %v4220_v28 = vmul.f32 1.442695, %v4188_v48  ;;  %v4226_v53 = vmul.f32 1.442695, %v4191_v21  ;;  %v4224_v24 = vmul.f32 1.442695, %v4190_v50  ;;  %v3978_v44 = vmul.f32 %v8383_v37, %v8335_v36 }
 0xbe3   :  { %6379 = vpow2.f32 %v4222_v10  ;;  %v4230_v11 = vmul.f32 1.442695, %v4193_v51  ;;  %v4228_v55 = vmul.f32 1.442695, %v4192_v17  ;;  %v4234_v26 = vmul.f32 1.442695, %v4195_v27 }
 0xbe4   :  { %6381 = vpow2.f32 %v4220_v28  ;;  %v3996_v46 = vmul.f32 %v8388_v13, %v3974_v23  ;;  %v3999_v49 = vmul.f32 %v8388_v13, %v3977_v63  ;;  %v3998_v61 = vmul.f32 %v8388_v13, %v3976_v2 }
 0xbe5   :  { %6383 = vpow2.f32 %v4226_v53  ;;  %v4001_v12 = vmul.f32 %v8388_v13, %v3979_v41  ;;  %v4004_v34 = vmul.f32 %v8388_v13, %v3982_v0  ;;  %v4000_v36 = vmul.f32 %v8388_v13, %v3978_v44 }
 0xbe6   :  { %6385 = vpow2.f32 %v4224_v24  ;;  %v8464_v33 = vadd.f32 %v8400_v60, %v3996_v46  ;;  %v8467_v54 = vadd.f32 %v8400_v60, %v3999_v49  ;;  %v8473_v59 = vadd.f32 %v8400_v60, %v3998_v61 }
 0xbe7   :  { %6387 = vpow2.f32 %v4230_v11  ;;  %v4003_v4 = vmul.f32 %v8388_v13, %v3981_v58  ;;  %v8477_v42 = vadd.f32 %v8400_v60, %v4001_v12  ;;  %v3980_v20 = vmul.f32 %v8383_v37, %v8339_v40 }
 0xbe8   :  { %6389 = vpow2.f32 %v4228_v55  ;;  %v4194_v57 = vmin.f32 %v8464_v33, 20.0  ;;  %v4197_v6 = vmin.f32 %v8467_v54, 20.0  ;;  %v8483_v39 = vadd.f32 %v8400_v60, %v4004_v34 }
 0xbe9   :  { %6391 = vpow2.f32 %v4234_v26  ;;  %v8486_v47 = vadd.f32 %v8400_v60, %v4000_v36  ;;  %v4196_v32 = vmin.f32 %v8473_v59, 20.0  ;;  %v8490_v38 = vadd.f32 %v8400_v60, %v4003_v4 }
 0xbea   :  { %v4232_v8 = vmul.f32 1.442695, %v4194_v57  ;;  %v4199_v14 = vmin.f32 %v8477_v42, 20.0  ;;  %v4002_v7 = vmul.f32 %v8388_v13, %v3980_v20  ;;  %v4238_v31 = vmul.f32 1.442695, %v4197_v6 }
 0xbeb   :  { %v4005_v48 = vmul.f32 %v8388_v13, %v8393_v19  ;;  %v4198_v50 = vmin.f32 %v8486_v47, 20.0  ;;  %v4201_v17 = vmin.f32 %v8490_v38, 20.0  ;;  %v4236_v55 = vmul.f32 1.442695, %v4196_v32 }
 0xbec   :  { %6393 = vpow2.f32 %v4232_v8  ;;  %v8498_v51 = vadd.f32 %v8400_v60, %v4002_v7  ;;  %v4242_v13 = vmul.f32 1.442695, %v4199_v14  ;;  %v4202_v2 = vmin.f32 %v8483_v39, 20.0 }
 0xbed   :  { %v6380_v29 = vpop.eup %6379  ;;  %v8502_v24 = vadd.f32 %v8400_v60, %v4005_v48  ;;  %v4240_v27 = vmul.f32 1.442695, %v4198_v50  ;;  %v4246_v63 = vmul.f32 1.442695, %v4201_v17  ;;  %vm4205_vm3 = vcmp.gt.f32.partialorder %v8420_v56, 20.0 }
 0xbee   :  { %v6382_v0 = vpop.eup %6381  ;;  %v4253_v16 = vadd.f32 1.0, %v6380_v29  ;;  %v4200_v19 = vmin.f32 %v8498_v51, 20.0  ;;  %v4248_v12 = vmul.f32 1.442695, %v4202_v2  ;;  %vm4204_vm5 = vcmp.gt.f32.partialorder %v8425_v3, 20.0 }
 0xbef   :  { %v6384_v25 = vpop.eup %6383  ;;  %v4252_v58 = vadd.f32 1.0, %v6382_v0  ;;  %v4203_v23 = vmin.f32 %v8502_v24, 20.0  ;;  %vm4207_vm11 = vcmp.gt.f32.partialorder %v8428_v30, 20.0  ;;  %vm4206_vm6 = vcmp.gt.f32.partialorder %v8431_v1, 20.0 }
 0xbf0   :  { %v6386_v40 = vpop.eup %6385  ;;  %6395 = vlog2.f32 %v4253_v16  ;;  %v4255_v37 = vadd.f32 1.0, %v6384_v25  ;;  %v4244_v60 = vmul.f32 1.442695, %v4200_v19  ;;  %vm4209_vm8 = vcmp.gt.f32.partialorder %v8434_v18, 20.0 }
 0xbf1   :  { %v6388_v43 = vpop.eup %6387  ;;  %6397 = vlog2.f32 %v4252_v58  ;;  %v4254_v62 = vadd.f32 1.0, %v6386_v40  ;;  %v4250_v46 = vmul.f32 1.442695, %v4203_v23  ;;  %vm4208_vm9 = vcmp.gt.f32.partialorder %v8438_v52, 20.0 }
 0xbf2   :  { %v6390_v21 = vpop.eup %6389  ;;  %6399 = vlog2.f32 %v4255_v37  ;;  %v4257_v10 = vadd.f32 1.0, %v6388_v43  ;;  %vm4211_vm10 = vcmp.gt.f32.partialorder %v8443_v35, 20.0  ;;  %vm4210_vm13 = vcmp.gt.f32.partialorder %v8464_v33, 20.0 }
 0xbf3   :  { %v6392_v28 = vpop.eup %6391  ;;  %6401 = vlog2.f32 %v4254_v62  ;;  %v4256_v53 = vadd.f32 1.0, %v6390_v21  ;;  %vm4213_vm14 = vcmp.gt.f32.partialorder %v8467_v54, 20.0  ;;  %vm4212_vm15 = vcmp.gt.f32.partialorder %v8473_v59, 20.0 }
 0xbf4   :  { %6403 = vlog2.f32 %v4257_v10  ;;  %v4259_v11 = vadd.f32 1.0, %v6392_v28  ;;  %vm4215_vm0 = vcmp.gt.f32.partialorder %v8477_v42, 20.0  ;;  %vm4214_vm2 = vcmp.gt.f32.partialorder %v8486_v47, 20.0 }
 0xbf5   :  { %6405 = vlog2.f32 %v4256_v53 }
 0xbf6   :  { %6407 = vlog2.f32 %v4259_v11  ;;  %v6394_v26 = vpop.eup %6393 }
 0xbf7   :  { %6409 = vpow2.f32 %v4238_v31  ;;  %v4258_v44 = vadd.f32 1.0, %v6394_v26 }
 0xbf8   :  { %6411 = vpow2.f32 %v4236_v55 }
 0xbf9   :  { %6413 = vpow2.f32 %v4242_v13 }
 0xbfa   :  { %v6396_v41 = vpop.eup %6395  ;;  %6415 = vpow2.f32 %v4240_v27 }
 0xbfb   :  { %v6398_v49 = vpop.eup %6397  ;;  %v4271_v61 = vmul.f32 0.6931472, %v6396_v41  ;;  %6417 = vpow2.f32 %v4246_v63 }
 0xbfc   :  { %v6400_v34 = vpop.eup %6399  ;;  %v4269_v36 = vmul.f32 0.6931472, %v6398_v49  ;;  %6419 = vlog2.f32 %v4258_v44 }
 0xbfd   :  { %v6402_v57 = vpop.eup %6401  ;;  %v4301_v4 = vsel %vm4205_vm3, %v8420_v56, %v4271_v61  ;;  %v4275_v20 = vmul.f32 0.6931472, %v6400_v34  ;;  %6421 = vpow2.f32 %v4244_v60  ;;  %vm4217_vm3 = vcmp.gt.f32.partialorder %v8490_v38, 20.0 }
 0xbfe   :  { %v6404_v29 = vpop.eup %6403  ;;  %4334 = vrot.lane.b32.xlu1 %v4301_v4, %s6559_s6  ;;  %v4300_v8 = vsel %vm4204_vm5, %v8425_v3, %v4269_v36  ;;  %v4273_v6 = vmul.f32 0.6931472, %v6402_v57  ;;  %6423 = vpow2.f32 %v4250_v46  ;;  %vm4216_vm5 = vcmp.gt.f32.partialorder %v8498_v51, 20.0 }
 0xbff   :  { %v6406_v0 = vpop.eup %6405  ;;  %4332 = vrot.lane.b32.xlu0 %v4300_v8, %s6559_s6  ;;  %6425 = vpow2.f32 %v4248_v12  ;;  %v4303_v58 = vsel %vm4207_vm11, %v8428_v30, %v4275_v20  ;;  %v4279_v32 = vmul.f32 0.6931472, %v6404_v29  ;;  %vm4219_vm11 = vcmp.gt.f32.partialorder %v8502_v24, 20.0 }
 0xc00   :  { %v6408_v16 = vpop.eup %6407  ;;  %v4302_v37 = vsel %vm4206_vm6, %v8431_v1, %v4273_v6  ;;  %v4277_v14 = vmul.f32 0.6931472, %v6406_v0  ;;  %vm4218_vm6 = vcmp.gt.f32.partialorder %v8483_v39, 20.0 }
 0xc01   :  { %v6410_v25 = vpop.eup %6409  ;;  %v4305_v10 = vsel %vm4209_vm8, %v8434_v18, %v4279_v32  ;;  %v4283_v50 = vmul.f32 0.6931472, %v6408_v16  ;;  %vm4093_vm8 = vcmp.ge.f32.partialorder %v8420_v56, 0.0 }
 0xc02   :  { %v6412_v40 = vpop.eup %6411  ;;  %4338 = vrot.lane.b32.xlu1 %v4303_v58, %s6559_s6  ;;  %v4261_v7 = vadd.f32 1.0, %v6410_v25  ;;  %v4304_v17 = vsel %vm4208_vm9, %v8438_v52, %v4277_v14  ;;  %vm4092_vm9 = vcmp.ge.f32.partialorder %v8425_v3, 0.0 }
 0xc03   :  { %v6414_v43 = vpop.eup %6413  ;;  %4336 = vrot.lane.b32.xlu0 %v4302_v37, %s6559_s6  ;;  %v4260_v62 = vadd.f32 1.0, %v6412_v40  ;;  %v4307_v63 = vsel %vm4211_vm10, %v8443_v35, %v4283_v50  ;;  %v4030_v50 = vand.u32 2147483647, %v8431_v1  ;;  %vm4095_vm10 = vcmp.ge.f32.partialorder %v8428_v30, 0.0 }
 0xc04   :  { %v6416_v31 = vpop.eup %6415  ;;  %6427 = vlog2.f32 %v4261_v7  ;;  %v4263_v48 = vadd.f32 1.0, %v6414_v43 }
 0xc05   :  { %v6418_v21 = vpop.eup %6417  ;;  %6429 = vlog2.f32 %v4260_v62  ;;  %v4262_v28 = vadd.f32 1.0, %v6416_v31  ;;  %v4029_v62 = vand.u32 2147483647, %v8420_v56  ;;  %v4028_v31 = vand.u32 2147483647, %v8425_v3 }
 0xc06   :  { %v6420_v53 = vpop.eup %6419  ;;  %4342 = vrot.lane.b32.xlu1 %v4305_v10, %s6559_s6  ;;  %6431 = vlog2.f32 %v4263_v48  ;;  %v4265_v11 = vadd.f32 1.0, %v6418_v21  ;;  %v4031_v48 = vand.u32 2147483647, %v8428_v30 }
 0xc07   :  { %v6422_v55 = vpop.eup %6421  ;;  %4340 = vrot.lane.b32.xlu0 %v4304_v17, %s6559_s6  ;;  %v4281_v13 = vmul.f32 0.6931472, %v6420_v53  ;;  %6433 = vlog2.f32 %v4262_v28  ;;  %v4045_v21 = vsub.f32 0.0, %v4029_v62  ;;  %v4044_v10 = vsub.f32 0.0, %v4028_v31 }
 0xc08   :  { %v6424_v19 = vpop.eup %6423  ;;  %6435 = vlog2.f32 %v4265_v11  ;;  %v4264_v27 = vadd.f32 1.0, %v6422_v55  ;;  %v4047_v28 = vsub.f32 0.0, %v4031_v48  ;;  %v4033_v53 = vand.u32 2147483647, %v8434_v18 }
 0xc09   :  { %v6426_v23 = vpop.eup %6425  ;;  %v4267_v2 = vadd.f32 1.0, %v6424_v19  ;;  %v4306_v26 = vsel %vm4210_vm13, %v8464_v33, %v4281_v13  ;;  %v4062_v17 = vmul.f32 1.442695, %v4045_v21  ;;  %v4060_v11 = vmul.f32 1.442695, %v4044_v10 }
 0xc0a   :  { %4346 = vrot.lane.b32.xlu1 %v4307_v63, %s6559_s6  ;;  %6437 = vlog2.f32 %v4264_v27  ;;  %v4266_v60 = vadd.f32 1.0, %v6426_v23  ;;  %v4046_v55 = vsub.f32 0.0, %v4030_v50  ;;  %v4032_v13 = vand.u32 2147483647, %v8438_v52 }
 0xc0b   :  { %4344 = vrot.lane.b32.xlu0 %v4306_v26, %s6559_s6  ;;  %6439 = vlog2.f32 %v4267_v2  ;;  %v4066_v19 = vmul.f32 1.442695, %v4047_v28  ;;  %v4049_v27 = vsub.f32 0.0, %v4033_v53  ;;  %v4035_v23 = vand.u32 2147483647, %v8443_v35 }
 0xc0c   :  { %6441 = vlog2.f32 %v4266_v60  ;;  %v4064_v63 = vmul.f32 1.442695, %v4046_v55  ;;  %v4048_v2 = vsub.f32 0.0, %v4032_v13  ;;  %v4034_v26 = vand.u32 2147483647, %v8464_v33 }
 0xc0d   :  { %6443 = vpow2.f32 %v4062_v17  ;;  %v4070_v60 = vmul.f32 1.442695, %v4049_v27  ;;  %v4043_v53 = vand.u32 2147483647, %v8502_v24  ;;  %vm4094_vm13 = vcmp.ge.f32.partialorder %v8431_v1, 0.0 }
 0xc0e   :  { %v6428_v41 = vpop.eup %6427  ;;  %6445 = vpow2.f32 %v4060_v11  ;;  %v4042_v11 = vand.u32 2147483647, %v8483_v39 }
 0xc0f   :  { %v6430_v44 = vpop.eup %6429  ;;  %v4287_v46 = vmul.f32 0.6931472, %v6428_v41  ;;  %6447 = vpow2.f32 %v4066_v19  ;;  %v4051_v41 = vsub.f32 0.0, %v4035_v23 }
 0xc10   :  { %v6432_v49 = vpop.eup %6431  ;;  %v4285_v61 = vmul.f32 0.6931472, %v6430_v44  ;;  %6449 = vpow2.f32 %v4064_v63  ;;  %v4068_v44 = vmul.f32 1.442695, %v4048_v2  ;;  %v4059_v63 = vsub.f32 0.0, %v4043_v53 }
 0xc11   :  { %v6434_v12 = vpop.eup %6433  ;;  %v4309_v34 = vsel %vm4213_vm14, %v8467_v54, %v4287_v46  ;;  %v4291_v36 = vmul.f32 0.6931472, %v6432_v49  ;;  %v4050_v46 = vsub.f32 0.0, %v4034_v26  ;;  %6451 = vpow2.f32 %v4070_v60 }
 0xc12   :  { %v6436_v57 = vpop.eup %6435  ;;  %4350 = vrot.lane.b32.xlu1 %v4309_v34, %s6559_s6  ;;  %v4308_v4 = vsel %vm4212_vm15, %v8473_v59, %v4285_v61  ;;  %v4289_v20 = vmul.f32 0.6931472, %v6434_v12  ;;  %v4074_v49 = vmul.f32 1.442695, %v4051_v41  ;;  %v4037_v61 = vand.u32 2147483647, %v8467_v54 }
 0xc13   :  { %4348 = vrot.lane.b32.xlu0 %v4308_v4, %s6559_s6  ;;  %v4311_v8 = vsel %vm4215_vm0, %v8477_v42, %v4291_v36  ;;  %v4295_v6 = vmul.f32 0.6931472, %v6436_v57  ;;  %6453 = vpow2.f32 %v4068_v44  ;;  %v4072_v12 = vmul.f32 1.442695, %v4050_v46 }
 0xc14   :  { %v6438_v29 = vpop.eup %6437  ;;  %v4310_v16 = vsel %vm4214_vm2, %v8486_v47, %v4289_v20  ;;  %v4036_v34 = vand.u32 2147483647, %v8473_v59  ;;  %6455 = vpow2.f32 %v4074_v49  ;;  %v4053_v20 = vsub.f32 0.0, %v4037_v61 }
 0xc15   :  { %v6440_v0 = vpop.eup %6439  ;;  %v4293_v25 = vmul.f32 0.6931472, %v6438_v29  ;;  %v4313_v32 = vsel %vm4217_vm3, %v8490_v38, %v4295_v6  ;;  %v4039_v29 = vand.u32 2147483647, %v8477_v42  ;;  %6457 = vpow2.f32 %v4072_v12 }
 0xc16   :  { %4354 = vrot.lane.b32.xlu1 %v4311_v8, %s6559_s6  ;;  %v6442_v58 = vpop.eup %6441  ;;  %v4299_v40 = vmul.f32 0.6931472, %v6440_v0  ;;  %v4052_v6 = vsub.f32 0.0, %v4036_v34  ;;  %v4038_v0 = vand.u32 2147483647, %v8486_v47  ;;  %v4058_v26 = vsub.f32 0.0, %v4042_v11 }
 0xc17   :  { %4352 = vrot.lane.b32.xlu0 %v4310_v16, %s6559_s6  ;;  %v4312_v37 = vsel %vm4216_vm5, %v8498_v51, %v4293_v25  ;;  %v4297_v14 = vmul.f32 0.6931472, %v6442_v58  ;;  %v6444_v36 = vpop.eup %6443  ;;  %v4090_v46 = vmul.f32 1.442695, %v4059_v63  ;;  %vm4097_vm14 = vcmp.ge.f32.partialorder %v8434_v18, 0.0 }
 0xc18   :  { %v4315_v7 = vsel %vm4219_vm11, %v8502_v24, %v4299_v40  ;;  %v6446_v57 = vpop.eup %6445  ;;  %v4109_v8 = vadd.f32 1.0, %v6444_v36  ;;  %v4054_v62 = vsub.f32 0.0, %v4038_v0  ;;  %v4088_v61 = vmul.f32 1.442695, %v4058_v26 }
 0xc19   :  { %v4314_v43 = vsel %vm4218_vm6, %v8483_v39, %v4297_v14  ;;  %v8565_v4 = vpop.eup %6447  ;;  %v4108_v16 = vadd.f32 1.0, %v6446_v57  ;;  %v4055_v14 = vsub.f32 0.0, %v4039_v29  ;;  %vm4096_vm15 = vcmp.ge.f32.partialorder %v8438_v52, 0.0 }
 0xc1a   :  { %4358 = vrot.lane.b32.xlu1 %v4313_v32, %s6559_s6  ;;  %v8569_v25 = vpop.eup %6449  ;;  %v4111_v58 = vadd.f32 1.0, %v8565_v4  ;;  %v4041_v32 = vand.u32 2147483647, %v8490_v38  ;;  %6459 = vrcp.f32 %v4109_v8  ;;  %v4080_v17 = vmul.f32 1.442695, %v4054_v62 }
 0xc1b   :  { %4356 = vrot.lane.b32.xlu0 %v4312_v37, %s6559_s6  ;;  %v8573_v40 = vpop.eup %6451  ;;  %v4078_v37 = vmul.f32 1.442695, %v4053_v20  ;;  %6461 = vrcp.f32 %v4108_v16  ;;  %v4110_v31 = vadd.f32 1.0, %v8569_v25  ;;  %v4082_v50 = vmul.f32 1.442695, %v4055_v14 }
 0xc1c   :  { %6463 = vrcp.f32 %v4111_v58  ;;  %v4113_v21 = vadd.f32 1.0, %v8573_v40  ;;  %v4057_v10 = vsub.f32 0.0, %v4041_v32  ;;  %vm4099_vm0 = vcmp.ge.f32.partialorder %v8443_v35, 0.0 }
 0xc1d   :  { %v8577_v48 = vpop.eup %6453  ;;  %6465 = vpow2.f32 %v4078_v37  ;;  %vm4098_vm2 = vcmp.ge.f32.partialorder %v8464_v33, 0.0  ;;  %vm4101_vm3 = vcmp.ge.f32.partialorder %v8467_v54, 0.0  ;;  %vm4100_vm5 = vcmp.ge.f32.partialorder %v8473_v59, 0.0 }
 0xc1e   :  { %4362 = vrot.lane.b32.xlu1 %v4315_v7, %s6559_s6  ;;  %v4040_v7 = vand.u32 2147483647, %v8498_v51  ;;  %v8582_v55 = vpop.eup %6455  ;;  %v4112_v13 = vadd.f32 1.0, %v8577_v48  ;;  %v4086_v27 = vmul.f32 1.442695, %v4057_v10  ;;  %vm4103_vm11 = vcmp.ge.f32.partialorder %v8477_v42, 0.0 }
 0xc1f   :  { %4360 = vrot.lane.b32.xlu0 %v4314_v43, %s6559_s6  ;;  %v4076_v43 = vmul.f32 1.442695, %v4052_v6  ;;  %v8585_v19 = vpop.eup %6457  ;;  %v4115_v2 = vadd.f32 1.0, %v8582_v55  ;;  %vm4102_vm6 = vcmp.ge.f32.partialorder %v8486_v47, 0.0 }
 0xc20   :  { %v4056_v28 = vsub.f32 0.0, %v4040_v7  ;;  %v4114_v60 = vadd.f32 1.0, %v8585_v19 }
 0xc21   :  { %6467 = vpow2.f32 %v4076_v43 }
 0xc22   :  { %6469 = vrcp.f32 %v4110_v31  ;;  %v4084_v23 = vmul.f32 1.442695, %v4056_v28 }
 0xc23   :  { %6471 = vrcp.f32 %v4113_v21 }
 0xc24   :  { %6473 = vpow2.f32 %v4082_v50  ;;  %v6460_v41 = vpop.eup %6459 }
 0xc25   :  { %6475 = vpow2.f32 %v4080_v17  ;;  %v6462_v44 = vpop.eup %6461  ;;  %v4157_v34 = vmul.f32 %v6460_v41, %v6444_v36 }
 0xc26   :  { %6477 = vrcp.f32 %v4112_v13  ;;  %v6464_v49 = vpop.eup %6463  ;;  %v4156_v29 = vmul.f32 %v6462_v44, %v6446_v57 }
 0xc27   :  { %6479 = vpow2.f32 %v4086_v27  ;;  %v8589_v12 = vpop.eup %6465  ;;  %v4173_v32 = vsel %vm4093_vm8, %v6460_v41, %v4157_v34  ;;  %v4159_v36 = vmul.f32 %v6464_v49, %v8565_v4  ;;  %vm4105_vm8 = vcmp.ge.f32.partialorder %v8490_v38, 0.0 }
 0xc28   :  { %6481 = vpow2.f32 %v4084_v23  ;;  %v4117_v0 = vadd.f32 1.0, %v8589_v12  ;;  %v4172_v43 = vsel %vm4092_vm9, %v6462_v44, %v4156_v29  ;;  %vm4104_vm9 = vcmp.ge.f32.partialorder %v8498_v51, 0.0 }
 0xc29   :  { %6483 = vrcp.f32 %v4115_v2  ;;  %v4175_v28 = vsel %vm4095_vm10, %v6464_v49, %v4159_v36  ;;  %vm4107_vm10 = vcmp.ge.f32.partialorder %v8502_v24, 0.0  ;;  %v6561_v24 = vmov 0.0|0.0  }
 0xc2a   :  { %6485 = vrcp.f32 %v4114_v60 }
 0xc2b   :  { %v8591_v20 = vpop.eup %6467  ;;  %6487 = vpow2.f32 %v4090_v46 }
 0xc2c   :  { %v6470_v8 = vpop.eup %6469  ;;  %6489 = vpow2.f32 %v4088_v61  ;;  %v4116_v37 = vadd.f32 1.0, %v8591_v20 }
 0xc2d   :  { %v6472_v6 = vpop.eup %6471  ;;  %v4158_v56 = vmul.f32 %v6470_v8, %v8569_v25  ;;  %6491 = vrcp.f32 %v4117_v0 }
 0xc2e   :  { %v8595_v16 = vpop.eup %6473  ;;  %v4161_v3 = vmul.f32 %v6472_v6, %v8573_v40  ;;  %6493 = vrcp.f32 %v4116_v37 }
 0xc2f   :  { %v8600_v14 = vpop.eup %6475  ;;  %v4119_v4 = vadd.f32 1.0, %v8595_v16  ;;  %v4174_v30 = vsel %vm4094_vm13, %v6470_v8, %v4158_v56  ;;  %vm4106_vm13 = vcmp.ge.f32.partialorder %v8483_v39, 0.0 }
 0xc30   :  { %v6478_v62 = vpop.eup %6477  ;;  %v4118_v25 = vadd.f32 1.0, %v8600_v14  ;;  %v4177_v40 = vsel %vm4097_vm14, %v6472_v6, %v4161_v3  ;;  %vm6562_vm14 = vmmov 0  }
 0xc31   :  { %v8604_v21 = vpop.eup %6479  ;;  %v4160_v27 = vmul.f32 %v6478_v62, %v8577_v48  ;;  %6495 = vrcp.f32 %v4119_v4 }
 0xc32   :  { %v8609_v10 = vpop.eup %6481  ;;  %v4121_v63 = vadd.f32 1.0, %v8604_v21  ;;  %6497 = vrcp.f32 %v4118_v25 }
 0xc33   :  { %v6484_v17 = vpop.eup %6483  ;;  %v4120_v48 = vadd.f32 1.0, %v8609_v10  ;;  %v4176_v18 = vsel %vm4096_vm15, %v6478_v62, %v4160_v27 }
 0xc34   :  { %v6486_v1 = vpop.eup %6485  ;;  %v4163_v41 = vmul.f32 %v6484_v17, %v8582_v55  ;;  %6499 = vrcp.f32 %v4121_v63 }
 0xc35   :  { %v8616_v2 = vpop.eup %6487  ;;  %v4162_v61 = vmul.f32 %v6486_v1, %v8585_v19  ;;  %6501 = vrcp.f32 %v4120_v48 }
 0xc36   :  { %v8620_v44 = vpop.eup %6489  ;;  %v4123_v55 = vadd.f32 1.0, %v8616_v2  ;;  %v4179_v29 = vsel %vm4099_vm0, %v6484_v17, %v4163_v41  ;;  %vm4799_vm0 = vcmask 1024  }
 0xc37   :  { %v4122_v6 = vadd.f32 1.0, %v8620_v44  ;;  %v6492_v0 = vpop.eup %6491 }
 0xc38   :  { %v6494_v36 = vpop.eup %6493  ;;  %6503 = vrcp.f32 %v4123_v55  ;;  %v4165_v33 = vmul.f32 %v6492_v0, %v8589_v12 }
 0xc39   :  { %6505 = vrcp.f32 %v4122_v6 }
 0xc3a   :  { %v4181_v56 = vsel %vm4101_vm3, %v6492_v0, %v4165_v33 }
 0xc70   :  { %v4335_v58 = vpop.permute.xlu1 %4334 }
 0xc71   :  { %v4381_v57 = vmul.f32 %v4335_v58, %v4173_v32  ;;  %v4333_v7 = vpop.permute.xlu0 %4332  ;;  %v4178_v32 = vsel %vm4098_vm2, %v6486_v1, %v4162_v61 }
 0xc72   :  { %v4380_v31 = vmul.f32 %v4333_v7, %v4172_v43  ;;  %v4164_v7 = vmul.f32 %v6494_v36, %v8591_v20 }
 0xc74   :  { %v5940_v50 = vpack.c.bf16 %v4381_v57, %v4380_v31  ;;  %v4339_v53 = vpop.permute.xlu1 %4338  ;;  %v6496_v57 = vpop.eup %6495 }
 0xc75   :  { %v4383_v11 = vmul.f32 %v4339_v53, %v4175_v28  ;;  %v4337_v13 = vpop.permute.xlu0 %4336  ;;  %v6498_v43 = vpop.eup %6497  ;;  %v4167_v31 = vmul.f32 %v6496_v57, %v8595_v16 }
 0xc76   :  { %v4382_v23 = vmul.f32 %v4337_v13, %v4174_v30  ;;  %5941 = vmatprep.subr.bf16.mxu0 %v5940_v50  ;;  %v6500_v3 = vpop.eup %6499  ;;  %v4166_v12 = vmul.f32 %v6498_v43, %v8600_v14 }
 0xc77   :  { %5943 = vmatpush3.bf16.msra.mxu0 %v5940_v50  ;;  %v4180_v50 = vsel %vm4100_vm5, %v6494_v36, %v4164_v7  ;;  %v6502_v53 = vpop.eup %6501  ;;  %v4183_v17 = vsel %vm4103_vm11, %v6496_v57, %v4167_v31 }
 0xc78   :  { %v5944_v26 = vpack.c.bf16 %v4383_v11, %v4382_v23  ;;  %v4343_v60 = vpop.permute.xlu1 %4342  ;;  %v4169_v11 = vmul.f32 %v6500_v3, %v8604_v21  ;;  %v6504_v59 = vpop.eup %6503  ;;  %v4182_v16 = vsel %vm4102_vm6, %v6498_v43, %v4166_v12  ;;  %v4168_v27 = vmul.f32 %v6502_v53, %v8609_v10 }
 0xc79   :  { %v4385_v46 = vmul.f32 %v4343_v60, %v4177_v40  ;;  %v4341_v49 = vpop.permute.xlu0 %4340  ;;  %v6506_v1 = vpop.eup %6505  ;;  %v4171_v47 = vmul.f32 %v6504_v59, %v8616_v2 }
 0xc7a   :  { %v4384_v52 = vmul.f32 %v4341_v49, %v4176_v18  ;;  %5945 = vmatprep.subr.bf16.mxu0 %v5944_v26  ;;  %v4185_v14 = vsel %vm4105_vm8, %v6500_v3, %v4169_v11  ;;  %v4184_v63 = vsel %vm4104_vm9, %v6502_v53, %v4168_v27  ;;  %v4170_v60 = vmul.f32 %v6506_v1, %v8620_v44 }
 0xc7b   :  { %5947 = vmatpush3.bf16.msra.mxu0 %v5944_v26  ;;  %v4187_v48 = vsel %vm4107_vm10, %v6504_v59, %v4171_v47  ;;  %v8856_v44 = vmov 0.0  }
 0xc7c   :  { %v5948_v34 = vpack.c.bf16 %v4385_v46, %v4384_v52  ;;  %v4347_v8 = vpop.permute.xlu1 %4346  ;;  %v4186_v18 = vsel %vm4106_vm13, %v6506_v1, %v4170_v60 }
 0xc7d   :  { %v4387_v58 = vmul.f32 %v4347_v8, %v4179_v29  ;;  %v4345_v19 = vpop.permute.xlu0 %4344 }
 0xc7e   :  { %v4386_v37 = vmul.f32 %v4345_v19, %v4178_v32  ;;  %5949 = vmatprep.subr.bf16.mxu0 %v5948_v34 }
 0xc7f   :  { %5951 = vmatpush3.bf16.msra.mxu0 %v5948_v34 }
 0xc80   :  { %v5952_v35 = vpack.c.bf16 %v4387_v58, %v4386_v37 }
 0xc82   :  { %5953 = vmatprep.subr.bf16.mxu0 %v5952_v35 }
 0xc83   :  { %5955 = vmatpush3.bf16.msra.mxu0 %v5952_v35 }
 0xc84   :  { %v4351_v62 = vpop.permute.xlu1 %4350 }
 0xc85   :  { %v4389_v4 = vmul.f32 %v4351_v62, %v4181_v56  ;;  %v4349_v28 = vpop.permute.xlu0 %4348 }
 0xc86   :  { %v4388_v25 = vmul.f32 %v4349_v28, %v4180_v50  ;;  %v5048_v28 = vld [vmem:[%s8736_s14 + $0x2] ss:$0 sm:$0xff] }
 0xc88   :  { %v5956_v20 = vpack.c.bf16 %v4389_v4, %v4388_v25  ;;  %v4355_v54 = vpop.permute.xlu1 %4354  ;;  %v5049_v25 = vld [vmem:[%s8737_s15 + $0x2] ss:$0 sm:$0xff] }
 0xc89   :  { %v4391_v30 = vmul.f32 %v4355_v54, %v4183_v17  ;;  %v4353_v13 = vpop.permute.xlu0 %4352 }
 0xc8a   :  { %v4390_v23 = vmul.f32 %v4353_v13, %v4182_v16  ;;  %5957 = vmatprep.subr.bf16.mxu0 %v5956_v20 }
 0xc8b   :  { %5959 = vmatpush3.bf16.msra.mxu0 %v5956_v20 }
 0xc8c   :  { %v5960_v42 = vpack.c.bf16 %v4391_v30, %v4390_v23  ;;  %v4359_v40 = vpop.permute.xlu1 %4358 }
 0xc8d   :  { %v4393_v21 = vmul.f32 %v4359_v40, %v4185_v14  ;;  %v4357_v26 = vpop.permute.xlu0 %4356 }
 0xc8e   :  { %v4392_v41 = vmul.f32 %v4357_v26, %v4184_v63  ;;  %5961 = vmatprep.subr.bf16.mxu0 %v5960_v42 }
 0xc8f   :  { %5963 = vmatpush3.bf16.msra.mxu0 %v5960_v42 }
 0xc90   :  { %v5964_v10 = vpack.c.bf16 %v4393_v21, %v4392_v41  ;;  %v4363_v38 = vpop.permute.xlu1 %4362  ;;  %v4537_v41 = vld [vmem:[%s8738_s5] sm:$0x3] }
 0xc91   :  { %v4395_v46 = vmul.f32 %v4363_v38, %v4187_v48  ;;  %v4361_v51 = vpop.permute.xlu0 %4360  ;;  %v4620_v48 = vld [vmem:[%s8739_s16 + $0x8] sm:$0xff]  ;;  %v4621_v38 = vld [vmem:[%s8739_s16 + $0x10] sm:$0xff] }
 0xc92   :  { %v4394_v49 = vmul.f32 %v4361_v51, %v4186_v18  ;;  %5965 = vmatprep.subr.bf16.mxu0 %v5964_v10  ;;  %v4622_v18 = vld [vmem:[%s8739_s16 + $0x18] sm:$0xff] }
 0xc93   :  { %5967 = vmatpush3.bf16.msra.mxu0 %v5964_v10  ;;  %v4619_v10 = vld [vmem:[%s8739_s16] sm:$0xff]  ;;  %v5979_v51 = vpack.c.bf16 %v4622_v18, %v4621_v38 }
 0xc94   :  { %v5968_v2 = vpack.c.bf16 %v4395_v46, %v4394_v49  ;;  %v5976_v46 = vpack.c.bf16 %v4620_v48, %v4619_v10 }
 0xc96   :  { %5969 = vmatprep.subr.bf16.mxu0 %v5968_v2 }
 0xc97   :  { %5971 = vmatpush3.bf16.msra.mxu0 %v5968_v2 }
 0xc98   :  { %5972 = vmatprep.subr.bf16.mxu0 %v6561_v24 }
 0xc9a   :  { %5753 = vmatmul.mubr.msk.f32.vlgmr.msra.gmra.mrb[42].mxu0 %vm302_vm12, %v8819_v9 }
 0xc9b   :  { %5759 = vmatprep.mubr.msk.f32.mxu0 %vm6562_vm14, %v8856_v44 }
 0xd6d   :  { %v5754_v39 = vpop.f32.mrb[42].mxu0 }
 0xd6e   :  { %v4476_v61 = vsel %vm419_vm1, %v5754_v39, 0.0  ;;  %v4462_v52 = vpop.f32.mrb[43].mxu0 }
 0xd6f   :  { %v4475_v55 = vsel %vm419_vm1, %v4462_v52, 0.0 }
 0xd70   :  { %v4477_v34 = vadd.f32 %v4476_v61, %v4475_v55 }
 0xd72   :  { %v4478_v29 = vrot.slane %v4477_v34, 4 }
 0xd74   :  { %v4479_v8 = vadd.f32 %v4478_v29, %v4477_v34 }
 0xd76   :  { %v4480_v6 = vrot.slane %v4479_v8, 2 }
 0xd78   :  { %v4481_v0 = vadd.f32 %v4480_v6, %v4479_v8  ;;  %v4711_v6 = vld [vmem:[%s8740_s18] sm:$0xff] }
 0xd7a   :  { %v4482_v5 = vrot.slane %v4481_v0, 1 }
 0xd7c   :  { %v4483_v22 = vadd.f32 %v4482_v5, %v4481_v0  ;;  %v4712_v0 = vld [vmem:[%s8740_s18 + $0x8] sm:$0xff]  ;;  %v4713_v5 = vld [vmem:[%s8740_s18 + $0x10] sm:$0xff] }
 0xd7e   :  { %v4484_v9 = vmul.f32 0.0625, %v4483_v22  ;;  %v5982_v22 = vpack.c.bf16 %v4712_v0, %v4711_v6 }
 0xd80   :  { %v4485_v58 = vsub.f32 %v4462_v52, %v4484_v9  ;;  %v4486_v32 = vsub.f32 %v5754_v39, %v4484_v9  ;;  %v4714_v9 = vld [vmem:[%s8740_s18 + $0x18] sm:$0xff] }
 0xd82   :  { %v4487_v19 = vmul.f32 %v4485_v58, %v4485_v58  ;;  %v4488_v36 = vmul.f32 %v4486_v32, %v4486_v32 }
 0xd84   :  { %v4489_v37 = vsel %vm419_vm1, %v4487_v19, 0.0  ;;  %v4490_v35 = vsel %vm419_vm1, %v4488_v36, 0.0  ;;  %v4716_v19 = vld [vmem:[%s8740_s18 + $0x28] sm:$0xff] }
 0xd85   :  { %v4491_v33 = vadd.f32 %v4490_v35, %v4489_v37  ;;  %v4717_v37 = vld [vmem:[%s8740_s18 + $0x30] sm:$0xff]  ;;  %v4718_v35 = vld [vmem:[%s8740_s18 + $0x38] sm:$0xff] }
 0xd87   :  { %v4492_v57 = vrot.slane %v4491_v33, 4 }
 0xd89   :  { %v4493_v7 = vadd.f32 %v4492_v57, %v4491_v33  ;;  %v5991_v33 = vpack.c.bf16 %v4718_v35, %v4717_v37  ;;  %v5051_v57 = vld [vmem:[%s8742_s17] ss:$0 sm:$0xff] }
 0xd8b   :  { %v4494_v43 = vrot.slane %v4493_v7, 2 }
 0xd8d   :  { %v4495_v56 = vadd.f32 %v4494_v43, %v4493_v7 }
 0xd8f   :  { %v4496_v62 = vrot.slane %v4495_v56, 1 }
 0xd91   :  { %v4497_v31 = vadd.f32 %v4496_v62, %v4495_v56 }
 0xd93   :  { %v4498_v3 = vmul.f32 0.0625, %v4497_v31 }
 0xd95   :  { %v4499_v4 = vadd.f32 1e-05, %v4498_v3 }
 0xd97   :  { %6507 = vrsqrt.f32 %v4499_v4 }
 0xda1   :  { %v6508_v50 = vpop.eup %6507 }
 0xda2   :  { %v4501_v12 = vmul.f32 %v6508_v50, %v4485_v58  ;;  %v4502_v53 = vmul.f32 %v6508_v50, %v4486_v32  ;;  %v5985_v58 = vpack.c.bf16 %v4714_v9, %v4713_v5  ;;  %v4715_v32 = vld [vmem:[%s8740_s18 + $0x20] sm:$0xff] }
 0xda3   :  { %v5988_v36 = vpack.c.bf16 %v4716_v19, %v4715_v32 }
 0xda4   :  { %v4509_v20 = vmul.f32 %v5048_v28, %v4501_v12  ;;  %v4510_v17 = vmul.f32 %v5048_v28, %v4502_v53 }
 0xda6   :  { %v4517_v54 = vadd.f32 %v5049_v25, %v4509_v20  ;;  %v4518_v11 = vadd.f32 %v5049_v25, %v4510_v17 }
 0xda8   :  { %v4519_v59 = vadd.f32 %v4517_v54, %v8137_v15  ;;  %v4520_v30 = vadd.f32 %v4518_v11, %v8141_v45 }
 0xdaa   :  { %v4521_v16 = vmin.f32 %v4519_v59, 20.0  ;;  %v4522_v13 = vmin.f32 %v4520_v30, 20.0  ;;  %vm4523_vm12 = vcmp.gt.f32.partialorder %v4519_v59, 20.0  ;;  %vm4524_vm15 = vcmp.gt.f32.partialorder %v4520_v30, 20.0 }
 0xdac   :  { %v4525_v27 = vmul.f32 1.442695, %v4521_v16  ;;  %v4527_v1 = vmul.f32 1.442695, %v4522_v13 }
 0xdae   :  { %6509 = vpow2.f32 %v4525_v27 }
 0xdaf   :  { %6511 = vpow2.f32 %v4527_v1 }
 0xdb8   :  { %v6510_v23 = vpop.eup %6509 }
 0xdb9   :  { %v6512_v42 = vpop.eup %6511  ;;  %v4529_v14 = vadd.f32 1.0, %v6510_v23 }
 0xdba   :  { %v4530_v40 = vadd.f32 1.0, %v6512_v42 }
 0xdbb   :  { %6513 = vlog2.f32 %v4529_v14 }
 0xdbc   :  { %6515 = vlog2.f32 %v4530_v40 }
 0xdc5   :  { %v6514_v47 = vpop.eup %6513 }
 0xdc6   :  { %v6516_v21 = vpop.eup %6515  ;;  %v4532_v63 = vmul.f32 0.6931472, %v6514_v47 }
 0xdc7   :  { %v4534_v26 = vmul.f32 0.6931472, %v6516_v21 }
 0xdc8   :  { %v4535_v15 = vsel %vm4523_vm12, %v4519_v59, %v4532_v63 }
 0xdc9   :  { %v4536_v45 = vsel %vm4524_vm15, %v4520_v30, %v4534_v26 }
 0xdca   :  { %v5973_v60 = vpack.c.bf16 %v4536_v45, %v4535_v15 }
 0xdcc   :  { %5974 = vmatpush3.bf16.msra.mxu0 %v5973_v60 }
 0xdcd   :  { %5975 = vmatprep.subr.bf16.mxu0 %v6561_v24 }
 0xdcf   :  { %5760 = vmatmul.mubr.msk.f32.vlgmr.msra.gmra.mrb[44].mxu0 %vm580_vm4, %v4537_v41 }
 0xdd0   :  { %5770 = vmatprep.mubr.msk.f32.mxu0 %vm6562_vm14, %v8856_v44  ;;  %5977 = vmatpush3.bf16.msra.mxu0 %v5976_v46 }
 0xdd1   :  { %5978 = vmatprep.subr.bf16.mxu0 %v6561_v24 }
 0xdd4   :  { %5980 = vmatpush3.bf16.msra.mxu0 %v5979_v51 }
 0xdd5   :  { %5981 = vmatprep.subr.bf16.mxu0 %v6561_v24 }
 0xea2   :  { %v4607_v49 = vpop.f32.mrb[44].mxu0 }
 0xea3   :  { %v4611_v2 = vmin.f32 %v4607_v49, 20.0  ;;  %v5761_v39 = vpop.f32.mrb[45].mxu0  ;;  %vm4612_vm4 = vcmp.gt.f32.partialorder %v4607_v49, 20.0 }
 0xea5   :  { %v4613_v61 = vmul.f32 1.442695, %v4611_v2 }
 0xea7   :  { %6517 = vpow2.f32 %v4613_v61 }
 0xeb1   :  { %v6518_v52 = vpop.eup %6517 }
 0xeb2   :  { %v4615_v55 = vadd.f32 1.0, %v6518_v52 }
 0xeb4   :  { %6519 = vlog2.f32 %v4615_v55 }
 0xebe   :  { %v6520_v34 = vpop.eup %6519 }
 0xebf   :  { %v4617_v29 = vmul.f32 0.6931472, %v6520_v34 }
 0xec1   :  { %v4618_v8 = vsel %vm4612_vm4, %v4607_v49, %v4617_v29 }
 0xec2   :  { %5771 = vmatmul.mubr.msk.f32.vlgmr.msra.gmra.mrb[46].mxu0 %vm419_vm1, %v4618_v8 }
 0xec3   :  { %5789 = vmatprep.mubr.msk.f32.mxu0 %vm6562_vm14, %v8856_v44  ;;  %v25_v44 = vstv %s8741_s19  ;;  %5983 = vmatpush3.bf16.msra.mxu0 %v5982_v22 }
 0xec4   :  { %26 = vst [vmem:[#allocation2] sm:$0x1] %v25_v44  ;;  %5984 = vmatprep.subr.bf16.mxu0 %v6561_v24 }
 0xec7   :  { %5986 = vmatpush3.bf16.msra.mxu0 %v5985_v58 }
 0xec8   :  { %5987 = vmatprep.subr.bf16.mxu0 %v6561_v24 }
 0xecb   :  { %5989 = vmatpush3.bf16.msra.mxu0 %v5988_v36 }
 0xecc   :  { %5990 = vmatprep.subr.bf16.mxu0 %v6561_v24  ;;  %v5053_v24 = vld [vmem:[#allocation2] ss:$0 sm:$0xff] }
 0xecf   :  { %5992 = vmatpush3.bf16.msra.mxu0 %v5991_v33 }
 0xf95   :  { %v4699_v7 = vpop.f32.mrb[46].mxu0 }
 0xf96   :  { %v4700_v43 = vadd.f32 %v5051_v57, %v4699_v7  ;;  %v5772_v56 = vpop.f32.mrb[47].mxu0 }
 0xf98   :  { %v4703_v62 = vmin.f32 %v4700_v43, 20.0  ;;  %vm4704_vm1 = vcmp.gt.f32.partialorder %v4700_v43, 20.0 }
 0xf9a   :  { %v4705_v31 = vmul.f32 1.442695, %v4703_v62 }
 0xf9c   :  { %6521 = vpow2.f32 %v4705_v31 }
 0xfa6   :  { %v6522_v3 = vpop.eup %6521 }
 0xfa7   :  { %v4707_v4 = vadd.f32 1.0, %v6522_v3 }
 0xfa9   :  { %6523 = vlog2.f32 %v4707_v4 }
 0xfb3   :  { %v6524_v50 = vpop.eup %6523 }
 0xfb4   :  { %v4709_v28 = vmul.f32 0.6931472, %v6524_v50 }
 0xfb6   :  { %v4710_v12 = vsel %vm4704_vm1, %v4700_v43, %v4709_v28 }
 0xfb7   :  { %5790 = vmatmul.mubr.msk.f32.vlgmr.msra.gmra.mrb[48].mxu0 %vm1203_vm7, %v4710_v12 }
0x108a   :  { %v4795_v53 = vpop.f32.mrb[48].mxu0 }
0x108b   :  { %v4796_v25 = vadd.f32 %v5053_v24, %v4795_v53  ;;  %v5791_v20 = vpop.f32.mrb[49].mxu0 }
0x108d   :  { %4800 = vst.msk [vmem:[%s8743_s20] sm:$0x3] %vm4799_vm0, %v4796_v25 }

</bundles_post_ra>
